<compile_context>
chip_gen: v7x
topology: tpu7x:2x2x1
jax: 0.10.0
libtpu: 0.0.40
codegen_flags: <defaults>
</compile_context>

<pallas_src>
import jax
import jax.numpy as jnp
from jax.experimental import pallas as pl
from jax.experimental.pallas import tpu as pltpu

NEG = -1.0e30  # "minus infinity" that stays finite under +/exp (no inf/nan)


def _round_up(x, m):
    return ((x + m - 1) // m) * m


# ----------------------------------------------------------------------------
# Fused kernel: BiLSTM (packed-sequence semantics) + output Linear + CRF logZ
#   embeds: (T, BP, D)  lengths: (BP, 1) int32
#   weights use torch gate order [i, f, g, o]; hidden padded to HP (128-mult),
#   labels padded to NTP (128-mult) -> lane-dense emissions output.
#   Outputs: emissions (T, BP, NTP) and per-row CRF log-partition (BP, 1).
# ----------------------------------------------------------------------------
def bilstm_crf_fused_kernel(embeds_ref, len_ref,
                            wih_f_ref, b_f_ref, wih_b_ref, b_b_ref,
                            whh_f_ref, whh_b_ref,
                            wlin_f_ref, wlin_b_ref, blin_ref,
                            start_ref, end_ref, exp_trans_ref,
                            emis_ref, logz_ref,
                            gx_f, gx_b, hseq_f, hseq_b, hf, cf, hb, cb):
    T, BP, D = embeds_ref.shape
    HP = whh_f_ref.shape[0]            # hidden size (padded to 128-lane mult)
    G = 4 * HP
    NTP = emis_ref.shape[-1]
    lens = len_ref[...]                # (BP, 1) int32

    # ---- hoisted input-to-hidden projections: one big MXU matmul per dir ----
    flat = embeds_ref[...].reshape(T * BP, D)
    gx_f[...] = (jnp.dot(flat, wih_f_ref[...],
                         preferred_element_type=jnp.float32)
                 + b_f_ref[...]).reshape(T, BP, G)
    gx_b[...] = (jnp.dot(flat, wih_b_ref[...],
                         preferred_element_type=jnp.float32)
                 + b_b_ref[...]).reshape(T, BP, G)

    whh_f = whh_f_ref[...]
    whh_b = whh_b_ref[...]
    zeros = jnp.zeros((BP, HP), jnp.float32)
    hf[...] = zeros
    cf[...] = zeros
    hb[...] = zeros
    cb[...] = zeros

    def lstm_step(t, gx, whh, hs, cs, hseq):
        # One LSTM cell (gate order [i, f, g, o]); packed-seq semantics via
        # the `lens > t` mask: state frozen and output zeroed past length.
        h_prev = hs[...]
        c_prev = cs[...]
        gates = gx[t] + jnp.dot(h_prev, whh,
                                preferred_element_type=jnp.float32)  # (BP, 4HP)
        i_g = jax.nn.sigmoid(gates[:, 0 * HP:1 * HP])   # 128-lane aligned slices
        f_g = jax.nn.sigmoid(gates[:, 1 * HP:2 * HP])
        g_g = jnp.tanh(gates[:, 2 * HP:3 * HP])
        o_g = jax.nn.sigmoid(gates[:, 3 * HP:4 * HP])
        c_new = f_g * c_prev + i_g * g_g
        h_new = o_g * jnp.tanh(c_new)
        mask = lens > t                                 # (BP, 1) bool
        h_upd = jnp.where(mask, h_new, h_prev)
        hs[...] = h_upd
        cs[...] = jnp.where(mask, c_new, c_prev)
        hseq[t] = h_upd * mask.astype(jnp.float32)      # zero at padded steps

    # Static unroll (T <= 16 here) for full scheduler visibility; fwd step t
    # and bwd step T-1-t are independent, so interleaving overlaps latency.
    # TODO(synk): for long sequences switch to lax.fori_loop(unroll=2-4) and
    # time-tile the (T, ...) slabs so they are pipelined instead of fully
    # VMEM-resident (v7x 64 MiB VMEM).
    for t in range(T):
        lstm_step(t, gx_f, whh_f, hf, cf, hseq_f)
        lstm_step(T - 1 - t, gx_b, whh_b, hb, cb, hseq_b)

    # ---- output Linear: concat([h_fwd; h_bwd]) @ W == hf@Wf + hb@Wb
    #      (no in-kernel concatenate / relayout) ----
    hf_flat = hseq_f[...].reshape(T * BP, HP)
    hb_flat = hseq_b[...].reshape(T * BP, HP)
    scores = (jnp.dot(hf_flat, wlin_f_ref[...],
                      preferred_element_type=jnp.float32)
              + jnp.dot(hb_flat, wlin_b_ref[...],
                        preferred_element_type=jnp.float32)
              + blin_ref[...]).reshape(T, BP, NTP)
    emis_ref[...] = scores                              # 128-lane dense store

    # ---- CRF log-partition on the VMEM-resident scores (exp-domain form) ----
    # Hoisted off the critical path: per-row emission max + exp of the whole
    # slab (one vectorized EUP pass), exp(end) once.
    emax = jnp.max(scores, axis=-1, keepdims=True)      # (T, BP, 1)
    exp_emis = jnp.exp(scores - emax)                   # (T, BP, NTP)
    exp_trans = exp_trans_ref[...]                      # (NTP, NTP), pre-exp'd
    exp_end = jnp.exp(end_ref[...])                     # (1, NTP)

    alpha0 = start_ref[...] + scores[0]                 # (BP, NTP)
    m0 = jnp.max(alpha0, axis=-1, keepdims=True)
    u = jnp.exp(alpha0 - m0)                            # max-normalised exp(alpha)
    logscale = m0                                       # (BP, 1), side accumulator

    # Per-step u chain: MXU matmul -> VPU mul -> XLU rowmax -> EUP vrcp -> mul.
    # logscale uses the SAME r, so the approx-reciprocal error cancels exactly.
    for i in range(1, T):                               # static unroll, small T
        step_mask = lens > i                            # (BP, 1) bool
        v = jnp.dot(u, exp_trans,
                    preferred_element_type=jnp.float32) * exp_emis[i]
        s = jnp.max(v, axis=-1, keepdims=True)
        r = pl.reciprocal(s, approx=True)
        u_new = v * r
        ls_new = logscale + emax[i] - jnp.log(r)        # off the u critical path
        u = jnp.where(step_mask, u_new, u)
        logscale = jnp.where(step_mask, ls_new, logscale)

    z = jnp.sum(u * exp_end, axis=-1, keepdims=True)    # (BP, 1)
    logz_ref[...] = logscale + jnp.log(z)


def bilstm_crf_fused(embeds_tbd, lengths_b1, kp, start_p, end_p, exp_trans_p):
    T, BP, D = embeds_tbd.shape
    HP = kp["whh_f"].shape[0]
    NTP = kp["blin"].shape[-1]
    G = 4 * HP

    # rough cost hint so XLA can overlap the wrapper gathers with the kernel
    flops = (4 * T * BP * D * G            # input projections (both dirs)
             + 4 * T * BP * HP * G         # recurrent matmuls
             + 4 * T * BP * HP * NTP       # output linear
             + 2 * (T - 1) * BP * NTP * NTP)  # CRF matmul-form steps
    transcendentals = T * BP * (10 * HP + 2 * NTP)
    bytes_accessed = 4 * (T * BP * D + BP
                          + 2 * (D * G + G + HP * G)
                          + 2 * HP * NTP + NTP
                          + 2 * NTP + NTP * NTP
                          + T * BP * NTP + BP)

    return pl.pallas_call(
        bilstm_crf_fused_kernel,
        out_shape=(jax.ShapeDtypeStruct((T, BP, NTP), jnp.float32),
                   jax.ShapeDtypeStruct((BP, 1), jnp.float32)),
        in_specs=[pl.BlockSpec(memory_space=pltpu.MemorySpace.VMEM)] * 14,
        out_specs=(pl.BlockSpec(memory_space=pltpu.MemorySpace.VMEM),
                   pl.BlockSpec(memory_space=pltpu.MemorySpace.VMEM)),
        scratch_shapes=[
            pltpu.VMEM((T, BP, G), jnp.float32),        # hoisted fwd x-gates
            pltpu.VMEM((T, BP, G), jnp.float32),        # hoisted bwd x-gates
            pltpu.VMEM((T, BP, HP), jnp.float32),       # fwd hidden sequence
            pltpu.VMEM((T, BP, HP), jnp.float32),       # bwd hidden sequence
            pltpu.VMEM((BP, HP), jnp.float32),          # h fwd
            pltpu.VMEM((BP, HP), jnp.float32),          # c fwd
            pltpu.VMEM((BP, HP), jnp.float32),          # h bwd
            pltpu.VMEM((BP, HP), jnp.float32),          # c bwd
        ],
        compiler_params=pltpu.CompilerParams(
            vmem_limit_bytes=32 * 1024 * 1024),
        cost_estimate=pl.CostEstimate(flops=flops,
                                      transcendentals=transcendentals,
                                      bytes_accessed=bytes_accessed),
    )(embeds_tbd, lengths_b1,
      kp["wih_f"], kp["b_f"], kp["wih_b"], kp["b_b"],
      kp["whh_f"], kp["whh_b"],
      kp["wlin_f"], kp["wlin_b"], kp["blin"],
      start_p, end_p, exp_trans_p)


# ----------------------------------------------------------------------------
# Parameter prep: pad hidden -> HP (per-gate) and labels -> NTP with zeros so
# padded LSTM units stay exactly 0 and padded label lanes act as impossible
# CRF states (NEG emission bias). Results are exact w.r.t. the unpadded model.
# ----------------------------------------------------------------------------
def _pad_gates(w, H, HP):
    lead = w.shape[:-1]
    w4 = w.reshape(lead + (4, H))
    w4 = jnp.pad(w4, [(0, 0)] * len(lead) + [(0, 0), (0, HP - H)])
    return w4.reshape(lead + (4 * HP,))


def _prep_lstm_params(params, H, HP, NT, NTP):
    # TODO(synk): when H <= 32 the 4 gates fit a single 128-lane tile; a
    # pltpu.roll-based packed-gate path would cut the recurrent matmul width
    # 4x (biggest win on v5e). Kept the simpler per-gate padding here.
    pad_h_rows = lambda w: jnp.pad(w, ((0, HP - H), (0, 0)))
    wlin = params["wlin"]
    return {
        "wih_f": _pad_gates(params["wih_f"], H, HP),
        "wih_b": _pad_gates(params["wih_b"], H, HP),
        "b_f": _pad_gates(params["b_f"], H, HP),
        "b_b": _pad_gates(params["b_b"], H, HP),
        "whh_f": _pad_gates(pad_h_rows(params["whh_f"]), H, HP),
        "whh_b": _pad_gates(pad_h_rows(params["whh_b"]), H, HP),
        "wlin_f": jnp.pad(wlin[:H], ((0, HP - H), (0, NTP - NT))),
        "wlin_b": jnp.pad(wlin[H:], ((0, HP - H), (0, NTP - NT))),
        # NEG bias on padded label lanes -> padded emission columns behave as
        # impossible CRF states while keeping all arithmetic finite.
        "blin": jnp.full((1, NTP), NEG, jnp.float32)
                   .at[0, :NT].set(params["blin"][0]),
    }


# ----------------------------------------------------------------------------
# Model wrapper (glue: embedding gathers, soft-lexicon pooling, gold gathers)
# ----------------------------------------------------------------------------
def init_params(key, char_vocab, char_dim, word_vocab, word_dim,
                hidden_size, word_enhance_size, num_labels):
    ks = jax.random.split(key, 13)
    D = char_dim + word_dim * word_enhance_size
    H = hidden_size
    u = lambda k, shape, s=0.1: jax.random.uniform(k, shape, jnp.float32, -s, s)
    return {
        "char_emb": jax.random.normal(ks[0], (char_vocab, char_dim),
                                      jnp.float32) * 0.1,
        "word_emb": jax.random.normal(ks[1], (word_vocab, word_dim),
                                      jnp.float32) * 0.1,
        # LSTM weights, gate order [i, f, g, o], stored transposed for x @ W
        "wih_f": u(ks[2], (D, 4 * H)),
        "whh_f": u(ks[3], (H, 4 * H)),
        "b_f":   u(ks[4], (1, 4 * H)),        # b_ih + b_hh folded together
        "wih_b": u(ks[5], (D, 4 * H)),
        "whh_b": u(ks[6], (H, 4 * H)),
        "b_b":   u(ks[7], (1, 4 * H)),
        # output Linear (stored as (2H, out))
        "wlin":  u(ks[8], (2 * H, num_labels)),
        "blin":  u(ks[9], (1, num_labels)),
        # CRF
        "crf_start": u(ks[10], (num_labels,)),
        "crf_end":   u(ks[11], (num_labels,)),
        "crf_trans": u(ks[12], (num_labels, num_labels)),
    }


@jax.jit
def bilstm_crf_softlexicon_forward(params, input_ids, lengths,
                                   softlexicon_ids, softlexicon_weights,
                                   label_ids):
    B, T = input_ids.shape
    WE = softlexicon_ids.shape[2]
    NT = params["crf_trans"].shape[0]
    H = params["whh_f"].shape[0]
    Ew = params["word_emb"].shape[-1]
    HP = _round_up(H, 128)      # lane-aligned gate slices
    NTP = _round_up(NT, 128)    # lane-dense emissions / CRF label axis
    BP = _round_up(B, 8)        # sublane-aligned batch
    # TODO(synk): with real batches, pad/stack B to >=64-128 sublanes per call
    # (raises MXU row utilization) and add a batch-parallel grid axis for v7x.

    # --- embeddings + soft-lexicon weighted pooling (XLA glue) ---------------
    # TODO(synk): the gathers + tiny (Ew=8-lane) pooling stay in XLA on purpose
    # (per perf review a dedicated lane-sparse Pallas kernel was a net loss).
    char_embeds = params["char_emb"][input_ids]                     # (B,T,Ec)
    word_vecs = params["word_emb"][softlexicon_ids]                 # (B,T,WE,ML,Ew)
    pooled = jnp.einsum("btwle,btwl->btwe", word_vecs,
                        softlexicon_weights.astype(jnp.float32))
    lex_embeds = pooled.reshape(B, T, WE * Ew)
    embeds = jnp.concatenate([char_embeds, lex_embeds],
                             axis=-1).astype(jnp.float32)           # (B,T,D)

    # pad batch to a sublane multiple, go time-major for the recurrence
    embeds_tbd = jnp.transpose(jnp.pad(embeds, ((0, BP - B), (0, 0), (0, 0))),
                               (1, 0, 2))                           # (T,BP,D)
    lengths_i = lengths.astype(jnp.int32)
    lengths_b1 = jnp.pad(lengths_i, (0, BP - B)).reshape(BP, 1)

    # --- CRF parameters (padded to NTP lanes) ---------------------------------
    kp = _prep_lstm_params(params, H, HP, NT, NTP)
    start_p = jnp.full((1, NTP), NEG, jnp.float32).at[0, :NT].set(
        params["crf_start"])
    end_p = jnp.zeros((1, NTP), jnp.float32).at[0, :NT].set(params["crf_end"])
    # Max-shift transitions before exp for robustness (shift added back below).
    # Padded rows/cols exp(0)=1 are harmless: padded source states carry
    # exp(alpha)=0 weight and padded destinations a NEG emission bias.
    trans_max = jnp.max(params["crf_trans"])
    trans_p = jnp.zeros((NTP, NTP), jnp.float32).at[:NT, :NT].set(
        params["crf_trans"] - trans_max)
    exp_trans_p = jnp.exp(trans_p)

    # --- fused kernel: BiLSTM + Linear -> emissions, + CRF logZ per row ------
    emissions, logz_p = bilstm_crf_fused(embeds_tbd, lengths_b1, kp,
                                         start_p, end_p, exp_trans_p)
    lengths_f = lengths_i.astype(jnp.float32)
    logz = logz_p[:B, 0] + trans_max * jnp.maximum(lengths_f - 1.0, 0.0)

    # --- CRF gold-path score (numerator): pure gathers, done in the wrapper --
    emis_bt = jnp.transpose(emissions[:, :B, :], (1, 0, 2))         # (B,T,NTP)
    emit_gold = jnp.take_along_axis(emis_bt, label_ids[..., None],
                                    axis=-1)[..., 0]                # (B,T)
    trans_gold = params["crf_trans"][label_ids[:, :-1], label_ids[:, 1:]]
    maskf = (jnp.arange(T)[None, :] < lengths_i[:, None]).astype(jnp.float32)
    last_tags = label_ids[jnp.arange(B), jnp.maximum(lengths_i - 1, 0)]
    num = (params["crf_start"][label_ids[:, 0]] + emit_gold[:, 0]
           + jnp.sum(maskf[:, 1:] * (trans_gold + emit_gold[:, 1:]), axis=1)
           + params["crf_end"][last_tags])                          # (B,)

    # --- -1 * CRF log-likelihood (torchcrf, reduction='sum') -----------------
    return jnp.sum(logz - num)


if __name__ == "__main__":
    # small shapes consistent with the module
    B, T = 2, 8
    HIDDEN = 32
    WE, ML = 4, 5            # word_enhance_size (B/M/E/S), max_lexicon_length
    CHAR_VOCAB, CHAR_DIM = 50, 16
    WORD_VOCAB, WORD_DIM = 60, 8
    NUM_LABELS = 5           # e.g. {O, B-X, I-X, B-Y, I-Y}

    key = jax.random.PRNGKey(0)
    k_par, k_in, k_sl, k_w, k_lab = jax.random.split(key, 5)

    params = init_params(k_par, CHAR_VOCAB, CHAR_DIM, WORD_VOCAB, WORD_DIM,
                         HIDDEN, WE, NUM_LABELS)

    input_ids = jax.random.randint(k_in, (B, T), 1, CHAR_VOCAB, dtype=jnp.int32)
    lengths = jnp.array([T, 5], dtype=jnp.int32)
    softlexicon_ids = jax.random.randint(k_sl, (B, T, WE, ML), 0, WORD_VOCAB,
                                         dtype=jnp.int32)
    softlexicon_weights = jax.random.uniform(k_w, (B, T, WE, ML), jnp.float32)
    label_ids = jax.random.randint(k_lab, (B, T), 0, NUM_LABELS, dtype=jnp.int32)

    loss = bilstm_crf_softlexicon_forward(
        params, input_ids, lengths, softlexicon_ids, softlexicon_weights,
        label_ids)
    loss = jax.block_until_ready(loss)
    assert loss.shape == () and bool(jnp.isfinite(loss))
    print("KERNEL_OK")
</pallas_src>

<mosaic_0001>
module attributes {stable_mosaic.version = 11 : i64} {
  func.func @bilstm_crf_fused_kernel(%arg0: memref<8x8x48xf32, #tpu.memory_space<vmem>>, %arg1: memref<8x1xi32, #tpu.memory_space<vmem>>, %arg2: memref<48x512xf32, #tpu.memory_space<vmem>>, %arg3: memref<1x512xf32, #tpu.memory_space<vmem>>, %arg4: memref<48x512xf32, #tpu.memory_space<vmem>>, %arg5: memref<1x512xf32, #tpu.memory_space<vmem>>, %arg6: memref<128x512xf32, #tpu.memory_space<vmem>>, %arg7: memref<128x512xf32, #tpu.memory_space<vmem>>, %arg8: memref<128x128xf32, #tpu.memory_space<vmem>>, %arg9: memref<128x128xf32, #tpu.memory_space<vmem>>, %arg10: memref<1x128xf32, #tpu.memory_space<vmem>>, %arg11: memref<1x128xf32, #tpu.memory_space<vmem>>, %arg12: memref<1x128xf32, #tpu.memory_space<vmem>>, %arg13: memref<128x128xf32, #tpu.memory_space<vmem>>, %arg14: memref<8x8x128xf32, #tpu.memory_space<vmem>>, %arg15: memref<8x1xf32, #tpu.memory_space<vmem>>, %arg16: memref<8x8x512xf32, #tpu.memory_space<vmem>>, %arg17: memref<8x8x512xf32, #tpu.memory_space<vmem>>, %arg18: memref<8x8x128xf32, #tpu.memory_space<vmem>>, %arg19: memref<8x8x128xf32, #tpu.memory_space<vmem>>, %arg20: memref<8x128xf32, #tpu.memory_space<vmem>>, %arg21: memref<8x128xf32, #tpu.memory_space<vmem>>, %arg22: memref<8x128xf32, #tpu.memory_space<vmem>>, %arg23: memref<8x128xf32, #tpu.memory_space<vmem>>) attributes {dimension_semantics = [], scalar_prefetch = 0 : i64, scratch_operands = 8 : i64, tpu.core_type = #tpu.core_type<tc>} {
    %c0 = arith.constant 0 : index
    %c0_0 = arith.constant 0 : index
    %0 = vector.load %arg1[%c0, %c0_0] : memref<8x1xi32, #tpu.memory_space<vmem>>, vector<8x1xi32>
    %c0_1 = arith.constant 0 : index
    %c0_2 = arith.constant 0 : index
    %c0_3 = arith.constant 0 : index
    %1 = vector.load %arg0[%c0_1, %c0_2, %c0_3] : memref<8x8x48xf32, #tpu.memory_space<vmem>>, vector<8x8x48xf32>
    %2 = vector.shape_cast %1 : vector<8x8x48xf32> to vector<64x48xf32>
    %c0_4 = arith.constant 0 : index
    %c0_5 = arith.constant 0 : index
    %3 = vector.load %arg2[%c0_4, %c0_5] : memref<48x512xf32, #tpu.memory_space<vmem>>, vector<48x512xf32>
    %cst = arith.constant dense<0.000000e+00> : vector<64x512xf32>
    %4 = tpu.matmul %2, %3, %cst {dimension_numbers = #tpu.dot_dimension_numbers<[1], [0], [0], [1], [0, 0, 1, 1], [], []>} : vector<64x48xf32>, vector<48x512xf32>, vector<64x512xf32> -> vector<64x512xf32>
    %c0_6 = arith.constant 0 : index
    %c0_7 = arith.constant 0 : index
    %5 = vector.load %arg3[%c0_6, %c0_7] : memref<1x512xf32, #tpu.memory_space<vmem>>, vector<1x512xf32>
    %6 = vector.broadcast %5 : vector<1x512xf32> to vector<64x512xf32>
    %7 = arith.addf %4, %6 : vector<64x512xf32>
    %8 = vector.shape_cast %7 : vector<64x512xf32> to vector<8x8x512xf32>
    %c0_8 = arith.constant 0 : index
    %c0_9 = arith.constant 0 : index
    %c0_10 = arith.constant 0 : index
    %9 = vector.load %arg16[%c0_8, %c0_9, %c0_10] : memref<8x8x512xf32, #tpu.memory_space<vmem>>, vector<8x8x512xf32>
    tpu.vector_store %arg16[%c0_8, %c0_9, %c0_10], %8 {strides = array<i32>} : memref<8x8x512xf32, #tpu.memory_space<vmem>>, vector<8x8x512xf32>,
    %c0_11 = arith.constant 0 : index
    %c0_12 = arith.constant 0 : index
    %10 = vector.load %arg4[%c0_11, %c0_12] : memref<48x512xf32, #tpu.memory_space<vmem>>, vector<48x512xf32>
    %cst_13 = arith.constant dense<0.000000e+00> : vector<64x512xf32>
    %11 = tpu.matmul %2, %10, %cst_13 {dimension_numbers = #tpu.dot_dimension_numbers<[1], [0], [0], [1], [0, 0, 1, 1], [], []>} : vector<64x48xf32>, vector<48x512xf32>, vector<64x512xf32> -> vector<64x512xf32>
    %c0_14 = arith.constant 0 : index
    %c0_15 = arith.constant 0 : index
    %12 = vector.load %arg5[%c0_14, %c0_15] : memref<1x512xf32, #tpu.memory_space<vmem>>, vector<1x512xf32>
    %13 = vector.broadcast %12 : vector<1x512xf32> to vector<64x512xf32>
    %14 = arith.addf %11, %13 : vector<64x512xf32>
    %15 = vector.shape_cast %14 : vector<64x512xf32> to vector<8x8x512xf32>
    %c0_16 = arith.constant 0 : index
    %c0_17 = arith.constant 0 : index
    %c0_18 = arith.constant 0 : index
    %16 = vector.load %arg17[%c0_16, %c0_17, %c0_18] : memref<8x8x512xf32, #tpu.memory_space<vmem>>, vector<8x8x512xf32>
    tpu.vector_store %arg17[%c0_16, %c0_17, %c0_18], %15 {strides = array<i32>} : memref<8x8x512xf32, #tpu.memory_space<vmem>>, vector<8x8x512xf32>,
    %c0_19 = arith.constant 0 : index
    %c0_20 = arith.constant 0 : index
    %17 = vector.load %arg6[%c0_19, %c0_20] : memref<128x512xf32, #tpu.memory_space<vmem>>, vector<128x512xf32>
    %c0_21 = arith.constant 0 : index
    %c0_22 = arith.constant 0 : index
    %18 = vector.load %arg7[%c0_21, %c0_22] : memref<128x512xf32, #tpu.memory_space<vmem>>, vector<128x512xf32>
    %cst_23 = arith.constant 0.000000e+00 : f32
    %19 = vector.broadcast %cst_23 : f32 to vector<8x128xf32>
    %c0_24 = arith.constant 0 : index
    %c0_25 = arith.constant 0 : index
    %20 = vector.load %arg20[%c0_24, %c0_25] : memref<8x128xf32, #tpu.memory_space<vmem>>, vector<8x128xf32>
    tpu.vector_store %arg20[%c0_24, %c0_25], %19 {strides = array<i32>} : memref<8x128xf32, #tpu.memory_space<vmem>>, vector<8x128xf32>,
    %c0_26 = arith.constant 0 : index
    %c0_27 = arith.constant 0 : index
    %21 = vector.load %arg21[%c0_26, %c0_27] : memref<8x128xf32, #tpu.memory_space<vmem>>, vector<8x128xf32>
    tpu.vector_store %arg21[%c0_26, %c0_27], %19 {strides = array<i32>} : memref<8x128xf32, #tpu.memory_space<vmem>>, vector<8x128xf32>,
    %c0_28 = arith.constant 0 : index
    %c0_29 = arith.constant 0 : index
    %22 = vector.load %arg22[%c0_28, %c0_29] : memref<8x128xf32, #tpu.memory_space<vmem>>, vector<8x128xf32>
    tpu.vector_store %arg22[%c0_28, %c0_29], %19 {strides = array<i32>} : memref<8x128xf32, #tpu.memory_space<vmem>>, vector<8x128xf32>,
    %c0_30 = arith.constant 0 : index
    %c0_31 = arith.constant 0 : index
    %23 = vector.load %arg23[%c0_30, %c0_31] : memref<8x128xf32, #tpu.memory_space<vmem>>, vector<8x128xf32>
    tpu.vector_store %arg23[%c0_30, %c0_31], %19 {strides = array<i32>} : memref<8x128xf32, #tpu.memory_space<vmem>>, vector<8x128xf32>,
    %c0_32 = arith.constant 0 : index
    %c0_33 = arith.constant 0 : index
    %24 = vector.load %arg20[%c0_32, %c0_33] : memref<8x128xf32, #tpu.memory_space<vmem>>, vector<8x128xf32>
    %c0_34 = arith.constant 0 : index
    %c0_35 = arith.constant 0 : index
    %25 = vector.load %arg21[%c0_34, %c0_35] : memref<8x128xf32, #tpu.memory_space<vmem>>, vector<8x128xf32>
    %c0_36 = arith.constant 0 : index
    %c0_37 = arith.constant 0 : index
    %c0_38 = arith.constant 0 : index
    %26 = vector.load %arg16[%c0_36, %c0_37, %c0_38] : memref<8x8x512xf32, #tpu.memory_space<vmem>>, vector<1x8x512xf32>
    %27 = vector.shape_cast %26 : vector<1x8x512xf32> to vector<8x512xf32>
    %cst_39 = arith.constant dense<0.000000e+00> : vector<8x512xf32>
    %28 = tpu.matmul %24, %17, %cst_39 {dimension_numbers = #tpu.dot_dimension_numbers<[1], [0], [0], [1], [0, 0, 1, 1], [], []>} : vector<8x128xf32>, vector<128x512xf32>, vector<8x512xf32> -> vector<8x512xf32>
    %29 = arith.addf %27, %28 : vector<8x512xf32>
    %30 = vector.extract_strided_slice %29 {offsets = [0, 0], sizes = [8, 128], strides = [1, 1]} : vector<8x512xf32> to vector<8x128xf32>
    %31 = arith.negf %30 : vector<8x128xf32>
    %32 = math.exp %31 : vector<8x128xf32>
    %cst_40 = arith.constant 1.000000e+00 : f32
    %33 = vector.broadcast %cst_40 : f32 to vector<8x128xf32>
    %34 = arith.addf %33, %32 : vector<8x128xf32>
    %35 = arith.divf %33, %34 : vector<8x128xf32>
    %36 = vector.extract_strided_slice %29 {offsets = [0, 128], sizes = [8, 128], strides = [1, 1]} : vector<8x512xf32> to vector<8x128xf32>
    %37 = arith.negf %36 : vector<8x128xf32>
    %38 = math.exp %37 : vector<8x128xf32>
    %cst_41 = arith.constant 1.000000e+00 : f32
    %39 = vector.broadcast %cst_41 : f32 to vector<8x128xf32>
    %40 = arith.addf %39, %38 : vector<8x128xf32>
    %41 = arith.divf %39, %40 : vector<8x128xf32>
    %42 = vector.extract_strided_slice %29 {offsets = [0, 256], sizes = [8, 128], strides = [1, 1]} : vector<8x512xf32> to vector<8x128xf32>
    %43 = math.tanh %42 : vector<8x128xf32>
    %44 = vector.extract_strided_slice %29 {offsets = [0, 384], sizes = [8, 128], strides = [1, 1]} : vector<8x512xf32> to vector<8x128xf32>
    %45 = arith.negf %44 : vector<8x128xf32>
    %46 = math.exp %45 : vector<8x128xf32>
    %cst_42 = arith.constant 1.000000e+00 : f32
    %47 = vector.broadcast %cst_42 : f32 to vector<8x128xf32>
    %48 = arith.addf %47, %46 : vector<8x128xf32>
    %49 = arith.divf %47, %48 : vector<8x128xf32>
    %50 = arith.mulf %41, %25 : vector<8x128xf32>
    %51 = arith.mulf %35, %43 : vector<8x128xf32>
    %52 = arith.addf %50, %51 : vector<8x128xf32>
    %53 = math.tanh %52 : vector<8x128xf32>
    %54 = arith.mulf %49, %53 : vector<8x128xf32>
    %c0_i32 = arith.constant 0 : i32
    %55 = vector.broadcast %c0_i32 : i32 to vector<8x1xi32>
    %56 = arith.cmpi sgt, %0, %55 : vector<8x1xi32>
    %57 = vector.shape_cast %56 : vector<8x1xi1> to vector<8x1xi1>
    %58 = vector.broadcast %57 : vector<8x1xi1> to vector<8x128xi1>
    %59 = arith.select %58, %54, %24 : vector<8x128xi1>, vector<8x128xf32>
    %c0_43 = arith.constant 0 : index
    %c0_44 = arith.constant 0 : index
    %60 = vector.load %arg20[%c0_43, %c0_44] : memref<8x128xf32, #tpu.memory_space<vmem>>, vector<8x128xf32>
    tpu.vector_store %arg20[%c0_43, %c0_44], %59 {strides = array<i32>} : memref<8x128xf32, #tpu.memory_space<vmem>>, vector<8x128xf32>,
    %61 = vector.shape_cast %56 : vector<8x1xi1> to vector<8x1xi1>
    %62 = vector.broadcast %61 : vector<8x1xi1> to vector<8x128xi1>
    %63 = arith.select %62, %52, %25 : vector<8x128xi1>, vector<8x128xf32>
    %c0_45 = arith.constant 0 : index
    %c0_46 = arith.constant 0 : index
    %64 = vector.load %arg21[%c0_45, %c0_46] : memref<8x128xf32, #tpu.memory_space<vmem>>, vector<8x128xf32>
    tpu.vector_store %arg21[%c0_45, %c0_46], %63 {strides = array<i32>} : memref<8x128xf32, #tpu.memory_space<vmem>>, vector<8x128xf32>,
    %65 = arith.extui %56 : vector<8x1xi1> to vector<8x1xi32>
    %66 = arith.sitofp %65 : vector<8x1xi32> to vector<8x1xf32>
    %67 = vector.broadcast %66 : vector<8x1xf32> to vector<8x128xf32>
    %68 = arith.mulf %59, %67 : vector<8x128xf32>
    %c0_47 = arith.constant 0 : index
    %c0_48 = arith.constant 0 : index
    %c0_49 = arith.constant 0 : index
    %69 = vector.load %arg18[%c0_47, %c0_48, %c0_49] : memref<8x8x128xf32, #tpu.memory_space<vmem>>, vector<1x8x128xf32>
    %70 = vector.shape_cast %69 : vector<1x8x128xf32> to vector<8x128xf32>
    %71 = vector.shape_cast %68 : vector<8x128xf32> to vector<1x8x128xf32>
    tpu.vector_store %arg18[%c0_47, %c0_48, %c0_49], %71 {strides = array<i32>} : memref<8x8x128xf32, #tpu.memory_space<vmem>>, vector<1x8x128xf32>,
    %c0_50 = arith.constant 0 : index
    %c0_51 = arith.constant 0 : index
    %72 = vector.load %arg22[%c0_50, %c0_51] : memref<8x128xf32, #tpu.memory_space<vmem>>, vector<8x128xf32>
    %c0_52 = arith.constant 0 : index
    %c0_53 = arith.constant 0 : index
    %73 = vector.load %arg23[%c0_52, %c0_53] : memref<8x128xf32, #tpu.memory_space<vmem>>, vector<8x128xf32>
    %c7 = arith.constant 7 : index
    %c0_54 = arith.constant 0 : index
    %c0_55 = arith.constant 0 : index
    %74 = vector.load %arg17[%c7, %c0_54, %c0_55] : memref<8x8x512xf32, #tpu.memory_space<vmem>>, vector<1x8x512xf32>
    %75 = vector.shape_cast %74 : vector<1x8x512xf32> to vector<8x512xf32>
    %cst_56 = arith.constant dense<0.000000e+00> : vector<8x512xf32>
    %76 = tpu.matmul %72, %18, %cst_56 {dimension_numbers = #tpu.dot_dimension_numbers<[1], [0], [0], [1], [0, 0, 1, 1], [], []>} : vector<8x128xf32>, vector<128x512xf32>, vector<8x512xf32> -> vector<8x512xf32>
    %77 = arith.addf %75, %76 : vector<8x512xf32>
    %78 = vector.extract_strided_slice %77 {offsets = [0, 0], sizes = [8, 128], strides = [1, 1]} : vector<8x512xf32> to vector<8x128xf32>
    %79 = arith.negf %78 : vector<8x128xf32>
    %80 = math.exp %79 : vector<8x128xf32>
    %cst_57 = arith.constant 1.000000e+00 : f32
    %81 = vector.broadcast %cst_57 : f32 to vector<8x128xf32>
    %82 = arith.addf %81, %80 : vector<8x128xf32>
    %83 = arith.divf %81, %82 : vector<8x128xf32>
    %84 = vector.extract_strided_slice %77 {offsets = [0, 128], sizes = [8, 128], strides = [1, 1]} : vector<8x512xf32> to vector<8x128xf32>
    %85 = arith.negf %84 : vector<8x128xf32>
    %86 = math.exp %85 : vector<8x128xf32>
    %cst_58 = arith.constant 1.000000e+00 : f32
    %87 = vector.broadcast %cst_58 : f32 to vector<8x128xf32>
    %88 = arith.addf %87, %86 : vector<8x128xf32>
    %89 = arith.divf %87, %88 : vector<8x128xf32>
    %90 = vector.extract_strided_slice %77 {offsets = [0, 256], sizes = [8, 128], strides = [1, 1]} : vector<8x512xf32> to vector<8x128xf32>
    %91 = math.tanh %90 : vector<8x128xf32>
    %92 = vector.extract_strided_slice %77 {offsets = [0, 384], sizes = [8, 128], strides = [1, 1]} : vector<8x512xf32> to vector<8x128xf32>
    %93 = arith.negf %92 : vector<8x128xf32>
    %94 = math.exp %93 : vector<8x128xf32>
    %cst_59 = arith.constant 1.000000e+00 : f32
    %95 = vector.broadcast %cst_59 : f32 to vector<8x128xf32>
    %96 = arith.addf %95, %94 : vector<8x128xf32>
    %97 = arith.divf %95, %96 : vector<8x128xf32>
    %98 = arith.mulf %89, %73 : vector<8x128xf32>
    %99 = arith.mulf %83, %91 : vector<8x128xf32>
    %100 = arith.addf %98, %99 : vector<8x128xf32>
    %101 = math.tanh %100 : vector<8x128xf32>
    %102 = arith.mulf %97, %101 : vector<8x128xf32>
    %c7_i32 = arith.constant 7 : i32
    %103 = vector.broadcast %c7_i32 : i32 to vector<8x1xi32>
    %104 = arith.cmpi sgt, %0, %103 : vector<8x1xi32>
    %105 = vector.shape_cast %104 : vector<8x1xi1> to vector<8x1xi1>
    %106 = vector.broadcast %105 : vector<8x1xi1> to vector<8x128xi1>
    %107 = arith.select %106, %102, %72 : vector<8x128xi1>, vector<8x128xf32>
    %c0_60 = arith.constant 0 : index
    %c0_61 = arith.constant 0 : index
    %108 = vector.load %arg22[%c0_60, %c0_61] : memref<8x128xf32, #tpu.memory_space<vmem>>, vector<8x128xf32>
    tpu.vector_store %arg22[%c0_60, %c0_61], %107 {strides = array<i32>} : memref<8x128xf32, #tpu.memory_space<vmem>>, vector<8x128xf32>,
    %109 = vector.shape_cast %104 : vector<8x1xi1> to vector<8x1xi1>
    %110 = vector.broadcast %109 : vector<8x1xi1> to vector<8x128xi1>
    %111 = arith.select %110, %100, %73 : vector<8x128xi1>, vector<8x128xf32>
    %c0_62 = arith.constant 0 : index
    %c0_63 = arith.constant 0 : index
    %112 = vector.load %arg23[%c0_62, %c0_63] : memref<8x128xf32, #tpu.memory_space<vmem>>, vector<8x128xf32>
    tpu.vector_store %arg23[%c0_62, %c0_63], %111 {strides = array<i32>} : memref<8x128xf32, #tpu.memory_space<vmem>>, vector<8x128xf32>,
    %113 = arith.extui %104 : vector<8x1xi1> to vector<8x1xi32>
    %114 = arith.sitofp %113 : vector<8x1xi32> to vector<8x1xf32>
    %115 = vector.broadcast %114 : vector<8x1xf32> to vector<8x128xf32>
    %116 = arith.mulf %107, %115 : vector<8x128xf32>
    %c7_64 = arith.constant 7 : index
    %c0_65 = arith.constant 0 : index
    %c0_66 = arith.constant 0 : index
    %117 = vector.load %arg19[%c7_64, %c0_65, %c0_66] : memref<8x8x128xf32, #tpu.memory_space<vmem>>, vector<1x8x128xf32>
    %118 = vector.shape_cast %117 : vector<1x8x128xf32> to vector<8x128xf32>
    %119 = vector.shape_cast %116 : vector<8x128xf32> to vector<1x8x128xf32>
    tpu.vector_store %arg19[%c7_64, %c0_65, %c0_66], %119 {strides = array<i32>} : memref<8x8x128xf32, #tpu.memory_space<vmem>>, vector<1x8x128xf32>,
    %c0_67 = arith.constant 0 : index
    %c0_68 = arith.constant 0 : index
    %120 = vector.load %arg20[%c0_67, %c0_68] : memref<8x128xf32, #tpu.memory_space<vmem>>, vector<8x128xf32>
    %c0_69 = arith.constant 0 : index
    %c0_70 = arith.constant 0 : index
    %121 = vector.load %arg21[%c0_69, %c0_70] : memref<8x128xf32, #tpu.memory_space<vmem>>, vector<8x128xf32>
    %c1 = arith.constant 1 : index
    %c0_71 = arith.constant 0 : index
    %c0_72 = arith.constant 0 : index
    %122 = vector.load %arg16[%c1, %c0_71, %c0_72] : memref<8x8x512xf32, #tpu.memory_space<vmem>>, vector<1x8x512xf32>
    %123 = vector.shape_cast %122 : vector<1x8x512xf32> to vector<8x512xf32>
    %cst_73 = arith.constant dense<0.000000e+00> : vector<8x512xf32>
    %124 = tpu.matmul %120, %17, %cst_73 {dimension_numbers = #tpu.dot_dimension_numbers<[1], [0], [0], [1], [0, 0, 1, 1], [], []>} : vector<8x128xf32>, vector<128x512xf32>, vector<8x512xf32> -> vector<8x512xf32>
    %125 = arith.addf %123, %124 : vector<8x512xf32>
    %126 = vector.extract_strided_slice %125 {offsets = [0, 0], sizes = [8, 128], strides = [1, 1]} : vector<8x512xf32> to vector<8x128xf32>
    %127 = arith.negf %126 : vector<8x128xf32>
    %128 = math.exp %127 : vector<8x128xf32>
    %cst_74 = arith.constant 1.000000e+00 : f32
    %129 = vector.broadcast %cst_74 : f32 to vector<8x128xf32>
    %130 = arith.addf %129, %128 : vector<8x128xf32>
    %131 = arith.divf %129, %130 : vector<8x128xf32>
    %132 = vector.extract_strided_slice %125 {offsets = [0, 128], sizes = [8, 128], strides = [1, 1]} : vector<8x512xf32> to vector<8x128xf32>
    %133 = arith.negf %132 : vector<8x128xf32>
    %134 = math.exp %133 : vector<8x128xf32>
    %cst_75 = arith.constant 1.000000e+00 : f32
    %135 = vector.broadcast %cst_75 : f32 to vector<8x128xf32>
    %136 = arith.addf %135, %134 : vector<8x128xf32>
    %137 = arith.divf %135, %136 : vector<8x128xf32>
    %138 = vector.extract_strided_slice %125 {offsets = [0, 256], sizes = [8, 128], strides = [1, 1]} : vector<8x512xf32> to vector<8x128xf32>
    %139 = math.tanh %138 : vector<8x128xf32>
    %140 = vector.extract_strided_slice %125 {offsets = [0, 384], sizes = [8, 128], strides = [1, 1]} : vector<8x512xf32> to vector<8x128xf32>
    %141 = arith.negf %140 : vector<8x128xf32>
    %142 = math.exp %141 : vector<8x128xf32>
    %cst_76 = arith.constant 1.000000e+00 : f32
    %143 = vector.broadcast %cst_76 : f32 to vector<8x128xf32>
    %144 = arith.addf %143, %142 : vector<8x128xf32>
    %145 = arith.divf %143, %144 : vector<8x128xf32>
    %146 = arith.mulf %137, %121 : vector<8x128xf32>
    %147 = arith.mulf %131, %139 : vector<8x128xf32>
    %148 = arith.addf %146, %147 : vector<8x128xf32>
    %149 = math.tanh %148 : vector<8x128xf32>
    %150 = arith.mulf %145, %149 : vector<8x128xf32>
    %c1_i32 = arith.constant 1 : i32
    %151 = vector.broadcast %c1_i32 : i32 to vector<8x1xi32>
    %152 = arith.cmpi sgt, %0, %151 : vector<8x1xi32>
    %153 = vector.shape_cast %152 : vector<8x1xi1> to vector<8x1xi1>
    %154 = vector.broadcast %153 : vector<8x1xi1> to vector<8x128xi1>
    %155 = arith.select %154, %150, %120 : vector<8x128xi1>, vector<8x128xf32>
    %c0_77 = arith.constant 0 : index
    %c0_78 = arith.constant 0 : index
    %156 = vector.load %arg20[%c0_77, %c0_78] : memref<8x128xf32, #tpu.memory_space<vmem>>, vector<8x128xf32>
    tpu.vector_store %arg20[%c0_77, %c0_78], %155 {strides = array<i32>} : memref<8x128xf32, #tpu.memory_space<vmem>>, vector<8x128xf32>,
    %157 = vector.shape_cast %152 : vector<8x1xi1> to vector<8x1xi1>
    %158 = vector.broadcast %157 : vector<8x1xi1> to vector<8x128xi1>
    %159 = arith.select %158, %148, %121 : vector<8x128xi1>, vector<8x128xf32>
    %c0_79 = arith.constant 0 : index
    %c0_80 = arith.constant 0 : index
    %160 = vector.load %arg21[%c0_79, %c0_80] : memref<8x128xf32, #tpu.memory_space<vmem>>, vector<8x128xf32>
    tpu.vector_store %arg21[%c0_79, %c0_80], %159 {strides = array<i32>} : memref<8x128xf32, #tpu.memory_space<vmem>>, vector<8x128xf32>,
    %161 = arith.extui %152 : vector<8x1xi1> to vector<8x1xi32>
    %162 = arith.sitofp %161 : vector<8x1xi32> to vector<8x1xf32>
    %163 = vector.broadcast %162 : vector<8x1xf32> to vector<8x128xf32>
    %164 = arith.mulf %155, %163 : vector<8x128xf32>
    %c1_81 = arith.constant 1 : index
    %c0_82 = arith.constant 0 : index
    %c0_83 = arith.constant 0 : index
    %165 = vector.load %arg18[%c1_81, %c0_82, %c0_83] : memref<8x8x128xf32, #tpu.memory_space<vmem>>, vector<1x8x128xf32>
    %166 = vector.shape_cast %165 : vector<1x8x128xf32> to vector<8x128xf32>
    %167 = vector.shape_cast %164 : vector<8x128xf32> to vector<1x8x128xf32>
    tpu.vector_store %arg18[%c1_81, %c0_82, %c0_83], %167 {strides = array<i32>} : memref<8x8x128xf32, #tpu.memory_space<vmem>>, vector<1x8x128xf32>,
    %c0_84 = arith.constant 0 : index
    %c0_85 = arith.constant 0 : index
    %168 = vector.load %arg22[%c0_84, %c0_85] : memref<8x128xf32, #tpu.memory_space<vmem>>, vector<8x128xf32>
    %c0_86 = arith.constant 0 : index
    %c0_87 = arith.constant 0 : index
    %169 = vector.load %arg23[%c0_86, %c0_87] : memref<8x128xf32, #tpu.memory_space<vmem>>, vector<8x128xf32>
    %c6 = arith.constant 6 : index
    %c0_88 = arith.constant 0 : index
    %c0_89 = arith.constant 0 : index
    %170 = vector.load %arg17[%c6, %c0_88, %c0_89] : memref<8x8x512xf32, #tpu.memory_space<vmem>>, vector<1x8x512xf32>
    %171 = vector.shape_cast %170 : vector<1x8x512xf32> to vector<8x512xf32>
    %cst_90 = arith.constant dense<0.000000e+00> : vector<8x512xf32>
    %172 = tpu.matmul %168, %18, %cst_90 {dimension_numbers = #tpu.dot_dimension_numbers<[1], [0], [0], [1], [0, 0, 1, 1], [], []>} : vector<8x128xf32>, vector<128x512xf32>, vector<8x512xf32> -> vector<8x512xf32>
    %173 = arith.addf %171, %172 : vector<8x512xf32>
    %174 = vector.extract_strided_slice %173 {offsets = [0, 0], sizes = [8, 128], strides = [1, 1]} : vector<8x512xf32> to vector<8x128xf32>
    %175 = arith.negf %174 : vector<8x128xf32>
    %176 = math.exp %175 : vector<8x128xf32>
    %cst_91 = arith.constant 1.000000e+00 : f32
    %177 = vector.broadcast %cst_91 : f32 to vector<8x128xf32>
    %178 = arith.addf %177, %176 : vector<8x128xf32>
    %179 = arith.divf %177, %178 : vector<8x128xf32>
    %180 = vector.extract_strided_slice %173 {offsets = [0, 128], sizes = [8, 128], strides = [1, 1]} : vector<8x512xf32> to vector<8x128xf32>
    %181 = arith.negf %180 : vector<8x128xf32>
    %182 = math.exp %181 : vector<8x128xf32>
    %cst_92 = arith.constant 1.000000e+00 : f32
    %183 = vector.broadcast %cst_92 : f32 to vector<8x128xf32>
    %184 = arith.addf %183, %182 : vector<8x128xf32>
    %185 = arith.divf %183, %184 : vector<8x128xf32>
    %186 = vector.extract_strided_slice %173 {offsets = [0, 256], sizes = [8, 128], strides = [1, 1]} : vector<8x512xf32> to vector<8x128xf32>
    %187 = math.tanh %186 : vector<8x128xf32>
    %188 = vector.extract_strided_slice %173 {offsets = [0, 384], sizes = [8, 128], strides = [1, 1]} : vector<8x512xf32> to vector<8x128xf32>
    %189 = arith.negf %188 : vector<8x128xf32>
    %190 = math.exp %189 : vector<8x128xf32>
    %cst_93 = arith.constant 1.000000e+00 : f32
    %191 = vector.broadcast %cst_93 : f32 to vector<8x128xf32>
    %192 = arith.addf %191, %190 : vector<8x128xf32>
    %193 = arith.divf %191, %192 : vector<8x128xf32>
    %194 = arith.mulf %185, %169 : vector<8x128xf32>
    %195 = arith.mulf %179, %187 : vector<8x128xf32>
    %196 = arith.addf %194, %195 : vector<8x128xf32>
    %197 = math.tanh %196 : vector<8x128xf32>
    %198 = arith.mulf %193, %197 : vector<8x128xf32>
    %c6_i32 = arith.constant 6 : i32
    %199 = vector.broadcast %c6_i32 : i32 to vector<8x1xi32>
    %200 = arith.cmpi sgt, %0, %199 : vector<8x1xi32>
    %201 = vector.shape_cast %200 : vector<8x1xi1> to vector<8x1xi1>
    %202 = vector.broadcast %201 : vector<8x1xi1> to vector<8x128xi1>
    %203 = arith.select %202, %198, %168 : vector<8x128xi1>, vector<8x128xf32>
    %c0_94 = arith.constant 0 : index
    %c0_95 = arith.constant 0 : index
    %204 = vector.load %arg22[%c0_94, %c0_95] : memref<8x128xf32, #tpu.memory_space<vmem>>, vector<8x128xf32>
    tpu.vector_store %arg22[%c0_94, %c0_95], %203 {strides = array<i32>} : memref<8x128xf32, #tpu.memory_space<vmem>>, vector<8x128xf32>,
    %205 = vector.shape_cast %200 : vector<8x1xi1> to vector<8x1xi1>
    %206 = vector.broadcast %205 : vector<8x1xi1> to vector<8x128xi1>
    %207 = arith.select %206, %196, %169 : vector<8x128xi1>, vector<8x128xf32>
    %c0_96 = arith.constant 0 : index
    %c0_97 = arith.constant 0 : index
    %208 = vector.load %arg23[%c0_96, %c0_97] : memref<8x128xf32, #tpu.memory_space<vmem>>, vector<8x128xf32>
    tpu.vector_store %arg23[%c0_96, %c0_97], %207 {strides = array<i32>} : memref<8x128xf32, #tpu.memory_space<vmem>>, vector<8x128xf32>,
    %209 = arith.extui %200 : vector<8x1xi1> to vector<8x1xi32>
    %210 = arith.sitofp %209 : vector<8x1xi32> to vector<8x1xf32>
    %211 = vector.broadcast %210 : vector<8x1xf32> to vector<8x128xf32>
    %212 = arith.mulf %203, %211 : vector<8x128xf32>
    %c6_98 = arith.constant 6 : index
    %c0_99 = arith.constant 0 : index
    %c0_100 = arith.constant 0 : index
    %213 = vector.load %arg19[%c6_98, %c0_99, %c0_100] : memref<8x8x128xf32, #tpu.memory_space<vmem>>, vector<1x8x128xf32>
    %214 = vector.shape_cast %213 : vector<1x8x128xf32> to vector<8x128xf32>
    %215 = vector.shape_cast %212 : vector<8x128xf32> to vector<1x8x128xf32>
    tpu.vector_store %arg19[%c6_98, %c0_99, %c0_100], %215 {strides = array<i32>} : memref<8x8x128xf32, #tpu.memory_space<vmem>>, vector<1x8x128xf32>,
    %c0_101 = arith.constant 0 : index
    %c0_102 = arith.constant 0 : index
    %216 = vector.load %arg20[%c0_101, %c0_102] : memref<8x128xf32, #tpu.memory_space<vmem>>, vector<8x128xf32>
    %c0_103 = arith.constant 0 : index
    %c0_104 = arith.constant 0 : index
    %217 = vector.load %arg21[%c0_103, %c0_104] : memref<8x128xf32, #tpu.memory_space<vmem>>, vector<8x128xf32>
    %c2 = arith.constant 2 : index
    %c0_105 = arith.constant 0 : index
    %c0_106 = arith.constant 0 : index
    %218 = vector.load %arg16[%c2, %c0_105, %c0_106] : memref<8x8x512xf32, #tpu.memory_space<vmem>>, vector<1x8x512xf32>
    %219 = vector.shape_cast %218 : vector<1x8x512xf32> to vector<8x512xf32>
    %cst_107 = arith.constant dense<0.000000e+00> : vector<8x512xf32>
    %220 = tpu.matmul %216, %17, %cst_107 {dimension_numbers = #tpu.dot_dimension_numbers<[1], [0], [0], [1], [0, 0, 1, 1], [], []>} : vector<8x128xf32>, vector<128x512xf32>, vector<8x512xf32> -> vector<8x512xf32>
    %221 = arith.addf %219, %220 : vector<8x512xf32>
    %222 = vector.extract_strided_slice %221 {offsets = [0, 0], sizes = [8, 128], strides = [1, 1]} : vector<8x512xf32> to vector<8x128xf32>
    %223 = arith.negf %222 : vector<8x128xf32>
    %224 = math.exp %223 : vector<8x128xf32>
    %cst_108 = arith.constant 1.000000e+00 : f32
    %225 = vector.broadcast %cst_108 : f32 to vector<8x128xf32>
    %226 = arith.addf %225, %224 : vector<8x128xf32>
    %227 = arith.divf %225, %226 : vector<8x128xf32>
    %228 = vector.extract_strided_slice %221 {offsets = [0, 128], sizes = [8, 128], strides = [1, 1]} : vector<8x512xf32> to vector<8x128xf32>
    %229 = arith.negf %228 : vector<8x128xf32>
    %230 = math.exp %229 : vector<8x128xf32>
    %cst_109 = arith.constant 1.000000e+00 : f32
    %231 = vector.broadcast %cst_109 : f32 to vector<8x128xf32>
    %232 = arith.addf %231, %230 : vector<8x128xf32>
    %233 = arith.divf %231, %232 : vector<8x128xf32>
    %234 = vector.extract_strided_slice %221 {offsets = [0, 256], sizes = [8, 128], strides = [1, 1]} : vector<8x512xf32> to vector<8x128xf32>
    %235 = math.tanh %234 : vector<8x128xf32>
    %236 = vector.extract_strided_slice %221 {offsets = [0, 384], sizes = [8, 128], strides = [1, 1]} : vector<8x512xf32> to vector<8x128xf32>
    %237 = arith.negf %236 : vector<8x128xf32>
    %238 = math.exp %237 : vector<8x128xf32>
    %cst_110 = arith.constant 1.000000e+00 : f32
    %239 = vector.broadcast %cst_110 : f32 to vector<8x128xf32>
    %240 = arith.addf %239, %238 : vector<8x128xf32>
    %241 = arith.divf %239, %240 : vector<8x128xf32>
    %242 = arith.mulf %233, %217 : vector<8x128xf32>
    %243 = arith.mulf %227, %235 : vector<8x128xf32>
    %244 = arith.addf %242, %243 : vector<8x128xf32>
    %245 = math.tanh %244 : vector<8x128xf32>
    %246 = arith.mulf %241, %245 : vector<8x128xf32>
    %c2_i32 = arith.constant 2 : i32
    %247 = vector.broadcast %c2_i32 : i32 to vector<8x1xi32>
    %248 = arith.cmpi sgt, %0, %247 : vector<8x1xi32>
    %249 = vector.shape_cast %248 : vector<8x1xi1> to vector<8x1xi1>
    %250 = vector.broadcast %249 : vector<8x1xi1> to vector<8x128xi1>
    %251 = arith.select %250, %246, %216 : vector<8x128xi1>, vector<8x128xf32>
    %c0_111 = arith.constant 0 : index
    %c0_112 = arith.constant 0 : index
    %252 = vector.load %arg20[%c0_111, %c0_112] : memref<8x128xf32, #tpu.memory_space<vmem>>, vector<8x128xf32>
    tpu.vector_store %arg20[%c0_111, %c0_112], %251 {strides = array<i32>} : memref<8x128xf32, #tpu.memory_space<vmem>>, vector<8x128xf32>,
    %253 = vector.shape_cast %248 : vector<8x1xi1> to vector<8x1xi1>
    %254 = vector.broadcast %253 : vector<8x1xi1> to vector<8x128xi1>
    %255 = arith.select %254, %244, %217 : vector<8x128xi1>, vector<8x128xf32>
    %c0_113 = arith.constant 0 : index
    %c0_114 = arith.constant 0 : index
    %256 = vector.load %arg21[%c0_113, %c0_114] : memref<8x128xf32, #tpu.memory_space<vmem>>, vector<8x128xf32>
    tpu.vector_store %arg21[%c0_113, %c0_114], %255 {strides = array<i32>} : memref<8x128xf32, #tpu.memory_space<vmem>>, vector<8x128xf32>,
    %257 = arith.extui %248 : vector<8x1xi1> to vector<8x1xi32>
    %258 = arith.sitofp %257 : vector<8x1xi32> to vector<8x1xf32>
    %259 = vector.broadcast %258 : vector<8x1xf32> to vector<8x128xf32>
    %260 = arith.mulf %251, %259 : vector<8x128xf32>
    %c2_115 = arith.constant 2 : index
    %c0_116 = arith.constant 0 : index
    %c0_117 = arith.constant 0 : index
    %261 = vector.load %arg18[%c2_115, %c0_116, %c0_117] : memref<8x8x128xf32, #tpu.memory_space<vmem>>, vector<1x8x128xf32>
    %262 = vector.shape_cast %261 : vector<1x8x128xf32> to vector<8x128xf32>
    %263 = vector.shape_cast %260 : vector<8x128xf32> to vector<1x8x128xf32>
    tpu.vector_store %arg18[%c2_115, %c0_116, %c0_117], %263 {strides = array<i32>} : memref<8x8x128xf32, #tpu.memory_space<vmem>>, vector<1x8x128xf32>,
    %c0_118 = arith.constant 0 : index
    %c0_119 = arith.constant 0 : index
    %264 = vector.load %arg22[%c0_118, %c0_119] : memref<8x128xf32, #tpu.memory_space<vmem>>, vector<8x128xf32>
    %c0_120 = arith.constant 0 : index
    %c0_121 = arith.constant 0 : index
    %265 = vector.load %arg23[%c0_120, %c0_121] : memref<8x128xf32, #tpu.memory_space<vmem>>, vector<8x128xf32>
    %c5 = arith.constant 5 : index
    %c0_122 = arith.constant 0 : index
    %c0_123 = arith.constant 0 : index
    %266 = vector.load %arg17[%c5, %c0_122, %c0_123] : memref<8x8x512xf32, #tpu.memory_space<vmem>>, vector<1x8x512xf32>
    %267 = vector.shape_cast %266 : vector<1x8x512xf32> to vector<8x512xf32>
    %cst_124 = arith.constant dense<0.000000e+00> : vector<8x512xf32>
    %268 = tpu.matmul %264, %18, %cst_124 {dimension_numbers = #tpu.dot_dimension_numbers<[1], [0], [0], [1], [0, 0, 1, 1], [], []>} : vector<8x128xf32>, vector<128x512xf32>, vector<8x512xf32> -> vector<8x512xf32>
    %269 = arith.addf %267, %268 : vector<8x512xf32>
    %270 = vector.extract_strided_slice %269 {offsets = [0, 0], sizes = [8, 128], strides = [1, 1]} : vector<8x512xf32> to vector<8x128xf32>
    %271 = arith.negf %270 : vector<8x128xf32>
    %272 = math.exp %271 : vector<8x128xf32>
    %cst_125 = arith.constant 1.000000e+00 : f32
    %273 = vector.broadcast %cst_125 : f32 to vector<8x128xf32>
    %274 = arith.addf %273, %272 : vector<8x128xf32>
    %275 = arith.divf %273, %274 : vector<8x128xf32>
    %276 = vector.extract_strided_slice %269 {offsets = [0, 128], sizes = [8, 128], strides = [1, 1]} : vector<8x512xf32> to vector<8x128xf32>
    %277 = arith.negf %276 : vector<8x128xf32>
    %278 = math.exp %277 : vector<8x128xf32>
    %cst_126 = arith.constant 1.000000e+00 : f32
    %279 = vector.broadcast %cst_126 : f32 to vector<8x128xf32>
    %280 = arith.addf %279, %278 : vector<8x128xf32>
    %281 = arith.divf %279, %280 : vector<8x128xf32>
    %282 = vector.extract_strided_slice %269 {offsets = [0, 256], sizes = [8, 128], strides = [1, 1]} : vector<8x512xf32> to vector<8x128xf32>
    %283 = math.tanh %282 : vector<8x128xf32>
    %284 = vector.extract_strided_slice %269 {offsets = [0, 384], sizes = [8, 128], strides = [1, 1]} : vector<8x512xf32> to vector<8x128xf32>
    %285 = arith.negf %284 : vector<8x128xf32>
    %286 = math.exp %285 : vector<8x128xf32>
    %cst_127 = arith.constant 1.000000e+00 : f32
    %287 = vector.broadcast %cst_127 : f32 to vector<8x128xf32>
    %288 = arith.addf %287, %286 : vector<8x128xf32>
    %289 = arith.divf %287, %288 : vector<8x128xf32>
    %290 = arith.mulf %281, %265 : vector<8x128xf32>
    %291 = arith.mulf %275, %283 : vector<8x128xf32>
    %292 = arith.addf %290, %291 : vector<8x128xf32>
    %293 = math.tanh %292 : vector<8x128xf32>
    %294 = arith.mulf %289, %293 : vector<8x128xf32>
    %c5_i32 = arith.constant 5 : i32
    %295 = vector.broadcast %c5_i32 : i32 to vector<8x1xi32>
    %296 = arith.cmpi sgt, %0, %295 : vector<8x1xi32>
    %297 = vector.shape_cast %296 : vector<8x1xi1> to vector<8x1xi1>
    %298 = vector.broadcast %297 : vector<8x1xi1> to vector<8x128xi1>
    %299 = arith.select %298, %294, %264 : vector<8x128xi1>, vector<8x128xf32>
    %c0_128 = arith.constant 0 : index
    %c0_129 = arith.constant 0 : index
    %300 = vector.load %arg22[%c0_128, %c0_129] : memref<8x128xf32, #tpu.memory_space<vmem>>, vector<8x128xf32>
    tpu.vector_store %arg22[%c0_128, %c0_129], %299 {strides = array<i32>} : memref<8x128xf32, #tpu.memory_space<vmem>>, vector<8x128xf32>,
    %301 = vector.shape_cast %296 : vector<8x1xi1> to vector<8x1xi1>
    %302 = vector.broadcast %301 : vector<8x1xi1> to vector<8x128xi1>
    %303 = arith.select %302, %292, %265 : vector<8x128xi1>, vector<8x128xf32>
    %c0_130 = arith.constant 0 : index
    %c0_131 = arith.constant 0 : index
    %304 = vector.load %arg23[%c0_130, %c0_131] : memref<8x128xf32, #tpu.memory_space<vmem>>, vector<8x128xf32>
    tpu.vector_store %arg23[%c0_130, %c0_131], %303 {strides = array<i32>} : memref<8x128xf32, #tpu.memory_space<vmem>>, vector<8x128xf32>,
    %305 = arith.extui %296 : vector<8x1xi1> to vector<8x1xi32>
    %306 = arith.sitofp %305 : vector<8x1xi32> to vector<8x1xf32>
    %307 = vector.broadcast %306 : vector<8x1xf32> to vector<8x128xf32>
    %308 = arith.mulf %299, %307 : vector<8x128xf32>
    %c5_132 = arith.constant 5 : index
    %c0_133 = arith.constant 0 : index
    %c0_134 = arith.constant 0 : index
    %309 = vector.load %arg19[%c5_132, %c0_133, %c0_134] : memref<8x8x128xf32, #tpu.memory_space<vmem>>, vector<1x8x128xf32>
    %310 = vector.shape_cast %309 : vector<1x8x128xf32> to vector<8x128xf32>
    %311 = vector.shape_cast %308 : vector<8x128xf32> to vector<1x8x128xf32>
    tpu.vector_store %arg19[%c5_132, %c0_133, %c0_134], %311 {strides = array<i32>} : memref<8x8x128xf32, #tpu.memory_space<vmem>>, vector<1x8x128xf32>,
    %c0_135 = arith.constant 0 : index
    %c0_136 = arith.constant 0 : index
    %312 = vector.load %arg20[%c0_135, %c0_136] : memref<8x128xf32, #tpu.memory_space<vmem>>, vector<8x128xf32>
    %c0_137 = arith.constant 0 : index
    %c0_138 = arith.constant 0 : index
    %313 = vector.load %arg21[%c0_137, %c0_138] : memref<8x128xf32, #tpu.memory_space<vmem>>, vector<8x128xf32>
    %c3 = arith.constant 3 : index
    %c0_139 = arith.constant 0 : index
    %c0_140 = arith.constant 0 : index
    %314 = vector.load %arg16[%c3, %c0_139, %c0_140] : memref<8x8x512xf32, #tpu.memory_space<vmem>>, vector<1x8x512xf32>
    %315 = vector.shape_cast %314 : vector<1x8x512xf32> to vector<8x512xf32>
    %cst_141 = arith.constant dense<0.000000e+00> : vector<8x512xf32>
    %316 = tpu.matmul %312, %17, %cst_141 {dimension_numbers = #tpu.dot_dimension_numbers<[1], [0], [0], [1], [0, 0, 1, 1], [], []>} : vector<8x128xf32>, vector<128x512xf32>, vector<8x512xf32> -> vector<8x512xf32>
    %317 = arith.addf %315, %316 : vector<8x512xf32>
    %318 = vector.extract_strided_slice %317 {offsets = [0, 0], sizes = [8, 128], strides = [1, 1]} : vector<8x512xf32> to vector<8x128xf32>
    %319 = arith.negf %318 : vector<8x128xf32>
    %320 = math.exp %319 : vector<8x128xf32>
    %cst_142 = arith.constant 1.000000e+00 : f32
    %321 = vector.broadcast %cst_142 : f32 to vector<8x128xf32>
    %322 = arith.addf %321, %320 : vector<8x128xf32>
    %323 = arith.divf %321, %322 : vector<8x128xf32>
    %324 = vector.extract_strided_slice %317 {offsets = [0, 128], sizes = [8, 128], strides = [1, 1]} : vector<8x512xf32> to vector<8x128xf32>
    %325 = arith.negf %324 : vector<8x128xf32>
    %326 = math.exp %325 : vector<8x128xf32>
    %cst_143 = arith.constant 1.000000e+00 : f32
    %327 = vector.broadcast %cst_143 : f32 to vector<8x128xf32>
    %328 = arith.addf %327, %326 : vector<8x128xf32>
    %329 = arith.divf %327, %328 : vector<8x128xf32>
    %330 = vector.extract_strided_slice %317 {offsets = [0, 256], sizes = [8, 128], strides = [1, 1]} : vector<8x512xf32> to vector<8x128xf32>
    %331 = math.tanh %330 : vector<8x128xf32>
    %332 = vector.extract_strided_slice %317 {offsets = [0, 384], sizes = [8, 128], strides = [1, 1]} : vector<8x512xf32> to vector<8x128xf32>
    %333 = arith.negf %332 : vector<8x128xf32>
    %334 = math.exp %333 : vector<8x128xf32>
    %cst_144 = arith.constant 1.000000e+00 : f32
    %335 = vector.broadcast %cst_144 : f32 to vector<8x128xf32>
    %336 = arith.addf %335, %334 : vector<8x128xf32>
    %337 = arith.divf %335, %336 : vector<8x128xf32>
    %338 = arith.mulf %329, %313 : vector<8x128xf32>
    %339 = arith.mulf %323, %331 : vector<8x128xf32>
    %340 = arith.addf %338, %339 : vector<8x128xf32>
    %341 = math.tanh %340 : vector<8x128xf32>
    %342 = arith.mulf %337, %341 : vector<8x128xf32>
    %c3_i32 = arith.constant 3 : i32
    %343 = vector.broadcast %c3_i32 : i32 to vector<8x1xi32>
    %344 = arith.cmpi sgt, %0, %343 : vector<8x1xi32>
    %345 = vector.shape_cast %344 : vector<8x1xi1> to vector<8x1xi1>
    %346 = vector.broadcast %345 : vector<8x1xi1> to vector<8x128xi1>
    %347 = arith.select %346, %342, %312 : vector<8x128xi1>, vector<8x128xf32>
    %c0_145 = arith.constant 0 : index
    %c0_146 = arith.constant 0 : index
    %348 = vector.load %arg20[%c0_145, %c0_146] : memref<8x128xf32, #tpu.memory_space<vmem>>, vector<8x128xf32>
    tpu.vector_store %arg20[%c0_145, %c0_146], %347 {strides = array<i32>} : memref<8x128xf32, #tpu.memory_space<vmem>>, vector<8x128xf32>,
    %349 = vector.shape_cast %344 : vector<8x1xi1> to vector<8x1xi1>
    %350 = vector.broadcast %349 : vector<8x1xi1> to vector<8x128xi1>
    %351 = arith.select %350, %340, %313 : vector<8x128xi1>, vector<8x128xf32>
    %c0_147 = arith.constant 0 : index
    %c0_148 = arith.constant 0 : index
    %352 = vector.load %arg21[%c0_147, %c0_148] : memref<8x128xf32, #tpu.memory_space<vmem>>, vector<8x128xf32>
    tpu.vector_store %arg21[%c0_147, %c0_148], %351 {strides = array<i32>} : memref<8x128xf32, #tpu.memory_space<vmem>>, vector<8x128xf32>,
    %353 = arith.extui %344 : vector<8x1xi1> to vector<8x1xi32>
    %354 = arith.sitofp %353 : vector<8x1xi32> to vector<8x1xf32>
    %355 = vector.broadcast %354 : vector<8x1xf32> to vector<8x128xf32>
    %356 = arith.mulf %347, %355 : vector<8x128xf32>
    %c3_149 = arith.constant 3 : index
    %c0_150 = arith.constant 0 : index
    %c0_151 = arith.constant 0 : index
    %357 = vector.load %arg18[%c3_149, %c0_150, %c0_151] : memref<8x8x128xf32, #tpu.memory_space<vmem>>, vector<1x8x128xf32>
    %358 = vector.shape_cast %357 : vector<1x8x128xf32> to vector<8x128xf32>
    %359 = vector.shape_cast %356 : vector<8x128xf32> to vector<1x8x128xf32>
    tpu.vector_store %arg18[%c3_149, %c0_150, %c0_151], %359 {strides = array<i32>} : memref<8x8x128xf32, #tpu.memory_space<vmem>>, vector<1x8x128xf32>,
    %c0_152 = arith.constant 0 : index
    %c0_153 = arith.constant 0 : index
    %360 = vector.load %arg22[%c0_152, %c0_153] : memref<8x128xf32, #tpu.memory_space<vmem>>, vector<8x128xf32>
    %c0_154 = arith.constant 0 : index
    %c0_155 = arith.constant 0 : index
    %361 = vector.load %arg23[%c0_154, %c0_155] : memref<8x128xf32, #tpu.memory_space<vmem>>, vector<8x128xf32>
    %c4 = arith.constant 4 : index
    %c0_156 = arith.constant 0 : index
    %c0_157 = arith.constant 0 : index
    %362 = vector.load %arg17[%c4, %c0_156, %c0_157] : memref<8x8x512xf32, #tpu.memory_space<vmem>>, vector<1x8x512xf32>
    %363 = vector.shape_cast %362 : vector<1x8x512xf32> to vector<8x512xf32>
    %cst_158 = arith.constant dense<0.000000e+00> : vector<8x512xf32>
    %364 = tpu.matmul %360, %18, %cst_158 {dimension_numbers = #tpu.dot_dimension_numbers<[1], [0], [0], [1], [0, 0, 1, 1], [], []>} : vector<8x128xf32>, vector<128x512xf32>, vector<8x512xf32> -> vector<8x512xf32>
    %365 = arith.addf %363, %364 : vector<8x512xf32>
    %366 = vector.extract_strided_slice %365 {offsets = [0, 0], sizes = [8, 128], strides = [1, 1]} : vector<8x512xf32> to vector<8x128xf32>
    %367 = arith.negf %366 : vector<8x128xf32>
    %368 = math.exp %367 : vector<8x128xf32>
    %cst_159 = arith.constant 1.000000e+00 : f32
    %369 = vector.broadcast %cst_159 : f32 to vector<8x128xf32>
    %370 = arith.addf %369, %368 : vector<8x128xf32>
    %371 = arith.divf %369, %370 : vector<8x128xf32>
    %372 = vector.extract_strided_slice %365 {offsets = [0, 128], sizes = [8, 128], strides = [1, 1]} : vector<8x512xf32> to vector<8x128xf32>
    %373 = arith.negf %372 : vector<8x128xf32>
    %374 = math.exp %373 : vector<8x128xf32>
    %cst_160 = arith.constant 1.000000e+00 : f32
    %375 = vector.broadcast %cst_160 : f32 to vector<8x128xf32>
    %376 = arith.addf %375, %374 : vector<8x128xf32>
    %377 = arith.divf %375, %376 : vector<8x128xf32>
    %378 = vector.extract_strided_slice %365 {offsets = [0, 256], sizes = [8, 128], strides = [1, 1]} : vector<8x512xf32> to vector<8x128xf32>
    %379 = math.tanh %378 : vector<8x128xf32>
    %380 = vector.extract_strided_slice %365 {offsets = [0, 384], sizes = [8, 128], strides = [1, 1]} : vector<8x512xf32> to vector<8x128xf32>
    %381 = arith.negf %380 : vector<8x128xf32>
    %382 = math.exp %381 : vector<8x128xf32>
    %cst_161 = arith.constant 1.000000e+00 : f32
    %383 = vector.broadcast %cst_161 : f32 to vector<8x128xf32>
    %384 = arith.addf %383, %382 : vector<8x128xf32>
    %385 = arith.divf %383, %384 : vector<8x128xf32>
    %386 = arith.mulf %377, %361 : vector<8x128xf32>
    %387 = arith.mulf %371, %379 : vector<8x128xf32>
    %388 = arith.addf %386, %387 : vector<8x128xf32>
    %389 = math.tanh %388 : vector<8x128xf32>
    %390 = arith.mulf %385, %389 : vector<8x128xf32>
    %c4_i32 = arith.constant 4 : i32
    %391 = vector.broadcast %c4_i32 : i32 to vector<8x1xi32>
    %392 = arith.cmpi sgt, %0, %391 : vector<8x1xi32>
    %393 = vector.shape_cast %392 : vector<8x1xi1> to vector<8x1xi1>
    %394 = vector.broadcast %393 : vector<8x1xi1> to vector<8x128xi1>
    %395 = arith.select %394, %390, %360 : vector<8x128xi1>, vector<8x128xf32>
    %c0_162 = arith.constant 0 : index
    %c0_163 = arith.constant 0 : index
    %396 = vector.load %arg22[%c0_162, %c0_163] : memref<8x128xf32, #tpu.memory_space<vmem>>, vector<8x128xf32>
    tpu.vector_store %arg22[%c0_162, %c0_163], %395 {strides = array<i32>} : memref<8x128xf32, #tpu.memory_space<vmem>>, vector<8x128xf32>,
    %397 = vector.shape_cast %392 : vector<8x1xi1> to vector<8x1xi1>
    %398 = vector.broadcast %397 : vector<8x1xi1> to vector<8x128xi1>
    %399 = arith.select %398, %388, %361 : vector<8x128xi1>, vector<8x128xf32>
    %c0_164 = arith.constant 0 : index
    %c0_165 = arith.constant 0 : index
    %400 = vector.load %arg23[%c0_164, %c0_165] : memref<8x128xf32, #tpu.memory_space<vmem>>, vector<8x128xf32>
    tpu.vector_store %arg23[%c0_164, %c0_165], %399 {strides = array<i32>} : memref<8x128xf32, #tpu.memory_space<vmem>>, vector<8x128xf32>,
    %401 = arith.extui %392 : vector<8x1xi1> to vector<8x1xi32>
    %402 = arith.sitofp %401 : vector<8x1xi32> to vector<8x1xf32>
    %403 = vector.broadcast %402 : vector<8x1xf32> to vector<8x128xf32>
    %404 = arith.mulf %395, %403 : vector<8x128xf32>
    %c4_166 = arith.constant 4 : index
    %c0_167 = arith.constant 0 : index
    %c0_168 = arith.constant 0 : index
    %405 = vector.load %arg19[%c4_166, %c0_167, %c0_168] : memref<8x8x128xf32, #tpu.memory_space<vmem>>, vector<1x8x128xf32>
    %406 = vector.shape_cast %405 : vector<1x8x128xf32> to vector<8x128xf32>
    %407 = vector.shape_cast %404 : vector<8x128xf32> to vector<1x8x128xf32>
    tpu.vector_store %arg19[%c4_166, %c0_167, %c0_168], %407 {strides = array<i32>} : memref<8x8x128xf32, #tpu.memory_space<vmem>>, vector<1x8x128xf32>,
    %c0_169 = arith.constant 0 : index
    %c0_170 = arith.constant 0 : index
    %408 = vector.load %arg20[%c0_169, %c0_170] : memref<8x128xf32, #tpu.memory_space<vmem>>, vector<8x128xf32>
    %c0_171 = arith.constant 0 : index
    %c0_172 = arith.constant 0 : index
    %409 = vector.load %arg21[%c0_171, %c0_172] : memref<8x128xf32, #tpu.memory_space<vmem>>, vector<8x128xf32>
    %c4_173 = arith.constant 4 : index
    %c0_174 = arith.constant 0 : index
    %c0_175 = arith.constant 0 : index
    %410 = vector.load %arg16[%c4_173, %c0_174, %c0_175] : memref<8x8x512xf32, #tpu.memory_space<vmem>>, vector<1x8x512xf32>
    %411 = vector.shape_cast %410 : vector<1x8x512xf32> to vector<8x512xf32>
    %cst_176 = arith.constant dense<0.000000e+00> : vector<8x512xf32>
    %412 = tpu.matmul %408, %17, %cst_176 {dimension_numbers = #tpu.dot_dimension_numbers<[1], [0], [0], [1], [0, 0, 1, 1], [], []>} : vector<8x128xf32>, vector<128x512xf32>, vector<8x512xf32> -> vector<8x512xf32>
    %413 = arith.addf %411, %412 : vector<8x512xf32>
    %414 = vector.extract_strided_slice %413 {offsets = [0, 0], sizes = [8, 128], strides = [1, 1]} : vector<8x512xf32> to vector<8x128xf32>
    %415 = arith.negf %414 : vector<8x128xf32>
    %416 = math.exp %415 : vector<8x128xf32>
    %cst_177 = arith.constant 1.000000e+00 : f32
    %417 = vector.broadcast %cst_177 : f32 to vector<8x128xf32>
    %418 = arith.addf %417, %416 : vector<8x128xf32>
    %419 = arith.divf %417, %418 : vector<8x128xf32>
    %420 = vector.extract_strided_slice %413 {offsets = [0, 128], sizes = [8, 128], strides = [1, 1]} : vector<8x512xf32> to vector<8x128xf32>
    %421 = arith.negf %420 : vector<8x128xf32>
    %422 = math.exp %421 : vector<8x128xf32>
    %cst_178 = arith.constant 1.000000e+00 : f32
    %423 = vector.broadcast %cst_178 : f32 to vector<8x128xf32>
    %424 = arith.addf %423, %422 : vector<8x128xf32>
    %425 = arith.divf %423, %424 : vector<8x128xf32>
    %426 = vector.extract_strided_slice %413 {offsets = [0, 256], sizes = [8, 128], strides = [1, 1]} : vector<8x512xf32> to vector<8x128xf32>
    %427 = math.tanh %426 : vector<8x128xf32>
    %428 = vector.extract_strided_slice %413 {offsets = [0, 384], sizes = [8, 128], strides = [1, 1]} : vector<8x512xf32> to vector<8x128xf32>
    %429 = arith.negf %428 : vector<8x128xf32>
    %430 = math.exp %429 : vector<8x128xf32>
    %cst_179 = arith.constant 1.000000e+00 : f32
    %431 = vector.broadcast %cst_179 : f32 to vector<8x128xf32>
    %432 = arith.addf %431, %430 : vector<8x128xf32>
    %433 = arith.divf %431, %432 : vector<8x128xf32>
    %434 = arith.mulf %425, %409 : vector<8x128xf32>
    %435 = arith.mulf %419, %427 : vector<8x128xf32>
    %436 = arith.addf %434, %435 : vector<8x128xf32>
    %437 = math.tanh %436 : vector<8x128xf32>
    %438 = arith.mulf %433, %437 : vector<8x128xf32>
    %c4_i32_180 = arith.constant 4 : i32
    %439 = vector.broadcast %c4_i32_180 : i32 to vector<8x1xi32>
    %440 = arith.cmpi sgt, %0, %439 : vector<8x1xi32>
    %441 = vector.shape_cast %440 : vector<8x1xi1> to vector<8x1xi1>
    %442 = vector.broadcast %441 : vector<8x1xi1> to vector<8x128xi1>
    %443 = arith.select %442, %438, %408 : vector<8x128xi1>, vector<8x128xf32>
    %c0_181 = arith.constant 0 : index
    %c0_182 = arith.constant 0 : index
    %444 = vector.load %arg20[%c0_181, %c0_182] : memref<8x128xf32, #tpu.memory_space<vmem>>, vector<8x128xf32>
    tpu.vector_store %arg20[%c0_181, %c0_182], %443 {strides = array<i32>} : memref<8x128xf32, #tpu.memory_space<vmem>>, vector<8x128xf32>,
    %445 = vector.shape_cast %440 : vector<8x1xi1> to vector<8x1xi1>
    %446 = vector.broadcast %445 : vector<8x1xi1> to vector<8x128xi1>
    %447 = arith.select %446, %436, %409 : vector<8x128xi1>, vector<8x128xf32>
    %c0_183 = arith.constant 0 : index
    %c0_184 = arith.constant 0 : index
    %448 = vector.load %arg21[%c0_183, %c0_184] : memref<8x128xf32, #tpu.memory_space<vmem>>, vector<8x128xf32>
    tpu.vector_store %arg21[%c0_183, %c0_184], %447 {strides = array<i32>} : memref<8x128xf32, #tpu.memory_space<vmem>>, vector<8x128xf32>,
    %449 = arith.extui %440 : vector<8x1xi1> to vector<8x1xi32>
    %450 = arith.sitofp %449 : vector<8x1xi32> to vector<8x1xf32>
    %451 = vector.broadcast %450 : vector<8x1xf32> to vector<8x128xf32>
    %452 = arith.mulf %443, %451 : vector<8x128xf32>
    %c4_185 = arith.constant 4 : index
    %c0_186 = arith.constant 0 : index
    %c0_187 = arith.constant 0 : index
    %453 = vector.load %arg18[%c4_185, %c0_186, %c0_187] : memref<8x8x128xf32, #tpu.memory_space<vmem>>, vector<1x8x128xf32>
    %454 = vector.shape_cast %453 : vector<1x8x128xf32> to vector<8x128xf32>
    %455 = vector.shape_cast %452 : vector<8x128xf32> to vector<1x8x128xf32>
    tpu.vector_store %arg18[%c4_185, %c0_186, %c0_187], %455 {strides = array<i32>} : memref<8x8x128xf32, #tpu.memory_space<vmem>>, vector<1x8x128xf32>,
    %c0_188 = arith.constant 0 : index
    %c0_189 = arith.constant 0 : index
    %456 = vector.load %arg22[%c0_188, %c0_189] : memref<8x128xf32, #tpu.memory_space<vmem>>, vector<8x128xf32>
    %c0_190 = arith.constant 0 : index
    %c0_191 = arith.constant 0 : index
    %457 = vector.load %arg23[%c0_190, %c0_191] : memref<8x128xf32, #tpu.memory_space<vmem>>, vector<8x128xf32>
    %c3_192 = arith.constant 3 : index
    %c0_193 = arith.constant 0 : index
    %c0_194 = arith.constant 0 : index
    %458 = vector.load %arg17[%c3_192, %c0_193, %c0_194] : memref<8x8x512xf32, #tpu.memory_space<vmem>>, vector<1x8x512xf32>
    %459 = vector.shape_cast %458 : vector<1x8x512xf32> to vector<8x512xf32>
    %cst_195 = arith.constant dense<0.000000e+00> : vector<8x512xf32>
    %460 = tpu.matmul %456, %18, %cst_195 {dimension_numbers = #tpu.dot_dimension_numbers<[1], [0], [0], [1], [0, 0, 1, 1], [], []>} : vector<8x128xf32>, vector<128x512xf32>, vector<8x512xf32> -> vector<8x512xf32>
    %461 = arith.addf %459, %460 : vector<8x512xf32>
    %462 = vector.extract_strided_slice %461 {offsets = [0, 0], sizes = [8, 128], strides = [1, 1]} : vector<8x512xf32> to vector<8x128xf32>
    %463 = arith.negf %462 : vector<8x128xf32>
    %464 = math.exp %463 : vector<8x128xf32>
    %cst_196 = arith.constant 1.000000e+00 : f32
    %465 = vector.broadcast %cst_196 : f32 to vector<8x128xf32>
    %466 = arith.addf %465, %464 : vector<8x128xf32>
    %467 = arith.divf %465, %466 : vector<8x128xf32>
    %468 = vector.extract_strided_slice %461 {offsets = [0, 128], sizes = [8, 128], strides = [1, 1]} : vector<8x512xf32> to vector<8x128xf32>
    %469 = arith.negf %468 : vector<8x128xf32>
    %470 = math.exp %469 : vector<8x128xf32>
    %cst_197 = arith.constant 1.000000e+00 : f32
    %471 = vector.broadcast %cst_197 : f32 to vector<8x128xf32>
    %472 = arith.addf %471, %470 : vector<8x128xf32>
    %473 = arith.divf %471, %472 : vector<8x128xf32>
    %474 = vector.extract_strided_slice %461 {offsets = [0, 256], sizes = [8, 128], strides = [1, 1]} : vector<8x512xf32> to vector<8x128xf32>
    %475 = math.tanh %474 : vector<8x128xf32>
    %476 = vector.extract_strided_slice %461 {offsets = [0, 384], sizes = [8, 128], strides = [1, 1]} : vector<8x512xf32> to vector<8x128xf32>
    %477 = arith.negf %476 : vector<8x128xf32>
    %478 = math.exp %477 : vector<8x128xf32>
    %cst_198 = arith.constant 1.000000e+00 : f32
    %479 = vector.broadcast %cst_198 : f32 to vector<8x128xf32>
    %480 = arith.addf %479, %478 : vector<8x128xf32>
    %481 = arith.divf %479, %480 : vector<8x128xf32>
    %482 = arith.mulf %473, %457 : vector<8x128xf32>
    %483 = arith.mulf %467, %475 : vector<8x128xf32>
    %484 = arith.addf %482, %483 : vector<8x128xf32>
    %485 = math.tanh %484 : vector<8x128xf32>
    %486 = arith.mulf %481, %485 : vector<8x128xf32>
    %c3_i32_199 = arith.constant 3 : i32
    %487 = vector.broadcast %c3_i32_199 : i32 to vector<8x1xi32>
    %488 = arith.cmpi sgt, %0, %487 : vector<8x1xi32>
    %489 = vector.shape_cast %488 : vector<8x1xi1> to vector<8x1xi1>
    %490 = vector.broadcast %489 : vector<8x1xi1> to vector<8x128xi1>
    %491 = arith.select %490, %486, %456 : vector<8x128xi1>, vector<8x128xf32>
    %c0_200 = arith.constant 0 : index
    %c0_201 = arith.constant 0 : index
    %492 = vector.load %arg22[%c0_200, %c0_201] : memref<8x128xf32, #tpu.memory_space<vmem>>, vector<8x128xf32>
    tpu.vector_store %arg22[%c0_200, %c0_201], %491 {strides = array<i32>} : memref<8x128xf32, #tpu.memory_space<vmem>>, vector<8x128xf32>,
    %493 = vector.shape_cast %488 : vector<8x1xi1> to vector<8x1xi1>
    %494 = vector.broadcast %493 : vector<8x1xi1> to vector<8x128xi1>
    %495 = arith.select %494, %484, %457 : vector<8x128xi1>, vector<8x128xf32>
    %c0_202 = arith.constant 0 : index
    %c0_203 = arith.constant 0 : index
    %496 = vector.load %arg23[%c0_202, %c0_203] : memref<8x128xf32, #tpu.memory_space<vmem>>, vector<8x128xf32>
    tpu.vector_store %arg23[%c0_202, %c0_203], %495 {strides = array<i32>} : memref<8x128xf32, #tpu.memory_space<vmem>>, vector<8x128xf32>,
    %497 = arith.extui %488 : vector<8x1xi1> to vector<8x1xi32>
    %498 = arith.sitofp %497 : vector<8x1xi32> to vector<8x1xf32>
    %499 = vector.broadcast %498 : vector<8x1xf32> to vector<8x128xf32>
    %500 = arith.mulf %491, %499 : vector<8x128xf32>
    %c3_204 = arith.constant 3 : index
    %c0_205 = arith.constant 0 : index
    %c0_206 = arith.constant 0 : index
    %501 = vector.load %arg19[%c3_204, %c0_205, %c0_206] : memref<8x8x128xf32, #tpu.memory_space<vmem>>, vector<1x8x128xf32>
    %502 = vector.shape_cast %501 : vector<1x8x128xf32> to vector<8x128xf32>
    %503 = vector.shape_cast %500 : vector<8x128xf32> to vector<1x8x128xf32>
    tpu.vector_store %arg19[%c3_204, %c0_205, %c0_206], %503 {strides = array<i32>} : memref<8x8x128xf32, #tpu.memory_space<vmem>>, vector<1x8x128xf32>,
    %c0_207 = arith.constant 0 : index
    %c0_208 = arith.constant 0 : index
    %504 = vector.load %arg20[%c0_207, %c0_208] : memref<8x128xf32, #tpu.memory_space<vmem>>, vector<8x128xf32>
    %c0_209 = arith.constant 0 : index
    %c0_210 = arith.constant 0 : index
    %505 = vector.load %arg21[%c0_209, %c0_210] : memref<8x128xf32, #tpu.memory_space<vmem>>, vector<8x128xf32>
    %c5_211 = arith.constant 5 : index
    %c0_212 = arith.constant 0 : index
    %c0_213 = arith.constant 0 : index
    %506 = vector.load %arg16[%c5_211, %c0_212, %c0_213] : memref<8x8x512xf32, #tpu.memory_space<vmem>>, vector<1x8x512xf32>
    %507 = vector.shape_cast %506 : vector<1x8x512xf32> to vector<8x512xf32>
    %cst_214 = arith.constant dense<0.000000e+00> : vector<8x512xf32>
    %508 = tpu.matmul %504, %17, %cst_214 {dimension_numbers = #tpu.dot_dimension_numbers<[1], [0], [0], [1], [0, 0, 1, 1], [], []>} : vector<8x128xf32>, vector<128x512xf32>, vector<8x512xf32> -> vector<8x512xf32>
    %509 = arith.addf %507, %508 : vector<8x512xf32>
    %510 = vector.extract_strided_slice %509 {offsets = [0, 0], sizes = [8, 128], strides = [1, 1]} : vector<8x512xf32> to vector<8x128xf32>
    %511 = arith.negf %510 : vector<8x128xf32>
    %512 = math.exp %511 : vector<8x128xf32>
    %cst_215 = arith.constant 1.000000e+00 : f32
    %513 = vector.broadcast %cst_215 : f32 to vector<8x128xf32>
    %514 = arith.addf %513, %512 : vector<8x128xf32>
    %515 = arith.divf %513, %514 : vector<8x128xf32>
    %516 = vector.extract_strided_slice %509 {offsets = [0, 128], sizes = [8, 128], strides = [1, 1]} : vector<8x512xf32> to vector<8x128xf32>
    %517 = arith.negf %516 : vector<8x128xf32>
    %518 = math.exp %517 : vector<8x128xf32>
    %cst_216 = arith.constant 1.000000e+00 : f32
    %519 = vector.broadcast %cst_216 : f32 to vector<8x128xf32>
    %520 = arith.addf %519, %518 : vector<8x128xf32>
    %521 = arith.divf %519, %520 : vector<8x128xf32>
    %522 = vector.extract_strided_slice %509 {offsets = [0, 256], sizes = [8, 128], strides = [1, 1]} : vector<8x512xf32> to vector<8x128xf32>
    %523 = math.tanh %522 : vector<8x128xf32>
    %524 = vector.extract_strided_slice %509 {offsets = [0, 384], sizes = [8, 128], strides = [1, 1]} : vector<8x512xf32> to vector<8x128xf32>
    %525 = arith.negf %524 : vector<8x128xf32>
    %526 = math.exp %525 : vector<8x128xf32>
    %cst_217 = arith.constant 1.000000e+00 : f32
    %527 = vector.broadcast %cst_217 : f32 to vector<8x128xf32>
    %528 = arith.addf %527, %526 : vector<8x128xf32>
    %529 = arith.divf %527, %528 : vector<8x128xf32>
    %530 = arith.mulf %521, %505 : vector<8x128xf32>
    %531 = arith.mulf %515, %523 : vector<8x128xf32>
    %532 = arith.addf %530, %531 : vector<8x128xf32>
    %533 = math.tanh %532 : vector<8x128xf32>
    %534 = arith.mulf %529, %533 : vector<8x128xf32>
    %c5_i32_218 = arith.constant 5 : i32
    %535 = vector.broadcast %c5_i32_218 : i32 to vector<8x1xi32>
    %536 = arith.cmpi sgt, %0, %535 : vector<8x1xi32>
    %537 = vector.shape_cast %536 : vector<8x1xi1> to vector<8x1xi1>
    %538 = vector.broadcast %537 : vector<8x1xi1> to vector<8x128xi1>
    %539 = arith.select %538, %534, %504 : vector<8x128xi1>, vector<8x128xf32>
    %c0_219 = arith.constant 0 : index
    %c0_220 = arith.constant 0 : index
    %540 = vector.load %arg20[%c0_219, %c0_220] : memref<8x128xf32, #tpu.memory_space<vmem>>, vector<8x128xf32>
    tpu.vector_store %arg20[%c0_219, %c0_220], %539 {strides = array<i32>} : memref<8x128xf32, #tpu.memory_space<vmem>>, vector<8x128xf32>,
    %541 = vector.shape_cast %536 : vector<8x1xi1> to vector<8x1xi1>
    %542 = vector.broadcast %541 : vector<8x1xi1> to vector<8x128xi1>
    %543 = arith.select %542, %532, %505 : vector<8x128xi1>, vector<8x128xf32>
    %c0_221 = arith.constant 0 : index
    %c0_222 = arith.constant 0 : index
    %544 = vector.load %arg21[%c0_221, %c0_222] : memref<8x128xf32, #tpu.memory_space<vmem>>, vector<8x128xf32>
    tpu.vector_store %arg21[%c0_221, %c0_222], %543 {strides = array<i32>} : memref<8x128xf32, #tpu.memory_space<vmem>>, vector<8x128xf32>,
    %545 = arith.extui %536 : vector<8x1xi1> to vector<8x1xi32>
    %546 = arith.sitofp %545 : vector<8x1xi32> to vector<8x1xf32>
    %547 = vector.broadcast %546 : vector<8x1xf32> to vector<8x128xf32>
    %548 = arith.mulf %539, %547 : vector<8x128xf32>
    %c5_223 = arith.constant 5 : index
    %c0_224 = arith.constant 0 : index
    %c0_225 = arith.constant 0 : index
    %549 = vector.load %arg18[%c5_223, %c0_224, %c0_225] : memref<8x8x128xf32, #tpu.memory_space<vmem>>, vector<1x8x128xf32>
    %550 = vector.shape_cast %549 : vector<1x8x128xf32> to vector<8x128xf32>
    %551 = vector.shape_cast %548 : vector<8x128xf32> to vector<1x8x128xf32>
    tpu.vector_store %arg18[%c5_223, %c0_224, %c0_225], %551 {strides = array<i32>} : memref<8x8x128xf32, #tpu.memory_space<vmem>>, vector<1x8x128xf32>,
    %c0_226 = arith.constant 0 : index
    %c0_227 = arith.constant 0 : index
    %552 = vector.load %arg22[%c0_226, %c0_227] : memref<8x128xf32, #tpu.memory_space<vmem>>, vector<8x128xf32>
    %c0_228 = arith.constant 0 : index
    %c0_229 = arith.constant 0 : index
    %553 = vector.load %arg23[%c0_228, %c0_229] : memref<8x128xf32, #tpu.memory_space<vmem>>, vector<8x128xf32>
    %c2_230 = arith.constant 2 : index
    %c0_231 = arith.constant 0 : index
    %c0_232 = arith.constant 0 : index
    %554 = vector.load %arg17[%c2_230, %c0_231, %c0_232] : memref<8x8x512xf32, #tpu.memory_space<vmem>>, vector<1x8x512xf32>
    %555 = vector.shape_cast %554 : vector<1x8x512xf32> to vector<8x512xf32>
    %cst_233 = arith.constant dense<0.000000e+00> : vector<8x512xf32>
    %556 = tpu.matmul %552, %18, %cst_233 {dimension_numbers = #tpu.dot_dimension_numbers<[1], [0], [0], [1], [0, 0, 1, 1], [], []>} : vector<8x128xf32>, vector<128x512xf32>, vector<8x512xf32> -> vector<8x512xf32>
    %557 = arith.addf %555, %556 : vector<8x512xf32>
    %558 = vector.extract_strided_slice %557 {offsets = [0, 0], sizes = [8, 128], strides = [1, 1]} : vector<8x512xf32> to vector<8x128xf32>
    %559 = arith.negf %558 : vector<8x128xf32>
    %560 = math.exp %559 : vector<8x128xf32>
    %cst_234 = arith.constant 1.000000e+00 : f32
    %561 = vector.broadcast %cst_234 : f32 to vector<8x128xf32>
    %562 = arith.addf %561, %560 : vector<8x128xf32>
    %563 = arith.divf %561, %562 : vector<8x128xf32>
    %564 = vector.extract_strided_slice %557 {offsets = [0, 128], sizes = [8, 128], strides = [1, 1]} : vector<8x512xf32> to vector<8x128xf32>
    %565 = arith.negf %564 : vector<8x128xf32>
    %566 = math.exp %565 : vector<8x128xf32>
    %cst_235 = arith.constant 1.000000e+00 : f32
    %567 = vector.broadcast %cst_235 : f32 to vector<8x128xf32>
    %568 = arith.addf %567, %566 : vector<8x128xf32>
    %569 = arith.divf %567, %568 : vector<8x128xf32>
    %570 = vector.extract_strided_slice %557 {offsets = [0, 256], sizes = [8, 128], strides = [1, 1]} : vector<8x512xf32> to vector<8x128xf32>
    %571 = math.tanh %570 : vector<8x128xf32>
    %572 = vector.extract_strided_slice %557 {offsets = [0, 384], sizes = [8, 128], strides = [1, 1]} : vector<8x512xf32> to vector<8x128xf32>
    %573 = arith.negf %572 : vector<8x128xf32>
    %574 = math.exp %573 : vector<8x128xf32>
    %cst_236 = arith.constant 1.000000e+00 : f32
    %575 = vector.broadcast %cst_236 : f32 to vector<8x128xf32>
    %576 = arith.addf %575, %574 : vector<8x128xf32>
    %577 = arith.divf %575, %576 : vector<8x128xf32>
    %578 = arith.mulf %569, %553 : vector<8x128xf32>
    %579 = arith.mulf %563, %571 : vector<8x128xf32>
    %580 = arith.addf %578, %579 : vector<8x128xf32>
    %581 = math.tanh %580 : vector<8x128xf32>
    %582 = arith.mulf %577, %581 : vector<8x128xf32>
    %c2_i32_237 = arith.constant 2 : i32
    %583 = vector.broadcast %c2_i32_237 : i32 to vector<8x1xi32>
    %584 = arith.cmpi sgt, %0, %583 : vector<8x1xi32>
    %585 = vector.shape_cast %584 : vector<8x1xi1> to vector<8x1xi1>
    %586 = vector.broadcast %585 : vector<8x1xi1> to vector<8x128xi1>
    %587 = arith.select %586, %582, %552 : vector<8x128xi1>, vector<8x128xf32>
    %c0_238 = arith.constant 0 : index
    %c0_239 = arith.constant 0 : index
    %588 = vector.load %arg22[%c0_238, %c0_239] : memref<8x128xf32, #tpu.memory_space<vmem>>, vector<8x128xf32>
    tpu.vector_store %arg22[%c0_238, %c0_239], %587 {strides = array<i32>} : memref<8x128xf32, #tpu.memory_space<vmem>>, vector<8x128xf32>,
    %589 = vector.shape_cast %584 : vector<8x1xi1> to vector<8x1xi1>
    %590 = vector.broadcast %589 : vector<8x1xi1> to vector<8x128xi1>
    %591 = arith.select %590, %580, %553 : vector<8x128xi1>, vector<8x128xf32>
    %c0_240 = arith.constant 0 : index
    %c0_241 = arith.constant 0 : index
    %592 = vector.load %arg23[%c0_240, %c0_241] : memref<8x128xf32, #tpu.memory_space<vmem>>, vector<8x128xf32>
    tpu.vector_store %arg23[%c0_240, %c0_241], %591 {strides = array<i32>} : memref<8x128xf32, #tpu.memory_space<vmem>>, vector<8x128xf32>,
    %593 = arith.extui %584 : vector<8x1xi1> to vector<8x1xi32>
    %594 = arith.sitofp %593 : vector<8x1xi32> to vector<8x1xf32>
    %595 = vector.broadcast %594 : vector<8x1xf32> to vector<8x128xf32>
    %596 = arith.mulf %587, %595 : vector<8x128xf32>
    %c2_242 = arith.constant 2 : index
    %c0_243 = arith.constant 0 : index
    %c0_244 = arith.constant 0 : index
    %597 = vector.load %arg19[%c2_242, %c0_243, %c0_244] : memref<8x8x128xf32, #tpu.memory_space<vmem>>, vector<1x8x128xf32>
    %598 = vector.shape_cast %597 : vector<1x8x128xf32> to vector<8x128xf32>
    %599 = vector.shape_cast %596 : vector<8x128xf32> to vector<1x8x128xf32>
    tpu.vector_store %arg19[%c2_242, %c0_243, %c0_244], %599 {strides = array<i32>} : memref<8x8x128xf32, #tpu.memory_space<vmem>>, vector<1x8x128xf32>,
    %c0_245 = arith.constant 0 : index
    %c0_246 = arith.constant 0 : index
    %600 = vector.load %arg20[%c0_245, %c0_246] : memref<8x128xf32, #tpu.memory_space<vmem>>, vector<8x128xf32>
    %c0_247 = arith.constant 0 : index
    %c0_248 = arith.constant 0 : index
    %601 = vector.load %arg21[%c0_247, %c0_248] : memref<8x128xf32, #tpu.memory_space<vmem>>, vector<8x128xf32>
    %c6_249 = arith.constant 6 : index
    %c0_250 = arith.constant 0 : index
    %c0_251 = arith.constant 0 : index
    %602 = vector.load %arg16[%c6_249, %c0_250, %c0_251] : memref<8x8x512xf32, #tpu.memory_space<vmem>>, vector<1x8x512xf32>
    %603 = vector.shape_cast %602 : vector<1x8x512xf32> to vector<8x512xf32>
    %cst_252 = arith.constant dense<0.000000e+00> : vector<8x512xf32>
    %604 = tpu.matmul %600, %17, %cst_252 {dimension_numbers = #tpu.dot_dimension_numbers<[1], [0], [0], [1], [0, 0, 1, 1], [], []>} : vector<8x128xf32>, vector<128x512xf32>, vector<8x512xf32> -> vector<8x512xf32>
    %605 = arith.addf %603, %604 : vector<8x512xf32>
    %606 = vector.extract_strided_slice %605 {offsets = [0, 0], sizes = [8, 128], strides = [1, 1]} : vector<8x512xf32> to vector<8x128xf32>
    %607 = arith.negf %606 : vector<8x128xf32>
    %608 = math.exp %607 : vector<8x128xf32>
    %cst_253 = arith.constant 1.000000e+00 : f32
    %609 = vector.broadcast %cst_253 : f32 to vector<8x128xf32>
    %610 = arith.addf %609, %608 : vector<8x128xf32>
    %611 = arith.divf %609, %610 : vector<8x128xf32>
    %612 = vector.extract_strided_slice %605 {offsets = [0, 128], sizes = [8, 128], strides = [1, 1]} : vector<8x512xf32> to vector<8x128xf32>
    %613 = arith.negf %612 : vector<8x128xf32>
    %614 = math.exp %613 : vector<8x128xf32>
    %cst_254 = arith.constant 1.000000e+00 : f32
    %615 = vector.broadcast %cst_254 : f32 to vector<8x128xf32>
    %616 = arith.addf %615, %614 : vector<8x128xf32>
    %617 = arith.divf %615, %616 : vector<8x128xf32>
    %618 = vector.extract_strided_slice %605 {offsets = [0, 256], sizes = [8, 128], strides = [1, 1]} : vector<8x512xf32> to vector<8x128xf32>
    %619 = math.tanh %618 : vector<8x128xf32>
    %620 = vector.extract_strided_slice %605 {offsets = [0, 384], sizes = [8, 128], strides = [1, 1]} : vector<8x512xf32> to vector<8x128xf32>
    %621 = arith.negf %620 : vector<8x128xf32>
    %622 = math.exp %621 : vector<8x128xf32>
    %cst_255 = arith.constant 1.000000e+00 : f32
    %623 = vector.broadcast %cst_255 : f32 to vector<8x128xf32>
    %624 = arith.addf %623, %622 : vector<8x128xf32>
    %625 = arith.divf %623, %624 : vector<8x128xf32>
    %626 = arith.mulf %617, %601 : vector<8x128xf32>
    %627 = arith.mulf %611, %619 : vector<8x128xf32>
    %628 = arith.addf %626, %627 : vector<8x128xf32>
    %629 = math.tanh %628 : vector<8x128xf32>
    %630 = arith.mulf %625, %629 : vector<8x128xf32>
    %c6_i32_256 = arith.constant 6 : i32
    %631 = vector.broadcast %c6_i32_256 : i32 to vector<8x1xi32>
    %632 = arith.cmpi sgt, %0, %631 : vector<8x1xi32>
    %633 = vector.shape_cast %632 : vector<8x1xi1> to vector<8x1xi1>
    %634 = vector.broadcast %633 : vector<8x1xi1> to vector<8x128xi1>
    %635 = arith.select %634, %630, %600 : vector<8x128xi1>, vector<8x128xf32>
    %c0_257 = arith.constant 0 : index
    %c0_258 = arith.constant 0 : index
    %636 = vector.load %arg20[%c0_257, %c0_258] : memref<8x128xf32, #tpu.memory_space<vmem>>, vector<8x128xf32>
    tpu.vector_store %arg20[%c0_257, %c0_258], %635 {strides = array<i32>} : memref<8x128xf32, #tpu.memory_space<vmem>>, vector<8x128xf32>,
    %637 = vector.shape_cast %632 : vector<8x1xi1> to vector<8x1xi1>
    %638 = vector.broadcast %637 : vector<8x1xi1> to vector<8x128xi1>
    %639 = arith.select %638, %628, %601 : vector<8x128xi1>, vector<8x128xf32>
    %c0_259 = arith.constant 0 : index
    %c0_260 = arith.constant 0 : index
    %640 = vector.load %arg21[%c0_259, %c0_260] : memref<8x128xf32, #tpu.memory_space<vmem>>, vector<8x128xf32>
    tpu.vector_store %arg21[%c0_259, %c0_260], %639 {strides = array<i32>} : memref<8x128xf32, #tpu.memory_space<vmem>>, vector<8x128xf32>,
    %641 = arith.extui %632 : vector<8x1xi1> to vector<8x1xi32>
    %642 = arith.sitofp %641 : vector<8x1xi32> to vector<8x1xf32>
    %643 = vector.broadcast %642 : vector<8x1xf32> to vector<8x128xf32>
    %644 = arith.mulf %635, %643 : vector<8x128xf32>
    %c6_261 = arith.constant 6 : index
    %c0_262 = arith.constant 0 : index
    %c0_263 = arith.constant 0 : index
    %645 = vector.load %arg18[%c6_261, %c0_262, %c0_263] : memref<8x8x128xf32, #tpu.memory_space<vmem>>, vector<1x8x128xf32>
    %646 = vector.shape_cast %645 : vector<1x8x128xf32> to vector<8x128xf32>
    %647 = vector.shape_cast %644 : vector<8x128xf32> to vector<1x8x128xf32>
    tpu.vector_store %arg18[%c6_261, %c0_262, %c0_263], %647 {strides = array<i32>} : memref<8x8x128xf32, #tpu.memory_space<vmem>>, vector<1x8x128xf32>,
    %c0_264 = arith.constant 0 : index
    %c0_265 = arith.constant 0 : index
    %648 = vector.load %arg22[%c0_264, %c0_265] : memref<8x128xf32, #tpu.memory_space<vmem>>, vector<8x128xf32>
    %c0_266 = arith.constant 0 : index
    %c0_267 = arith.constant 0 : index
    %649 = vector.load %arg23[%c0_266, %c0_267] : memref<8x128xf32, #tpu.memory_space<vmem>>, vector<8x128xf32>
    %c1_268 = arith.constant 1 : index
    %c0_269 = arith.constant 0 : index
    %c0_270 = arith.constant 0 : index
    %650 = vector.load %arg17[%c1_268, %c0_269, %c0_270] : memref<8x8x512xf32, #tpu.memory_space<vmem>>, vector<1x8x512xf32>
    %651 = vector.shape_cast %650 : vector<1x8x512xf32> to vector<8x512xf32>
    %cst_271 = arith.constant dense<0.000000e+00> : vector<8x512xf32>
    %652 = tpu.matmul %648, %18, %cst_271 {dimension_numbers = #tpu.dot_dimension_numbers<[1], [0], [0], [1], [0, 0, 1, 1], [], []>} : vector<8x128xf32>, vector<128x512xf32>, vector<8x512xf32> -> vector<8x512xf32>
    %653 = arith.addf %651, %652 : vector<8x512xf32>
    %654 = vector.extract_strided_slice %653 {offsets = [0, 0], sizes = [8, 128], strides = [1, 1]} : vector<8x512xf32> to vector<8x128xf32>
    %655 = arith.negf %654 : vector<8x128xf32>
    %656 = math.exp %655 : vector<8x128xf32>
    %cst_272 = arith.constant 1.000000e+00 : f32
    %657 = vector.broadcast %cst_272 : f32 to vector<8x128xf32>
    %658 = arith.addf %657, %656 : vector<8x128xf32>
    %659 = arith.divf %657, %658 : vector<8x128xf32>
    %660 = vector.extract_strided_slice %653 {offsets = [0, 128], sizes = [8, 128], strides = [1, 1]} : vector<8x512xf32> to vector<8x128xf32>
    %661 = arith.negf %660 : vector<8x128xf32>
    %662 = math.exp %661 : vector<8x128xf32>
    %cst_273 = arith.constant 1.000000e+00 : f32
    %663 = vector.broadcast %cst_273 : f32 to vector<8x128xf32>
    %664 = arith.addf %663, %662 : vector<8x128xf32>
    %665 = arith.divf %663, %664 : vector<8x128xf32>
    %666 = vector.extract_strided_slice %653 {offsets = [0, 256], sizes = [8, 128], strides = [1, 1]} : vector<8x512xf32> to vector<8x128xf32>
    %667 = math.tanh %666 : vector<8x128xf32>
    %668 = vector.extract_strided_slice %653 {offsets = [0, 384], sizes = [8, 128], strides = [1, 1]} : vector<8x512xf32> to vector<8x128xf32>
    %669 = arith.negf %668 : vector<8x128xf32>
    %670 = math.exp %669 : vector<8x128xf32>
    %cst_274 = arith.constant 1.000000e+00 : f32
    %671 = vector.broadcast %cst_274 : f32 to vector<8x128xf32>
    %672 = arith.addf %671, %670 : vector<8x128xf32>
    %673 = arith.divf %671, %672 : vector<8x128xf32>
    %674 = arith.mulf %665, %649 : vector<8x128xf32>
    %675 = arith.mulf %659, %667 : vector<8x128xf32>
    %676 = arith.addf %674, %675 : vector<8x128xf32>
    %677 = math.tanh %676 : vector<8x128xf32>
    %678 = arith.mulf %673, %677 : vector<8x128xf32>
    %c1_i32_275 = arith.constant 1 : i32
    %679 = vector.broadcast %c1_i32_275 : i32 to vector<8x1xi32>
    %680 = arith.cmpi sgt, %0, %679 : vector<8x1xi32>
    %681 = vector.shape_cast %680 : vector<8x1xi1> to vector<8x1xi1>
    %682 = vector.broadcast %681 : vector<8x1xi1> to vector<8x128xi1>
    %683 = arith.select %682, %678, %648 : vector<8x128xi1>, vector<8x128xf32>
    %c0_276 = arith.constant 0 : index
    %c0_277 = arith.constant 0 : index
    %684 = vector.load %arg22[%c0_276, %c0_277] : memref<8x128xf32, #tpu.memory_space<vmem>>, vector<8x128xf32>
    tpu.vector_store %arg22[%c0_276, %c0_277], %683 {strides = array<i32>} : memref<8x128xf32, #tpu.memory_space<vmem>>, vector<8x128xf32>,
    %685 = vector.shape_cast %680 : vector<8x1xi1> to vector<8x1xi1>
    %686 = vector.broadcast %685 : vector<8x1xi1> to vector<8x128xi1>
    %687 = arith.select %686, %676, %649 : vector<8x128xi1>, vector<8x128xf32>
    %c0_278 = arith.constant 0 : index
    %c0_279 = arith.constant 0 : index
    %688 = vector.load %arg23[%c0_278, %c0_279] : memref<8x128xf32, #tpu.memory_space<vmem>>, vector<8x128xf32>
    tpu.vector_store %arg23[%c0_278, %c0_279], %687 {strides = array<i32>} : memref<8x128xf32, #tpu.memory_space<vmem>>, vector<8x128xf32>,
    %689 = arith.extui %680 : vector<8x1xi1> to vector<8x1xi32>
    %690 = arith.sitofp %689 : vector<8x1xi32> to vector<8x1xf32>
    %691 = vector.broadcast %690 : vector<8x1xf32> to vector<8x128xf32>
    %692 = arith.mulf %683, %691 : vector<8x128xf32>
    %c1_280 = arith.constant 1 : index
    %c0_281 = arith.constant 0 : index
    %c0_282 = arith.constant 0 : index
    %693 = vector.load %arg19[%c1_280, %c0_281, %c0_282] : memref<8x8x128xf32, #tpu.memory_space<vmem>>, vector<1x8x128xf32>
    %694 = vector.shape_cast %693 : vector<1x8x128xf32> to vector<8x128xf32>
    %695 = vector.shape_cast %692 : vector<8x128xf32> to vector<1x8x128xf32>
    tpu.vector_store %arg19[%c1_280, %c0_281, %c0_282], %695 {strides = array<i32>} : memref<8x8x128xf32, #tpu.memory_space<vmem>>, vector<1x8x128xf32>,
    %c0_283 = arith.constant 0 : index
    %c0_284 = arith.constant 0 : index
    %696 = vector.load %arg20[%c0_283, %c0_284] : memref<8x128xf32, #tpu.memory_space<vmem>>, vector<8x128xf32>
    %c0_285 = arith.constant 0 : index
    %c0_286 = arith.constant 0 : index
    %697 = vector.load %arg21[%c0_285, %c0_286] : memref<8x128xf32, #tpu.memory_space<vmem>>, vector<8x128xf32>
    %c7_287 = arith.constant 7 : index
    %c0_288 = arith.constant 0 : index
    %c0_289 = arith.constant 0 : index
    %698 = vector.load %arg16[%c7_287, %c0_288, %c0_289] : memref<8x8x512xf32, #tpu.memory_space<vmem>>, vector<1x8x512xf32>
    %699 = vector.shape_cast %698 : vector<1x8x512xf32> to vector<8x512xf32>
    %cst_290 = arith.constant dense<0.000000e+00> : vector<8x512xf32>
    %700 = tpu.matmul %696, %17, %cst_290 {dimension_numbers = #tpu.dot_dimension_numbers<[1], [0], [0], [1], [0, 0, 1, 1], [], []>} : vector<8x128xf32>, vector<128x512xf32>, vector<8x512xf32> -> vector<8x512xf32>
    %701 = arith.addf %699, %700 : vector<8x512xf32>
    %702 = vector.extract_strided_slice %701 {offsets = [0, 0], sizes = [8, 128], strides = [1, 1]} : vector<8x512xf32> to vector<8x128xf32>
    %703 = arith.negf %702 : vector<8x128xf32>
    %704 = math.exp %703 : vector<8x128xf32>
    %cst_291 = arith.constant 1.000000e+00 : f32
    %705 = vector.broadcast %cst_291 : f32 to vector<8x128xf32>
    %706 = arith.addf %705, %704 : vector<8x128xf32>
    %707 = arith.divf %705, %706 : vector<8x128xf32>
    %708 = vector.extract_strided_slice %701 {offsets = [0, 128], sizes = [8, 128], strides = [1, 1]} : vector<8x512xf32> to vector<8x128xf32>
    %709 = arith.negf %708 : vector<8x128xf32>
    %710 = math.exp %709 : vector<8x128xf32>
    %cst_292 = arith.constant 1.000000e+00 : f32
    %711 = vector.broadcast %cst_292 : f32 to vector<8x128xf32>
    %712 = arith.addf %711, %710 : vector<8x128xf32>
    %713 = arith.divf %711, %712 : vector<8x128xf32>
    %714 = vector.extract_strided_slice %701 {offsets = [0, 256], sizes = [8, 128], strides = [1, 1]} : vector<8x512xf32> to vector<8x128xf32>
    %715 = math.tanh %714 : vector<8x128xf32>
    %716 = vector.extract_strided_slice %701 {offsets = [0, 384], sizes = [8, 128], strides = [1, 1]} : vector<8x512xf32> to vector<8x128xf32>
    %717 = arith.negf %716 : vector<8x128xf32>
    %718 = math.exp %717 : vector<8x128xf32>
    %cst_293 = arith.constant 1.000000e+00 : f32
    %719 = vector.broadcast %cst_293 : f32 to vector<8x128xf32>
    %720 = arith.addf %719, %718 : vector<8x128xf32>
    %721 = arith.divf %719, %720 : vector<8x128xf32>
    %722 = arith.mulf %713, %697 : vector<8x128xf32>
    %723 = arith.mulf %707, %715 : vector<8x128xf32>
    %724 = arith.addf %722, %723 : vector<8x128xf32>
    %725 = math.tanh %724 : vector<8x128xf32>
    %726 = arith.mulf %721, %725 : vector<8x128xf32>
    %c7_i32_294 = arith.constant 7 : i32
    %727 = vector.broadcast %c7_i32_294 : i32 to vector<8x1xi32>
    %728 = arith.cmpi sgt, %0, %727 : vector<8x1xi32>
    %729 = vector.shape_cast %728 : vector<8x1xi1> to vector<8x1xi1>
    %730 = vector.broadcast %729 : vector<8x1xi1> to vector<8x128xi1>
    %731 = arith.select %730, %726, %696 : vector<8x128xi1>, vector<8x128xf32>
    %c0_295 = arith.constant 0 : index
    %c0_296 = arith.constant 0 : index
    %732 = vector.load %arg20[%c0_295, %c0_296] : memref<8x128xf32, #tpu.memory_space<vmem>>, vector<8x128xf32>
    tpu.vector_store %arg20[%c0_295, %c0_296], %731 {strides = array<i32>} : memref<8x128xf32, #tpu.memory_space<vmem>>, vector<8x128xf32>,
    %733 = vector.shape_cast %728 : vector<8x1xi1> to vector<8x1xi1>
    %734 = vector.broadcast %733 : vector<8x1xi1> to vector<8x128xi1>
    %735 = arith.select %734, %724, %697 : vector<8x128xi1>, vector<8x128xf32>
    %c0_297 = arith.constant 0 : index
    %c0_298 = arith.constant 0 : index
    %736 = vector.load %arg21[%c0_297, %c0_298] : memref<8x128xf32, #tpu.memory_space<vmem>>, vector<8x128xf32>
    tpu.vector_store %arg21[%c0_297, %c0_298], %735 {strides = array<i32>} : memref<8x128xf32, #tpu.memory_space<vmem>>, vector<8x128xf32>,
    %737 = arith.extui %728 : vector<8x1xi1> to vector<8x1xi32>
    %738 = arith.sitofp %737 : vector<8x1xi32> to vector<8x1xf32>
    %739 = vector.broadcast %738 : vector<8x1xf32> to vector<8x128xf32>
    %740 = arith.mulf %731, %739 : vector<8x128xf32>
    %c7_299 = arith.constant 7 : index
    %c0_300 = arith.constant 0 : index
    %c0_301 = arith.constant 0 : index
    %741 = vector.load %arg18[%c7_299, %c0_300, %c0_301] : memref<8x8x128xf32, #tpu.memory_space<vmem>>, vector<1x8x128xf32>
    %742 = vector.shape_cast %741 : vector<1x8x128xf32> to vector<8x128xf32>
    %743 = vector.shape_cast %740 : vector<8x128xf32> to vector<1x8x128xf32>
    tpu.vector_store %arg18[%c7_299, %c0_300, %c0_301], %743 {strides = array<i32>} : memref<8x8x128xf32, #tpu.memory_space<vmem>>, vector<1x8x128xf32>,
    %c0_302 = arith.constant 0 : index
    %c0_303 = arith.constant 0 : index
    %744 = vector.load %arg22[%c0_302, %c0_303] : memref<8x128xf32, #tpu.memory_space<vmem>>, vector<8x128xf32>
    %c0_304 = arith.constant 0 : index
    %c0_305 = arith.constant 0 : index
    %745 = vector.load %arg23[%c0_304, %c0_305] : memref<8x128xf32, #tpu.memory_space<vmem>>, vector<8x128xf32>
    %c0_306 = arith.constant 0 : index
    %c0_307 = arith.constant 0 : index
    %c0_308 = arith.constant 0 : index
    %746 = vector.load %arg17[%c0_306, %c0_307, %c0_308] : memref<8x8x512xf32, #tpu.memory_space<vmem>>, vector<1x8x512xf32>
    %747 = vector.shape_cast %746 : vector<1x8x512xf32> to vector<8x512xf32>
    %cst_309 = arith.constant dense<0.000000e+00> : vector<8x512xf32>
    %748 = tpu.matmul %744, %18, %cst_309 {dimension_numbers = #tpu.dot_dimension_numbers<[1], [0], [0], [1], [0, 0, 1, 1], [], []>} : vector<8x128xf32>, vector<128x512xf32>, vector<8x512xf32> -> vector<8x512xf32>
    %749 = arith.addf %747, %748 : vector<8x512xf32>
    %750 = vector.extract_strided_slice %749 {offsets = [0, 0], sizes = [8, 128], strides = [1, 1]} : vector<8x512xf32> to vector<8x128xf32>
    %751 = arith.negf %750 : vector<8x128xf32>
    %752 = math.exp %751 : vector<8x128xf32>
    %cst_310 = arith.constant 1.000000e+00 : f32
    %753 = vector.broadcast %cst_310 : f32 to vector<8x128xf32>
    %754 = arith.addf %753, %752 : vector<8x128xf32>
    %755 = arith.divf %753, %754 : vector<8x128xf32>
    %756 = vector.extract_strided_slice %749 {offsets = [0, 128], sizes = [8, 128], strides = [1, 1]} : vector<8x512xf32> to vector<8x128xf32>
    %757 = arith.negf %756 : vector<8x128xf32>
    %758 = math.exp %757 : vector<8x128xf32>
    %cst_311 = arith.constant 1.000000e+00 : f32
    %759 = vector.broadcast %cst_311 : f32 to vector<8x128xf32>
    %760 = arith.addf %759, %758 : vector<8x128xf32>
    %761 = arith.divf %759, %760 : vector<8x128xf32>
    %762 = vector.extract_strided_slice %749 {offsets = [0, 256], sizes = [8, 128], strides = [1, 1]} : vector<8x512xf32> to vector<8x128xf32>
    %763 = math.tanh %762 : vector<8x128xf32>
    %764 = vector.extract_strided_slice %749 {offsets = [0, 384], sizes = [8, 128], strides = [1, 1]} : vector<8x512xf32> to vector<8x128xf32>
    %765 = arith.negf %764 : vector<8x128xf32>
    %766 = math.exp %765 : vector<8x128xf32>
    %cst_312 = arith.constant 1.000000e+00 : f32
    %767 = vector.broadcast %cst_312 : f32 to vector<8x128xf32>
    %768 = arith.addf %767, %766 : vector<8x128xf32>
    %769 = arith.divf %767, %768 : vector<8x128xf32>
    %770 = arith.mulf %761, %745 : vector<8x128xf32>
    %771 = arith.mulf %755, %763 : vector<8x128xf32>
    %772 = arith.addf %770, %771 : vector<8x128xf32>
    %773 = math.tanh %772 : vector<8x128xf32>
    %774 = arith.mulf %769, %773 : vector<8x128xf32>
    %c0_i32_313 = arith.constant 0 : i32
    %775 = vector.broadcast %c0_i32_313 : i32 to vector<8x1xi32>
    %776 = arith.cmpi sgt, %0, %775 : vector<8x1xi32>
    %777 = vector.shape_cast %776 : vector<8x1xi1> to vector<8x1xi1>
    %778 = vector.broadcast %777 : vector<8x1xi1> to vector<8x128xi1>
    %779 = arith.select %778, %774, %744 : vector<8x128xi1>, vector<8x128xf32>
    %c0_314 = arith.constant 0 : index
    %c0_315 = arith.constant 0 : index
    %780 = vector.load %arg22[%c0_314, %c0_315] : memref<8x128xf32, #tpu.memory_space<vmem>>, vector<8x128xf32>
    tpu.vector_store %arg22[%c0_314, %c0_315], %779 {strides = array<i32>} : memref<8x128xf32, #tpu.memory_space<vmem>>, vector<8x128xf32>,
    %781 = vector.shape_cast %776 : vector<8x1xi1> to vector<8x1xi1>
    %782 = vector.broadcast %781 : vector<8x1xi1> to vector<8x128xi1>
    %783 = arith.select %782, %772, %745 : vector<8x128xi1>, vector<8x128xf32>
    %c0_316 = arith.constant 0 : index
    %c0_317 = arith.constant 0 : index
    %784 = vector.load %arg23[%c0_316, %c0_317] : memref<8x128xf32, #tpu.memory_space<vmem>>, vector<8x128xf32>
    tpu.vector_store %arg23[%c0_316, %c0_317], %783 {strides = array<i32>} : memref<8x128xf32, #tpu.memory_space<vmem>>, vector<8x128xf32>,
    %785 = arith.extui %776 : vector<8x1xi1> to vector<8x1xi32>
    %786 = arith.sitofp %785 : vector<8x1xi32> to vector<8x1xf32>
    %787 = vector.broadcast %786 : vector<8x1xf32> to vector<8x128xf32>
    %788 = arith.mulf %779, %787 : vector<8x128xf32>
    %c0_318 = arith.constant 0 : index
    %c0_319 = arith.constant 0 : index
    %c0_320 = arith.constant 0 : index
    %789 = vector.load %arg19[%c0_318, %c0_319, %c0_320] : memref<8x8x128xf32, #tpu.memory_space<vmem>>, vector<1x8x128xf32>
    %790 = vector.shape_cast %789 : vector<1x8x128xf32> to vector<8x128xf32>
    %791 = vector.shape_cast %788 : vector<8x128xf32> to vector<1x8x128xf32>
    tpu.vector_store %arg19[%c0_318, %c0_319, %c0_320], %791 {strides = array<i32>} : memref<8x8x128xf32, #tpu.memory_space<vmem>>, vector<1x8x128xf32>,
    %c0_321 = arith.constant 0 : index
    %c0_322 = arith.constant 0 : index
    %c0_323 = arith.constant 0 : index
    %792 = vector.load %arg18[%c0_321, %c0_322, %c0_323] : memref<8x8x128xf32, #tpu.memory_space<vmem>>, vector<8x8x128xf32>
    %793 = vector.shape_cast %792 : vector<8x8x128xf32> to vector<64x128xf32>
    %c0_324 = arith.constant 0 : index
    %c0_325 = arith.constant 0 : index
    %c0_326 = arith.constant 0 : index
    %794 = vector.load %arg19[%c0_324, %c0_325, %c0_326] : memref<8x8x128xf32, #tpu.memory_space<vmem>>, vector<8x8x128xf32>
    %795 = vector.shape_cast %794 : vector<8x8x128xf32> to vector<64x128xf32>
    %c0_327 = arith.constant 0 : index
    %c0_328 = arith.constant 0 : index
    %796 = vector.load %arg8[%c0_327, %c0_328] : memref<128x128xf32, #tpu.memory_space<vmem>>, vector<128x128xf32>
    %cst_329 = arith.constant dense<0.000000e+00> : vector<64x128xf32>
    %797 = tpu.matmul %793, %796, %cst_329 {dimension_numbers = #tpu.dot_dimension_numbers<[1], [0], [0], [1], [0, 0, 1, 1], [], []>} : vector<64x128xf32>, vector<128x128xf32>, vector<64x128xf32> -> vector<64x128xf32>
    %c0_330 = arith.constant 0 : index
    %c0_331 = arith.constant 0 : index
    %798 = vector.load %arg9[%c0_330, %c0_331] : memref<128x128xf32, #tpu.memory_space<vmem>>, vector<128x128xf32>
    %cst_332 = arith.constant dense<0.000000e+00> : vector<64x128xf32>
    %799 = tpu.matmul %795, %798, %cst_332 {dimension_numbers = #tpu.dot_dimension_numbers<[1], [0], [0], [1], [0, 0, 1, 1], [], []>} : vector<64x128xf32>, vector<128x128xf32>, vector<64x128xf32> -> vector<64x128xf32>
    %800 = arith.addf %797, %799 : vector<64x128xf32>
    %c0_333 = arith.constant 0 : index
    %c0_334 = arith.constant 0 : index
    %801 = vector.load %arg10[%c0_333, %c0_334] : memref<1x128xf32, #tpu.memory_space<vmem>>, vector<1x128xf32>
    %802 = vector.broadcast %801 : vector<1x128xf32> to vector<64x128xf32>
    %803 = arith.addf %800, %802 : vector<64x128xf32>
    %804 = vector.shape_cast %803 : vector<64x128xf32> to vector<8x8x128xf32>
    %c0_335 = arith.constant 0 : index
    %c0_336 = arith.constant 0 : index
    %c0_337 = arith.constant 0 : index
    %805 = vector.load %arg14[%c0_335, %c0_336, %c0_337] : memref<8x8x128xf32, #tpu.memory_space<vmem>>, vector<8x8x128xf32>
    tpu.vector_store %arg14[%c0_335, %c0_336, %c0_337], %804 {strides = array<i32>} : memref<8x8x128xf32, #tpu.memory_space<vmem>>, vector<8x8x128xf32>,
    %cst_338 = arith.constant dense<0xFF800000> : vector<8x8xf32>
    %806 = vector.multi_reduction <maximumf>, %804, %cst_338 [2] : vector<8x8x128xf32> to vector<8x8xf32>
    %807 = vector.shape_cast %806 : vector<8x8xf32> to vector<8x8x1xf32>
    %808 = vector.broadcast %807 : vector<8x8x1xf32> to vector<8x8x128xf32>
    %809 = arith.subf %804, %808 : vector<8x8x128xf32>
    %810 = math.exp %809 : vector<8x8x128xf32>
    %c0_339 = arith.constant 0 : index
    %c0_340 = arith.constant 0 : index
    %811 = vector.load %arg13[%c0_339, %c0_340] : memref<128x128xf32, #tpu.memory_space<vmem>>, vector<128x128xf32>
    %c0_341 = arith.constant 0 : index
    %c0_342 = arith.constant 0 : index
    %812 = vector.load %arg12[%c0_341, %c0_342] : memref<1x128xf32, #tpu.memory_space<vmem>>, vector<1x128xf32>
    %813 = math.exp %812 : vector<1x128xf32>
    %c0_343 = arith.constant 0 : index
    %c0_344 = arith.constant 0 : index
    %814 = vector.load %arg11[%c0_343, %c0_344] : memref<1x128xf32, #tpu.memory_space<vmem>>, vector<1x128xf32>
    %815 = vector.extract_strided_slice %804 {offsets = [0, 0, 0], sizes = [1, 8, 128], strides = [1, 1, 1]} : vector<8x8x128xf32> to vector<1x8x128xf32>
    %816 = vector.shape_cast %815 : vector<1x8x128xf32> to vector<8x128xf32>
    %817 = vector.broadcast %814 : vector<1x128xf32> to vector<8x128xf32>
    %818 = arith.addf %817, %816 : vector<8x128xf32>
    %cst_345 = arith.constant dense<0xFF800000> : vector<8xf32>
    %819 = vector.multi_reduction <maximumf>, %818, %cst_345 [1] : vector<8x128xf32> to vector<8xf32>
    %820 = vector.shape_cast %819 : vector<8xf32> to vector<8x1xf32>
    %821 = vector.broadcast %820 : vector<8x1xf32> to vector<8x128xf32>
    %822 = arith.subf %818, %821 : vector<8x128xf32>
    %823 = math.exp %822 : vector<8x128xf32>
    %c1_i32_346 = arith.constant 1 : i32
    %824 = vector.broadcast %c1_i32_346 : i32 to vector<8x1xi32>
    %825 = arith.cmpi sgt, %0, %824 : vector<8x1xi32>
    %cst_347 = arith.constant dense<0.000000e+00> : vector<8x128xf32>
    %826 = tpu.matmul %823, %811, %cst_347 {dimension_numbers = #tpu.dot_dimension_numbers<[1], [0], [0], [1], [0, 0, 1, 1], [], []>} : vector<8x128xf32>, vector<128x128xf32>, vector<8x128xf32> -> vector<8x128xf32>
    %827 = vector.extract_strided_slice %810 {offsets = [1, 0, 0], sizes = [1, 8, 128], strides = [1, 1, 1]} : vector<8x8x128xf32> to vector<1x8x128xf32>
    %828 = vector.shape_cast %827 : vector<1x8x128xf32> to vector<8x128xf32>
    %829 = arith.mulf %826, %828 : vector<8x128xf32>
    %cst_348 = arith.constant dense<0xFF800000> : vector<8xf32>
    %830 = vector.multi_reduction <maximumf>, %829, %cst_348 [1] : vector<8x128xf32> to vector<8xf32>
    %831 = vector.shape_cast %830 : vector<8xf32> to vector<8x1xf32>
    %832 = tpu.reciprocal %831 {approx = true} : vector<8x1xf32> -> vector<8x1xf32>
    %833 = vector.broadcast %832 : vector<8x1xf32> to vector<8x128xf32>
    %834 = arith.mulf %829, %833 : vector<8x128xf32>
    %835 = vector.extract_strided_slice %807 {offsets = [1, 0, 0], sizes = [1, 8, 1], strides = [1, 1, 1]} : vector<8x8x1xf32> to vector<1x8x1xf32>
    %836 = vector.shape_cast %835 : vector<1x8x1xf32> to vector<8x1xf32>
    %837 = arith.addf %820, %836 : vector<8x1xf32>
    %838 = math.log %832 : vector<8x1xf32>
    %839 = arith.subf %837, %838 : vector<8x1xf32>
    %840 = vector.shape_cast %825 : vector<8x1xi1> to vector<8x1xi1>
    %841 = vector.broadcast %840 : vector<8x1xi1> to vector<8x128xi1>
    %842 = arith.select %841, %834, %823 : vector<8x128xi1>, vector<8x128xf32>
    %843 = arith.select %825, %839, %820 : vector<8x1xi1>, vector<8x1xf32>
    %c2_i32_349 = arith.constant 2 : i32
    %844 = vector.broadcast %c2_i32_349 : i32 to vector<8x1xi32>
    %845 = arith.cmpi sgt, %0, %844 : vector<8x1xi32>
    %cst_350 = arith.constant dense<0.000000e+00> : vector<8x128xf32>
    %846 = tpu.matmul %842, %811, %cst_350 {dimension_numbers = #tpu.dot_dimension_numbers<[1], [0], [0], [1], [0, 0, 1, 1], [], []>} : vector<8x128xf32>, vector<128x128xf32>, vector<8x128xf32> -> vector<8x128xf32>
    %847 = vector.extract_strided_slice %810 {offsets = [2, 0, 0], sizes = [1, 8, 128], strides = [1, 1, 1]} : vector<8x8x128xf32> to vector<1x8x128xf32>
    %848 = vector.shape_cast %847 : vector<1x8x128xf32> to vector<8x128xf32>
    %849 = arith.mulf %846, %848 : vector<8x128xf32>
    %cst_351 = arith.constant dense<0xFF800000> : vector<8xf32>
    %850 = vector.multi_reduction <maximumf>, %849, %cst_351 [1] : vector<8x128xf32> to vector<8xf32>
    %851 = vector.shape_cast %850 : vector<8xf32> to vector<8x1xf32>
    %852 = tpu.reciprocal %851 {approx = true} : vector<8x1xf32> -> vector<8x1xf32>
    %853 = vector.broadcast %852 : vector<8x1xf32> to vector<8x128xf32>
    %854 = arith.mulf %849, %853 : vector<8x128xf32>
    %855 = vector.extract_strided_slice %807 {offsets = [2, 0, 0], sizes = [1, 8, 1], strides = [1, 1, 1]} : vector<8x8x1xf32> to vector<1x8x1xf32>
    %856 = vector.shape_cast %855 : vector<1x8x1xf32> to vector<8x1xf32>
    %857 = arith.addf %843, %856 : vector<8x1xf32>
    %858 = math.log %852 : vector<8x1xf32>
    %859 = arith.subf %857, %858 : vector<8x1xf32>
    %860 = vector.shape_cast %845 : vector<8x1xi1> to vector<8x1xi1>
    %861 = vector.broadcast %860 : vector<8x1xi1> to vector<8x128xi1>
    %862 = arith.select %861, %854, %842 : vector<8x128xi1>, vector<8x128xf32>
    %863 = arith.select %845, %859, %843 : vector<8x1xi1>, vector<8x1xf32>
    %c3_i32_352 = arith.constant 3 : i32
    %864 = vector.broadcast %c3_i32_352 : i32 to vector<8x1xi32>
    %865 = arith.cmpi sgt, %0, %864 : vector<8x1xi32>
    %cst_353 = arith.constant dense<0.000000e+00> : vector<8x128xf32>
    %866 = tpu.matmul %862, %811, %cst_353 {dimension_numbers = #tpu.dot_dimension_numbers<[1], [0], [0], [1], [0, 0, 1, 1], [], []>} : vector<8x128xf32>, vector<128x128xf32>, vector<8x128xf32> -> vector<8x128xf32>
    %867 = vector.extract_strided_slice %810 {offsets = [3, 0, 0], sizes = [1, 8, 128], strides = [1, 1, 1]} : vector<8x8x128xf32> to vector<1x8x128xf32>
    %868 = vector.shape_cast %867 : vector<1x8x128xf32> to vector<8x128xf32>
    %869 = arith.mulf %866, %868 : vector<8x128xf32>
    %cst_354 = arith.constant dense<0xFF800000> : vector<8xf32>
    %870 = vector.multi_reduction <maximumf>, %869, %cst_354 [1] : vector<8x128xf32> to vector<8xf32>
    %871 = vector.shape_cast %870 : vector<8xf32> to vector<8x1xf32>
    %872 = tpu.reciprocal %871 {approx = true} : vector<8x1xf32> -> vector<8x1xf32>
    %873 = vector.broadcast %872 : vector<8x1xf32> to vector<8x128xf32>
    %874 = arith.mulf %869, %873 : vector<8x128xf32>
    %875 = vector.extract_strided_slice %807 {offsets = [3, 0, 0], sizes = [1, 8, 1], strides = [1, 1, 1]} : vector<8x8x1xf32> to vector<1x8x1xf32>
    %876 = vector.shape_cast %875 : vector<1x8x1xf32> to vector<8x1xf32>
    %877 = arith.addf %863, %876 : vector<8x1xf32>
    %878 = math.log %872 : vector<8x1xf32>
    %879 = arith.subf %877, %878 : vector<8x1xf32>
    %880 = vector.shape_cast %865 : vector<8x1xi1> to vector<8x1xi1>
    %881 = vector.broadcast %880 : vector<8x1xi1> to vector<8x128xi1>
    %882 = arith.select %881, %874, %862 : vector<8x128xi1>, vector<8x128xf32>
    %883 = arith.select %865, %879, %863 : vector<8x1xi1>, vector<8x1xf32>
    %c4_i32_355 = arith.constant 4 : i32
    %884 = vector.broadcast %c4_i32_355 : i32 to vector<8x1xi32>
    %885 = arith.cmpi sgt, %0, %884 : vector<8x1xi32>
    %cst_356 = arith.constant dense<0.000000e+00> : vector<8x128xf32>
    %886 = tpu.matmul %882, %811, %cst_356 {dimension_numbers = #tpu.dot_dimension_numbers<[1], [0], [0], [1], [0, 0, 1, 1], [], []>} : vector<8x128xf32>, vector<128x128xf32>, vector<8x128xf32> -> vector<8x128xf32>
    %887 = vector.extract_strided_slice %810 {offsets = [4, 0, 0], sizes = [1, 8, 128], strides = [1, 1, 1]} : vector<8x8x128xf32> to vector<1x8x128xf32>
    %888 = vector.shape_cast %887 : vector<1x8x128xf32> to vector<8x128xf32>
    %889 = arith.mulf %886, %888 : vector<8x128xf32>
    %cst_357 = arith.constant dense<0xFF800000> : vector<8xf32>
    %890 = vector.multi_reduction <maximumf>, %889, %cst_357 [1] : vector<8x128xf32> to vector<8xf32>
    %891 = vector.shape_cast %890 : vector<8xf32> to vector<8x1xf32>
    %892 = tpu.reciprocal %891 {approx = true} : vector<8x1xf32> -> vector<8x1xf32>
    %893 = vector.broadcast %892 : vector<8x1xf32> to vector<8x128xf32>
    %894 = arith.mulf %889, %893 : vector<8x128xf32>
    %895 = vector.extract_strided_slice %807 {offsets = [4, 0, 0], sizes = [1, 8, 1], strides = [1, 1, 1]} : vector<8x8x1xf32> to vector<1x8x1xf32>
    %896 = vector.shape_cast %895 : vector<1x8x1xf32> to vector<8x1xf32>
    %897 = arith.addf %883, %896 : vector<8x1xf32>
    %898 = math.log %892 : vector<8x1xf32>
    %899 = arith.subf %897, %898 : vector<8x1xf32>
    %900 = vector.shape_cast %885 : vector<8x1xi1> to vector<8x1xi1>
    %901 = vector.broadcast %900 : vector<8x1xi1> to vector<8x128xi1>
    %902 = arith.select %901, %894, %882 : vector<8x128xi1>, vector<8x128xf32>
    %903 = arith.select %885, %899, %883 : vector<8x1xi1>, vector<8x1xf32>
    %c5_i32_358 = arith.constant 5 : i32
    %904 = vector.broadcast %c5_i32_358 : i32 to vector<8x1xi32>
    %905 = arith.cmpi sgt, %0, %904 : vector<8x1xi32>
    %cst_359 = arith.constant dense<0.000000e+00> : vector<8x128xf32>
    %906 = tpu.matmul %902, %811, %cst_359 {dimension_numbers = #tpu.dot_dimension_numbers<[1], [0], [0], [1], [0, 0, 1, 1], [], []>} : vector<8x128xf32>, vector<128x128xf32>, vector<8x128xf32> -> vector<8x128xf32>
    %907 = vector.extract_strided_slice %810 {offsets = [5, 0, 0], sizes = [1, 8, 128], strides = [1, 1, 1]} : vector<8x8x128xf32> to vector<1x8x128xf32>
    %908 = vector.shape_cast %907 : vector<1x8x128xf32> to vector<8x128xf32>
    %909 = arith.mulf %906, %908 : vector<8x128xf32>
    %cst_360 = arith.constant dense<0xFF800000> : vector<8xf32>
    %910 = vector.multi_reduction <maximumf>, %909, %cst_360 [1] : vector<8x128xf32> to vector<8xf32>
    %911 = vector.shape_cast %910 : vector<8xf32> to vector<8x1xf32>
    %912 = tpu.reciprocal %911 {approx = true} : vector<8x1xf32> -> vector<8x1xf32>
    %913 = vector.broadcast %912 : vector<8x1xf32> to vector<8x128xf32>
    %914 = arith.mulf %909, %913 : vector<8x128xf32>
    %915 = vector.extract_strided_slice %807 {offsets = [5, 0, 0], sizes = [1, 8, 1], strides = [1, 1, 1]} : vector<8x8x1xf32> to vector<1x8x1xf32>
    %916 = vector.shape_cast %915 : vector<1x8x1xf32> to vector<8x1xf32>
    %917 = arith.addf %903, %916 : vector<8x1xf32>
    %918 = math.log %912 : vector<8x1xf32>
    %919 = arith.subf %917, %918 : vector<8x1xf32>
    %920 = vector.shape_cast %905 : vector<8x1xi1> to vector<8x1xi1>
    %921 = vector.broadcast %920 : vector<8x1xi1> to vector<8x128xi1>
    %922 = arith.select %921, %914, %902 : vector<8x128xi1>, vector<8x128xf32>
    %923 = arith.select %905, %919, %903 : vector<8x1xi1>, vector<8x1xf32>
    %c6_i32_361 = arith.constant 6 : i32
    %924 = vector.broadcast %c6_i32_361 : i32 to vector<8x1xi32>
    %925 = arith.cmpi sgt, %0, %924 : vector<8x1xi32>
    %cst_362 = arith.constant dense<0.000000e+00> : vector<8x128xf32>
    %926 = tpu.matmul %922, %811, %cst_362 {dimension_numbers = #tpu.dot_dimension_numbers<[1], [0], [0], [1], [0, 0, 1, 1], [], []>} : vector<8x128xf32>, vector<128x128xf32>, vector<8x128xf32> -> vector<8x128xf32>
    %927 = vector.extract_strided_slice %810 {offsets = [6, 0, 0], sizes = [1, 8, 128], strides = [1, 1, 1]} : vector<8x8x128xf32> to vector<1x8x128xf32>
    %928 = vector.shape_cast %927 : vector<1x8x128xf32> to vector<8x128xf32>
    %929 = arith.mulf %926, %928 : vector<8x128xf32>
    %cst_363 = arith.constant dense<0xFF800000> : vector<8xf32>
    %930 = vector.multi_reduction <maximumf>, %929, %cst_363 [1] : vector<8x128xf32> to vector<8xf32>
    %931 = vector.shape_cast %930 : vector<8xf32> to vector<8x1xf32>
    %932 = tpu.reciprocal %931 {approx = true} : vector<8x1xf32> -> vector<8x1xf32>
    %933 = vector.broadcast %932 : vector<8x1xf32> to vector<8x128xf32>
    %934 = arith.mulf %929, %933 : vector<8x128xf32>
    %935 = vector.extract_strided_slice %807 {offsets = [6, 0, 0], sizes = [1, 8, 1], strides = [1, 1, 1]} : vector<8x8x1xf32> to vector<1x8x1xf32>
    %936 = vector.shape_cast %935 : vector<1x8x1xf32> to vector<8x1xf32>
    %937 = arith.addf %923, %936 : vector<8x1xf32>
    %938 = math.log %932 : vector<8x1xf32>
    %939 = arith.subf %937, %938 : vector<8x1xf32>
    %940 = vector.shape_cast %925 : vector<8x1xi1> to vector<8x1xi1>
    %941 = vector.broadcast %940 : vector<8x1xi1> to vector<8x128xi1>
    %942 = arith.select %941, %934, %922 : vector<8x128xi1>, vector<8x128xf32>
    %943 = arith.select %925, %939, %923 : vector<8x1xi1>, vector<8x1xf32>
    %c7_i32_364 = arith.constant 7 : i32
    %944 = vector.broadcast %c7_i32_364 : i32 to vector<8x1xi32>
    %945 = arith.cmpi sgt, %0, %944 : vector<8x1xi32>
    %cst_365 = arith.constant dense<0.000000e+00> : vector<8x128xf32>
    %946 = tpu.matmul %942, %811, %cst_365 {dimension_numbers = #tpu.dot_dimension_numbers<[1], [0], [0], [1], [0, 0, 1, 1], [], []>} : vector<8x128xf32>, vector<128x128xf32>, vector<8x128xf32> -> vector<8x128xf32>
    %947 = vector.extract_strided_slice %810 {offsets = [7, 0, 0], sizes = [1, 8, 128], strides = [1, 1, 1]} : vector<8x8x128xf32> to vector<1x8x128xf32>
    %948 = vector.shape_cast %947 : vector<1x8x128xf32> to vector<8x128xf32>
    %949 = arith.mulf %946, %948 : vector<8x128xf32>
    %cst_366 = arith.constant dense<0xFF800000> : vector<8xf32>
    %950 = vector.multi_reduction <maximumf>, %949, %cst_366 [1] : vector<8x128xf32> to vector<8xf32>
    %951 = vector.shape_cast %950 : vector<8xf32> to vector<8x1xf32>
    %952 = tpu.reciprocal %951 {approx = true} : vector<8x1xf32> -> vector<8x1xf32>
    %953 = vector.broadcast %952 : vector<8x1xf32> to vector<8x128xf32>
    %954 = arith.mulf %949, %953 : vector<8x128xf32>
    %955 = vector.extract_strided_slice %807 {offsets = [7, 0, 0], sizes = [1, 8, 1], strides = [1, 1, 1]} : vector<8x8x1xf32> to vector<1x8x1xf32>
    %956 = vector.shape_cast %955 : vector<1x8x1xf32> to vector<8x1xf32>
    %957 = arith.addf %943, %956 : vector<8x1xf32>
    %958 = math.log %952 : vector<8x1xf32>
    %959 = arith.subf %957, %958 : vector<8x1xf32>
    %960 = vector.shape_cast %945 : vector<8x1xi1> to vector<8x1xi1>
    %961 = vector.broadcast %960 : vector<8x1xi1> to vector<8x128xi1>
    %962 = arith.select %961, %954, %942 : vector<8x128xi1>, vector<8x128xf32>
    %963 = arith.select %945, %959, %943 : vector<8x1xi1>, vector<8x1xf32>
    %964 = vector.broadcast %813 : vector<1x128xf32> to vector<8x128xf32>
    %965 = arith.mulf %962, %964 : vector<8x128xf32>
    %cst_367 = arith.constant dense<0.000000e+00> : vector<8xf32>
    %966 = vector.multi_reduction <add>, %965, %cst_367 [1] : vector<8x128xf32> to vector<8xf32>
    %967 = vector.shape_cast %966 : vector<8xf32> to vector<8x1xf32>
    %968 = math.log %967 : vector<8x1xf32>
    %969 = arith.addf %963, %968 : vector<8x1xf32>
    %c0_368 = arith.constant 0 : index
    %c0_369 = arith.constant 0 : index
    %970 = vector.load %arg15[%c0_368, %c0_369] : memref<8x1xf32, #tpu.memory_space<vmem>>, vector<8x1xf32>
    tpu.vector_store %arg15[%c0_368, %c0_369], %969 {strides = array<i32>} : memref<8x1xf32, #tpu.memory_space<vmem>>, vector<8x1xf32>,
    return
  }
}

</mosaic_0001>

<bundles_post_ra>
// kernel: bilstm_crf_softlexicon_forward.1
= control target key start
LH: loop header
LB: loop body
LE: loop exit
PB: predicated region body
PF: predicated region fallthrough
CT: control target
= control target key end

     0   :  { %v9428_v3 = vmov 0.0   ;;  %v7167_v8 = vmov 0   ;;  %vm104_vm0 = vcmask 392192   ;;  %s9412_s2 = inlined_call_operand.vmem [shape: f32[48,512], index: 2, kind: input, shape index: {}]   ;;  %s9413_s4 = inlined_call_operand.vmem [shape: f32[48,512], index: 4, kind: input, shape index: {}]   ;;  %s9414_s0 = inlined_call_operand.vmem [shape: f32[8,8,48], index: 0, kind: input, shape index: {}]   ;;  %s9415_s6 = inlined_call_operand.vmem [shape: f32[128,512], index: 6, kind: input, shape index: {}]   ;;  %s9416_s7 = inlined_call_operand.vmem [shape: f32[128,512], index: 7, kind: input, shape index: {}]   ;;  %s9417_s1 = inlined_call_operand.vmem [shape: s32[8,1], index: 1, kind: input, shape index: {}]   ;;  %s9418_s3 = inlined_call_operand.vmem [shape: f32[1,512], index: 3, kind: input, shape index: {}]   ;;  %s9419_s5 = inlined_call_operand.vmem [shape: f32[1,512], index: 5, kind: input, shape index: {}]   ;;  %s9420_s9 = inlined_call_operand.vmem [shape: f32[128,128], index: 9, kind: input, shape index: {}]   ;;  %s9421_s8 = inlined_call_operand.vmem [shape: f32[128,128], index: 8, kind: input, shape index: {}]   ;;  %s9422_s13 = inlined_call_operand.vmem [shape: f32[128,128], index: 13, kind: input, shape index: {}]   ;;  %s9423_s10 = inlined_call_operand.vmem [shape: f32[1,128], index: 10, kind: input, shape index: {}]   ;;  %s9424_s11 = inlined_call_operand.vmem [shape: f32[1,128], index: 11, kind: input, shape index: {}]   ;;  %s9425_s14 = inlined_call_operand.vmem [shape: f32[8,8,128], index: 14, kind: output, shape index: {0}]   ;;  %s9426_s12 = inlined_call_operand.vmem [shape: f32[1,128], index: 12, kind: input, shape index: {}]   ;;  %s9427_s15 = inlined_call_operand.vmem [shape: f32[8,1], index: 15, kind: output, shape index: {1}]  }
   0x1   :  { %v59_v0 = vld [vmem:[%s9412_s2 + $0x8] sm:$0xff]  ;;  %v58_v2 = vld [vmem:[%s9412_s2] sm:$0xff]  ;;  %193 = vmatprep.mubr.f32.mxu0 %v9428_v3  ;;  %217 = vmatprep.mubr.f32.mxu1 %v9428_v3  ;;  %v61_v19 = vld [vmem:[%s9412_s2 + $0x18] sm:$0xff] }
   0x2   :  { %v63_v1 = vld [vmem:[%s9412_s2 + $0x28] sm:$0xff]  ;;  %v62_v5 = vld [vmem:[%s9412_s2 + $0x20] sm:$0xff]  ;;  %6840 = vset.pattern.permute.xlu0 %v7167_v8  ;;  %6841 = vset.pattern.permute.xlu1 %v7167_v8  ;;  %v65_v20 = vld [vmem:[%s9412_s2 + $0x38] sm:$0xff] }
   0x3   :  { %v5390_v4 = vpack.c.bf16 %v63_v1, %v59_v0  ;;  %v67_v6 = vld [vmem:[%s9412_s2 + $0x48] sm:$0xff]  ;;  %v5392_v9 = vpack.c.bf16 %v62_v5, %v58_v2  ;;  %v66_v11 = vld [vmem:[%s9412_s2 + $0x40] sm:$0xff]  ;;  %v5402_v24 = vpack.c.bf16 %v65_v20, %v61_v19  ;;  %v60_v25 = vld [vmem:[%s9412_s2 + $0x10] sm:$0xff] }
   0x4   :  { %v71_v7 = vld [vmem:[%s9412_s2 + $0x68] sm:$0xff]  ;;  %v70_v12 = vld [vmem:[%s9412_s2 + $0x60] sm:$0xff]  ;;  %v64_v26 = vld [vmem:[%s9412_s2 + $0x30] sm:$0xff] }
   0x5   :  { %v5394_v10 = vpack.c.bf16 %v71_v7, %v67_v6  ;;  %v75_v13 = vld [vmem:[%s9412_s2 + $0x88] sm:$0xff]  ;;  %5391 = vmatprep.subr.bf16.mxu0 %v5390_v4  ;;  %6694 = vmatprep.subr.bf16.mxu1 %v5390_v4  ;;  %v5396_v15 = vpack.c.bf16 %v70_v12, %v66_v11  ;;  %v74_v17 = vld [vmem:[%s9412_s2 + $0x80] sm:$0xff]  ;;  %v69_v30 = vld [vmem:[%s9412_s2 + $0x58] sm:$0xff]  ;;  %v5404_v36 = vpack.c.bf16 %v64_v26, %v60_v25 }
   0x6   :  { %v79_v14 = vld [vmem:[%s9412_s2 + $0xa8] sm:$0xff]  ;;  %5393 = vmatpush1.bf16.msra.mxu0 %v5392_v9  ;;  %6697 = vmatpush1.bf16.msra.mxu1 %v5392_v9  ;;  %v78_v18 = vld [vmem:[%s9412_s2 + $0xa0] sm:$0xff]  ;;  %v73_v31 = vld [vmem:[%s9412_s2 + $0x78] sm:$0xff] }
   0x7   :  { %5395 = vmatprep.subr.bf16.mxu0 %v5394_v10  ;;  %6695 = vmatprep.subr.bf16.mxu1 %v5394_v10  ;;  %v5398_v16 = vpack.c.bf16 %v79_v14, %v75_v13  ;;  %v388_v21 = vld [vmem:[%s9413_s4 + $0x8] sm:$0xff]  ;;  %v5400_v23 = vpack.c.bf16 %v78_v18, %v74_v17  ;;  %v387_v28 = vld [vmem:[%s9413_s4] sm:$0xff]  ;;  %v68_v38 = vld [vmem:[%s9412_s2 + $0x50] sm:$0xff]  ;;  %v5406_v40 = vpack.c.bf16 %v73_v31, %v69_v30 }
   0x8   :  { %v392_v22 = vld [vmem:[%s9413_s4 + $0x28] sm:$0xff]  ;;  %v391_v29 = vld [vmem:[%s9413_s4 + $0x20] sm:$0xff]  ;;  %v72_v39 = vld [vmem:[%s9412_s2 + $0x70] sm:$0xff] }
   0x9   :  { %v5414_v27 = vpack.c.bf16 %v392_v22, %v388_v21  ;;  %v396_v32 = vld [vmem:[%s9413_s4 + $0x48] sm:$0xff]  ;;  %v7329_v34 = vld [vmem:[%s9414_s0] sm:$0xff]  ;;  %v5416_v37 = vpack.c.bf16 %v391_v29, %v387_v28  ;;  %v77_v44 = vld [vmem:[%s9412_s2 + $0x98] sm:$0xff]  ;;  %v5408_v50 = vpack.c.bf16 %v72_v39, %v68_v38 }
   0xa   :  { %5397 = vmatpush1.bf16.msra.mxu0 %v5396_v15  ;;  %6698 = vmatpush1.bf16.msra.mxu1 %v5396_v15  ;;  %v400_v33 = vld [vmem:[%s9413_s4 + $0x68] sm:$0xff]  ;;  %v7334_v35 = vld [vmem:[%s9414_s0 + $0x20] sm:$0xff]  ;;  %v81_v45 = vld [vmem:[%s9412_s2 + $0xb8] sm:$0xff] }
   0xb   :  { %5399 = vmatprep.subr.bf16.mxu0 %v5398_v16  ;;  %6696 = vmatprep.subr.bf16.mxu1 %v5398_v16  ;;  %v5418_v41 = vpack.c.bf16 %v400_v33, %v396_v32  ;;  %v395_v42 = vld [vmem:[%s9413_s4 + $0x40] sm:$0xff]  ;;  %v404_v46 = vld [vmem:[%s9413_s4 + $0x88] sm:$0xff]  ;;  %v76_v52 = vld [vmem:[%s9412_s2 + $0x90] sm:$0xff]  ;;  %v5410_v54 = vpack.c.bf16 %v81_v45, %v77_v44 }
   0xc   :  { %v399_v43 = vld [vmem:[%s9413_s4 + $0x60] sm:$0xff]  ;;  %v408_v47 = vld [vmem:[%s9413_s4 + $0xa8] sm:$0xff]  ;;  %v80_v53 = vld [vmem:[%s9412_s2 + $0xb0] sm:$0xff] }
   0xd   :  { %v7368_v48 = vld [vmem:[%s9414_s0 + $0x8] sm:$0xff]  ;;  %v5420_v51 = vpack.c.bf16 %v399_v43, %v395_v42  ;;  %v5422_v55 = vpack.c.bf16 %v408_v47, %v404_v46  ;;  %v403_v56 = vld [vmem:[%s9413_s4 + $0x80] sm:$0xff]  ;;  %v390_v60 = vld [vmem:[%s9413_s4 + $0x18] sm:$0xff]  ;;  %v5412_v0 = vpack.c.bf16 %v80_v53, %v76_v52 }
   0xe   :  { %5401 = vmatpush1.bf16.msra.mxu0 %v5400_v23  ;;  %6699 = vmatpush1.bf16.msra.mxu1 %v5400_v23  ;;  %v7373_v49 = vld [vmem:[%s9414_s0 + $0x28] sm:$0xff]  ;;  %v407_v57 = vld [vmem:[%s9413_s4 + $0xa0] sm:$0xff]  ;;  %v394_v61 = vld [vmem:[%s9413_s4 + $0x38] sm:$0xff] }
   0xf   :  { %5403 = vmatprep.subr.bf16.mxu1 %v5402_v24  ;;  %5415 = vmatprep.subr.bf16.mxu0 %v5414_v27  ;;  %v692_v58 = vld [vmem:[%s9415_s6 + $0x8] sm:$0xff]  ;;  %v7409_v62 = vld [vmem:[%s9414_s0 + $0x10] sm:$0xff]  ;;  %v5424_v1 = vpack.c.bf16 %v407_v57, %v403_v56  ;;  %v5426_v4 = vpack.c.bf16 %v394_v61, %v390_v60  ;;  %v7427_v5 = vld [vmem:[%s9414_s0 + $0x18] sm:$0xff] }
  0x10   :  { %v696_v59 = vld [vmem:[%s9415_s6 + $0x28] sm:$0xff]  ;;  %v7414_v63 = vld [vmem:[%s9414_s0 + $0x30] sm:$0xff]  ;;  %v7432_v6 = vld [vmem:[%s9414_s0 + $0x38] sm:$0xff] }
  0x11   :  { %4796 = vmatmul.mubr.msk.f32.vlgmr.msra.gmra.mrb[0].mxu0 %vm104_vm0, %v7329_v34  ;;  %4800 = vmatmul.mubr.msk.f32.vlgmr.msra.gmra.mrb[0].mxu1 %vm104_vm0, %v7334_v35  ;;  %v7416_v2 = vpack.c.bf16 %v696_v59, %v692_v58  ;;  %v691_v7 = vld [vmem:[%s9415_s6] sm:$0xff]  ;;  %v389_v10 = vld [vmem:[%s9413_s4 + $0x10] sm:$0xff]  ;;  %v700_v12 = vld [vmem:[%s9415_s6 + $0x48] sm:$0xff] }
  0x12   :  { %5405 = vmatpush1.bf16.msra.mxu1 %v5404_v36  ;;  %199 = vmatprep.mubr.f32.mxu0 %v9428_v3  ;;  %v695_v9 = vld [vmem:[%s9415_s6 + $0x20] sm:$0xff]  ;;  %v393_v11 = vld [vmem:[%s9413_s4 + $0x30] sm:$0xff]  ;;  %v704_v13 = vld [vmem:[%s9415_s6 + $0x68] sm:$0xff] }
  0x13   :  { %223 = vmatprep.mubr.f32.mxu1 %v9428_v3  ;;  %5417 = vmatpush1.bf16.msra.mxu0 %v5416_v37  ;;  %9533 = vst [vmem:[#allocation10_spill] sm:$0xff] %v7416_v2  ;;  %v398_v14 = vld [vmem:[%s9413_s4 + $0x58] sm:$0xff]  ;;  %v7465_v16 = vpack.c.bf16 %v695_v9, %v691_v7  ;;  %v5428_v17 = vpack.c.bf16 %v393_v11, %v389_v10  ;;  %v699_v18 = vld [vmem:[%s9415_s6 + $0x40] sm:$0xff]  ;;  %v708_v21 = vld [vmem:[%s9415_s6 + $0x88] sm:$0xff] }
  0x14   :  { %5407 = vmatprep.subr.bf16.mxu1 %v5406_v40  ;;  %5419 = vmatprep.subr.bf16.mxu0 %v5418_v41  ;;  %v402_v15 = vld [vmem:[%s9413_s4 + $0x78] sm:$0xff]  ;;  %v703_v19 = vld [vmem:[%s9415_s6 + $0x60] sm:$0xff]  ;;  %v7473_v20 = vpack.c.bf16 %v704_v13, %v700_v12  ;;  %v712_v22 = vld [vmem:[%s9415_s6 + $0xa8] sm:$0xff] }
  0x15   :  { %4797 = vmatmul.mubr.msk.f32.gmra.mrb[2].mxu0 %vm104_vm0, %v7368_v48  ;;  %4801 = vmatmul.mubr.msk.f32.gmra.mrb[2].mxu1 %vm104_vm0, %v7373_v49  ;;  %9534 = vst [vmem:[#allocation11_spill] sm:$0xff] %v7465_v16  ;;  %v5430_v23 = vpack.c.bf16 %v402_v15, %v398_v14  ;;  %v397_v24 = vld [vmem:[%s9413_s4 + $0x50] sm:$0xff]  ;;  %v7492_v26 = vpack.c.bf16 %v703_v19, %v699_v18  ;;  %v707_v28 = vld [vmem:[%s9415_s6 + $0x80] sm:$0xff]  ;;  %v716_v30 = vld [vmem:[%s9415_s6 + $0xc8] sm:$0xff] }
  0x16   :  { %205 = vmatprep.mubr.f32.mxu0 %v9428_v3  ;;  %229 = vmatprep.mubr.f32.mxu1 %v9428_v3  ;;  %9535 = vst [vmem:[#allocation12_spill] sm:$0xff] %v7473_v20  ;;  %v401_v25 = vld [vmem:[%s9413_s4 + $0x70] sm:$0xff]  ;;  %v7496_v27 = vpack.c.bf16 %v712_v22, %v708_v21  ;;  %v711_v29 = vld [vmem:[%s9415_s6 + $0xa0] sm:$0xff]  ;;  %v720_v31 = vld [vmem:[%s9415_s6 + $0xe8] sm:$0xff] }
  0x17   :  { %5409 = vmatpush1.bf16.msra.mxu1 %v5408_v50  ;;  %5421 = vmatpush1.bf16.msra.mxu0 %v5420_v51  ;;  %9536 = vst [vmem:[#allocation13_spill] sm:$0xff] %v7492_v26  ;;  %v5432_v32 = vpack.c.bf16 %v401_v25, %v397_v24  ;;  %v406_v33 = vld [vmem:[%s9413_s4 + $0x98] sm:$0xff]  ;;  %v7523_v37 = vpack.c.bf16 %v711_v29, %v707_v28  ;;  %v715_v39 = vld [vmem:[%s9415_s6 + $0xc0] sm:$0xff]  ;;  %v724_v41 = vld [vmem:[%s9415_s6 + $0x108] sm:$0xff] }
  0x18   :  { %5411 = vmatprep.subr.bf16.mxu1 %v5410_v54  ;;  %5423 = vmatprep.subr.bf16.mxu0 %v5422_v55  ;;  %9537 = vst [vmem:[#allocation14_spill] sm:$0xff] %v7496_v27  ;;  %v410_v36 = vld [vmem:[%s9413_s4 + $0xb8] sm:$0xff]  ;;  %v7527_v38 = vpack.c.bf16 %v720_v31, %v716_v30  ;;  %v719_v40 = vld [vmem:[%s9415_s6 + $0xe0] sm:$0xff]  ;;  %v728_v42 = vld [vmem:[%s9415_s6 + $0x128] sm:$0xff] }
  0x19   :  { %4798 = vmatmul.mubr.msk.f32.gmra.mrb[4].mxu0 %vm104_vm0, %v7409_v62  ;;  %4802 = vmatmul.mubr.msk.f32.gmra.mrb[4].mxu1 %vm104_vm0, %v7414_v63  ;;  %9538 = vst [vmem:[#allocation15_spill] sm:$0xff] %v7523_v37  ;;  %v5434_v43 = vpack.c.bf16 %v410_v36, %v406_v33  ;;  %v405_v44 = vld [vmem:[%s9413_s4 + $0x90] sm:$0xff]  ;;  %v7553_v46 = vpack.c.bf16 %v719_v40, %v715_v39  ;;  %v723_v50 = vld [vmem:[%s9415_s6 + $0x100] sm:$0xff]  ;;  %v732_v52 = vld [vmem:[%s9415_s6 + $0x148] sm:$0xff] }
  0x1a   :  { %211 = vmatprep.mubr.f32.mxu0 %v9428_v3  ;;  %235 = vmatprep.mubr.f32.mxu1 %v9428_v3  ;;  %9539 = vst [vmem:[#allocation16_spill] sm:$0xff] %v7527_v38  ;;  %v409_v45 = vld [vmem:[%s9413_s4 + $0xb0] sm:$0xff]  ;;  %v7557_v47 = vpack.c.bf16 %v728_v42, %v724_v41  ;;  %v727_v51 = vld [vmem:[%s9415_s6 + $0x120] sm:$0xff]  ;;  %v736_v53 = vld [vmem:[%s9415_s6 + $0x168] sm:$0xff] }
  0x1b   :  { %5413 = vmatpush1.bf16.msra.mxu1 %v5412_v0  ;;  %5425 = vmatpush1.bf16.msra.mxu0 %v5424_v1  ;;  %9540 = vst [vmem:[#allocation17_spill] sm:$0xff] %v7553_v46  ;;  %v5436_v54 = vpack.c.bf16 %v409_v45, %v405_v44  ;;  %v694_v55 = vld [vmem:[%s9415_s6 + $0x18] sm:$0xff]  ;;  %v7583_v57 = vpack.c.bf16 %v727_v51, %v723_v50  ;;  %v731_v59 = vld [vmem:[%s9415_s6 + $0x140] sm:$0xff]  ;;  %v740_v61 = vld [vmem:[%s9415_s6 + $0x188] sm:$0xff] }
  0x1c   :  { %5439 = vmatprep.subr.bf16.mxu0 %v7416_v2  ;;  %5427 = vmatprep.subr.bf16.mxu1 %v5426_v4  ;;  %9541 = vst [vmem:[#allocation18_spill] sm:$0xff] %v7557_v47  ;;  %v698_v56 = vld [vmem:[%s9415_s6 + $0x38] sm:$0xff]  ;;  %v7587_v58 = vpack.c.bf16 %v736_v53, %v732_v52  ;;  %v735_v60 = vld [vmem:[%s9415_s6 + $0x160] sm:$0xff]  ;;  %v744_v0 = vld [vmem:[%s9415_s6 + $0x1a8] sm:$0xff] }
  0x1d   :  { %4799 = vmatmul.mubr.msk.f32.gmra.mrb[6].mxu0 %vm104_vm0, %v7427_v5  ;;  %4803 = vmatmul.mubr.msk.f32.gmra.mrb[6].mxu1 %vm104_vm0, %v7432_v6  ;;  %9542 = vst [vmem:[#allocation19_spill] sm:$0xff] %v7583_v57  ;;  %v7601_v1 = vpack.c.bf16 %v698_v56, %v694_v55  ;;  %v7609_v4 = vpack.c.bf16 %v735_v60, %v731_v59  ;;  %v739_v9 = vld [vmem:[%s9415_s6 + $0x180] sm:$0xff]  ;;  %v748_v11 = vld [vmem:[%s9415_s6 + $0x1c8] sm:$0xff]  ;;  %v693_v22 = vld [vmem:[%s9415_s6 + $0x10] sm:$0xff] }
  0x1e   :  { %306 = vmatprep.mubr.f32.mxu1 %v9428_v3  ;;  %497 = vmatprep.mubr.f32.mxu0 %v9428_v3  ;;  %9543 = vst [vmem:[#allocation20_spill] sm:$0xff] %v7587_v58  ;;  %v7613_v7 = vpack.c.bf16 %v744_v0, %v740_v61  ;;  %v743_v10 = vld [vmem:[%s9415_s6 + $0x1a0] sm:$0xff]  ;;  %v752_v12 = vld [vmem:[%s9415_s6 + $0x1e8] sm:$0xff]  ;;  %v697_v24 = vld [vmem:[%s9415_s6 + $0x30] sm:$0xff] }
  0x1f   :  { %9544 = vst [vmem:[#allocation21_spill] sm:$0xff] %v7609_v4  ;;  %v7634_v13 = vpack.c.bf16 %v743_v10, %v739_v9  ;;  %v7638_v14 = vpack.c.bf16 %v752_v12, %v748_v11  ;;  %v747_v15 = vld [vmem:[%s9415_s6 + $0x1c0] sm:$0xff]  ;;  %v756_v18 = vld [vmem:[%s9416_s7 + $0x8] sm:$0xff]  ;;  %v702_v29 = vld [vmem:[%s9415_s6 + $0x58] sm:$0xff]  ;;  %v7694_v33 = vpack.c.bf16 %v697_v24, %v693_v22 }
  0x20   :  { %9545 = vst [vmem:[#allocation22_spill] sm:$0xff] %v7613_v7  ;;  %v760_v19 = vld [vmem:[%s9416_s7 + $0x28] sm:$0xff]  ;;  %v755_v25 = vld [vmem:[%s9416_s7] sm:$0xff]  ;;  %v706_v30 = vld [vmem:[%s9415_s6 + $0x78] sm:$0xff] }
  0x21   :  { %4804 = vmatmul.mubr.msk.f32.vlgmr.msra.gmra.mrb[8].mxu1 %vm104_vm0, %v7329_v34  ;;  %4812 = vmatmul.mubr.msk.f32.vlgmr.msra.gmra.mrb[8].mxu0 %vm104_vm0, %v7329_v34  ;;  %9546 = vst [vmem:[#allocation23_spill] sm:$0xff] %v7634_v13  ;;  %9547 = vst [vmem:[#allocation24_spill] sm:$0xff] %v7638_v14  ;;  %v759_v28 = vld [vmem:[%s9416_s7 + $0x20] sm:$0xff]  ;;  %v764_v31 = vld [vmem:[%s9416_s7 + $0x48] sm:$0xff]  ;;  %v7706_v41 = vpack.c.bf16 %v706_v30, %v702_v29 }
  0x22   :  { %5441 = vmatpush1.bf16.msra.mxu0 %v7465_v16  ;;  %5429 = vmatpush1.bf16.msra.mxu1 %v5428_v17  ;;  %v751_v17 = vld [vmem:[%s9415_s6 + $0x1e0] sm:$0xff]  ;;  %v7696_v36 = vpack.c.bf16 %v759_v28, %v755_v25  ;;  %v701_v39 = vld [vmem:[%s9415_s6 + $0x50] sm:$0xff]  ;;  %v710_v50 = vld [vmem:[%s9415_s6 + $0x98] sm:$0xff] }
  0x23   :  { %312 = vmatprep.mubr.f32.mxu1 %v9428_v3  ;;  %503 = vmatprep.mubr.f32.mxu0 %v9428_v3  ;;  %v7658_v21 = vpack.c.bf16 %v751_v17, %v747_v15  ;;  %v705_v40 = vld [vmem:[%s9415_s6 + $0x70] sm:$0xff]  ;;  %9550 = vst [vmem:[#allocation27_spill] sm:$0xff] %v7706_v41  ;;  %v763_v42 = vld [vmem:[%s9416_s7 + $0x40] sm:$0xff]  ;;  %v714_v51 = vld [vmem:[%s9415_s6 + $0xb8] sm:$0xff] }
  0x24   :  { %5443 = vmatprep.subr.bf16.mxu0 %v7473_v20  ;;  %5431 = vmatprep.subr.bf16.mxu1 %v5430_v23  ;;  %v7665_v23 = vpack.c.bf16 %v760_v19, %v756_v18  ;;  %v7717_v44 = vld [vmem:[%s9417_s1] sm:$0xff]  ;;  %v772_v52 = vld [vmem:[%s9416_s7 + $0x88] sm:$0xff]  ;;  %v7751_v59 = vpack.c.bf16 %v714_v51, %v710_v50  ;;  %v713_v60 = vld [vmem:[%s9415_s6 + $0xb0] sm:$0xff] }
  0x25   :  { %4805 = vmatmul.mubr.msk.f32.gmra.mrb[10].mxu1 %vm104_vm0, %v7368_v48  ;;  %4813 = vmatmul.mubr.msk.f32.gmra.mrb[10].mxu0 %vm104_vm0, %v7368_v48  ;;  %9548 = vst [vmem:[#allocation25_spill] sm:$0xff] %v7658_v21  ;;  %9551 = vst [vmem:[#allocation28_spill] sm:$0xff] %v7717_v44  ;;  %vm999_vm1 = vcmp.gt.s32.totalorder %v7717_v44, 0  ;;  %v776_v53 = vld [vmem:[%s9416_s7 + $0xa8] sm:$0xff]  ;;  %v771_v61 = vld [vmem:[%s9416_s7 + $0x80] sm:$0xff]  ;;  %vm1194_vm2 = vcmp.gt.s32.totalorder %v7717_v44, 7 }
  0x26   :  { %5445 = vmatpush1.bf16.msra.mxu0 %v7492_v26  ;;  %318 = vmatprep.mubr.f32.mxu1 %v9428_v3  ;;  %9549 = vst [vmem:[#allocation26_spill] sm:$0xff] %v7665_v23  ;;  %v1000_v56 = vsel %vm999_vm1, 1, %v7167_v8  ;;  %9553 = vst [vmem:[#allocation30_spill] sm:$0xff] %v7751_v59  ;;  %v775_v0 = vld [vmem:[%s9416_s7 + $0xa0] sm:$0xff]  ;;  %v7764_v9 = vpack.c.bf16 %v776_v53, %v772_v52  ;;  %v718_v10 = vld [vmem:[%s9415_s6 + $0xd8] sm:$0xff]  ;;  %vm1390_vm3 = vcmp.gt.s32.totalorder %v7717_v44, 1 }
  0x27   :  { %509 = vmatprep.mubr.f32.mxu0 %v9428_v3  ;;  %5447 = vmatprep.subr.bf16.mxu0 %v7496_v27  ;;  %v722_v11 = vld [vmem:[%s9415_s6 + $0xf8] sm:$0xff]  ;;  %v780_v12 = vld [vmem:[%s9416_s7 + $0xc8] sm:$0xff]  ;;  %v1391_v17 = vsel %vm1390_vm3, 1, %v7167_v8  ;;  %v717_v19 = vld [vmem:[%s9415_s6 + $0xd0] sm:$0xff]  ;;  %v1195_v22 = vsel %vm1194_vm2, 1, %v7167_v8  ;;  %vm1586_vm4 = vcmp.gt.s32.totalorder %v7717_v44, 6 }
  0x28   :  { %5433 = vmatpush1.bf16.msra.mxu1 %v5432_v32  ;;  %v768_v32 = vld [vmem:[%s9416_s7 + $0x68] sm:$0xff]  ;;  %1002 = vperm.xlu0 %6840, %v1000_v56   ;;  %v7800_v24 = vpack.c.bf16 %v722_v11, %v718_v10  ;;  %v721_v25 = vld [vmem:[%s9415_s6 + $0xf0] sm:$0xff]  ;;  %v779_v28 = vld [vmem:[%s9416_s7 + $0xc0] sm:$0xff]  ;;  %vm1782_vm5 = vcmp.gt.s32.totalorder %v7717_v44, 2  ;;  %vm2174_vm6 = vcmp.gt.s32.totalorder %v7717_v44, 3  ;;  %vm1978_vm7 = vcmp.gt.s32.totalorder %v7717_v44, 5 }
  0x29   :  { %4806 = vmatmul.mubr.msk.f32.gmra.mrb[12].mxu1 %vm104_vm0, %v7409_v62  ;;  %4814 = vmatmul.mubr.msk.f32.gmra.mrb[12].mxu0 %vm104_vm0, %v7409_v62  ;;  %v7719_v45 = vpack.c.bf16 %v768_v32, %v764_v31  ;;  %v784_v15 = vld [vmem:[%s9416_s7 + $0xe8] sm:$0xff]  ;;  %v783_v29 = vld [vmem:[%s9416_s7 + $0xe0] sm:$0xff]  ;;  %v726_v31 = vld [vmem:[%s9415_s6 + $0x118] sm:$0xff]  ;;  %v1783_v52 = vsel %vm1782_vm5, 1, %v7167_v8  ;;  %vm2370_vm8 = vcmp.gt.s32.totalorder %v7717_v44, 4 }
  0x2a   :  { %5449 = vmatpush1.bf16.msra.mxu0 %v7523_v37  ;;  %324 = vmatprep.mubr.f32.mxu1 %v9428_v3  ;;  %9555 = vst [vmem:[#allocation32_spill] sm:$0xff] %v7800_v24  ;;  %v7813_v30 = vpack.c.bf16 %v784_v15, %v780_v12  ;;  %v730_v32 = vld [vmem:[%s9415_s6 + $0x138] sm:$0xff]  ;;  %v725_v50 = vld [vmem:[%s9415_s6 + $0x110] sm:$0xff]  ;;  %v791_v56 = vld [vmem:[%s9416_s7 + $0x120] sm:$0xff] }
  0x2b   :  { %515 = vmatprep.mubr.f32.mxu0 %v9428_v3  ;;  %5451 = vmatprep.subr.bf16.mxu0 %v7527_v38  ;;  %v729_v51 = vld [vmem:[%s9415_s6 + $0x130] sm:$0xff]  ;;  %v7849_v53 = vpack.c.bf16 %v730_v32, %v726_v31  ;;  %v796_v11 = vld [vmem:[%s9416_s7 + $0x148] sm:$0xff]  ;;  %v799_v31 = vld [vmem:[%s9416_s7 + $0x160] sm:$0xff] }
  0x2c   :  { %5435 = vmatprep.subr.bf16.mxu1 %v5434_v43  ;;  %v767_v43 = vld [vmem:[%s9416_s7 + $0x60] sm:$0xff]  ;;  %1393 = vperm.xlu1 %6841, %v1391_v17   ;;  %v7869_v10 = vpack.c.bf16 %v729_v51, %v725_v50  ;;  %v800_v12 = vld [vmem:[%s9416_s7 + $0x168] sm:$0xff]  ;;  %v4831_v17 = vsel %vm999_vm1, 1.0, %v9428_v3  ;;  %v809_v44 = vld [vmem:[%s9416_s7 + $0x1b0] sm:$0xff]  ;;  %vm7169_vm1 = vmmov 0  }
  0x2d   :  { %4807 = vmatmul.mubr.msk.f32.gmra.mrb[14].mxu1 %vm104_vm0, %v7427_v5  ;;  %4815 = vmatmul.mubr.msk.f32.gmra.mrb[14].mxu0 %vm104_vm0, %v7427_v5  ;;  %v7741_v55 = vpack.c.bf16 %v767_v43, %v763_v42  ;;  %v1587_v42 = vsel %vm1586_vm4, 1, %v7167_v8  ;;  %v7834_v43 = vpack.c.bf16 %v721_v25, %v717_v19  ;;  %9557 = vst [vmem:[#allocation34_spill] sm:$0xff] %v7849_v53  ;;  %v4839_v19 = vsel %vm1390_vm3, 1.0, %v9428_v3  ;;  %v808_v50 = vld [vmem:[%s9416_s7 + $0x1a8] sm:$0xff] }
  0x2e   :  { %5453 = vmatpush1.bf16.msra.mxu0 %v7553_v46  ;;  %330 = vmatprep.mubr.f32.mxu1 %v9428_v3  ;;  %9558 = vst [vmem:[#allocation35_spill] sm:$0xff] %v7869_v10  ;;  %v7909_v32 = vpack.c.bf16 %v800_v12, %v796_v11  ;;  %v6842_v51 = vpack.i.bf16 %v4839_v19, %v4831_v17  ;;  %v745_v11 = vld [vmem:[%s9415_s6 + $0x1b0] sm:$0xff]  ;;  %v803_v12 = vld [vmem:[%s9416_s7 + $0x180] sm:$0xff]  ;;  %v750_v19 = vld [vmem:[%s9415_s6 + $0x1d8] sm:$0xff] }
  0x2f   :  { %521 = vmatprep.mubr.f32.mxu0 %v9428_v3  ;;  %5455 = vmatprep.subr.bf16.mxu0 %v7557_v47  ;;  %9556 = vst [vmem:[#allocation33_spill] sm:$0xff] %v7834_v43 }
  0x30   :  { %5437 = vmatpush1.bf16.msra.mxu1 %v5436_v54  ;;  %v7739_v54 = vpack.c.bf16 %v705_v40, %v701_v39  ;;  %v788_v39 = vld [vmem:[%s9416_s7 + $0x108] sm:$0xff]  ;;  %1197 = vperm.xlu0 %6840, %v1195_v22   ;;  %v2175_v22 = vsel %vm2174_vm6, 1, %v7167_v8 }
  0x31   :  { %4808 = vmatmul.mubr.msk.f32.gmra.mrb[16].mxu1 %vm104_vm0, %v7334_v35  ;;  %4816 = vmatmul.mubr.msk.f32.gmra.mrb[16].mxu0 %vm104_vm0, %v7334_v35  ;;  %v792_v40 = vld [vmem:[%s9416_s7 + $0x128] sm:$0xff] }
  0x32   :  { %5457 = vmatpush1.bf16.msra.mxu0 %v7583_v57  ;;  %336 = vmatprep.mubr.f32.mxu1 %v9428_v3  ;;  %9552 = vst [vmem:[#allocation29_spill] sm:$0xff] %v7739_v54 }
  0x33   :  { %527 = vmatprep.mubr.f32.mxu0 %v9428_v3  ;;  %5459 = vmatprep.subr.bf16.mxu0 %v7587_v58 }
  0x34   :  { %5471 = vmatprep.subr.bf16.mxu1 %v7601_v1  ;;  %1589 = vperm.xlu1 %6841, %v1587_v42   ;;  %v804_v42 = vld [vmem:[%s9416_s7 + $0x188] sm:$0xff] }
  0x35   :  { %4809 = vmatmul.mubr.msk.f32.gmra.mrb[18].mxu1 %vm104_vm0, %v7373_v49  ;;  %4817 = vmatmul.mubr.msk.f32.gmra.mrb[18].mxu0 %vm104_vm0, %v7373_v49  ;;  %v7954_v17 = vpack.c.bf16 %v808_v50, %v804_v42  ;;  %v753_v50 = vld [vmem:[%s9415_s6 + $0x1f0] sm:$0xff] }
  0x36   :  { %5461 = vmatpush1.bf16.msra.mxu0 %v7609_v4  ;;  %342 = vmatprep.mubr.f32.mxu1 %v9428_v3 }
  0x37   :  { %533 = vmatprep.mubr.f32.mxu0 %v9428_v3  ;;  %5463 = vmatprep.subr.bf16.mxu0 %v7613_v7 }
  0x38   :  { %1785 = vperm.xlu0 %6840, %v1783_v52  }
  0x39   :  { %4810 = vmatmul.mubr.msk.f32.gmra.mrb[20].mxu1 %vm104_vm0, %v7414_v63  ;;  %4818 = vmatmul.mubr.msk.f32.gmra.mrb[20].mxu0 %vm104_vm0, %v7414_v63 }
  0x3a   :  { %5465 = vmatpush1.bf16.msra.mxu0 %v7634_v13  ;;  %348 = vmatprep.mubr.f32.mxu1 %v9428_v3 }
  0x3b   :  { %539 = vmatprep.mubr.f32.mxu0 %v9428_v3  ;;  %5467 = vmatprep.subr.bf16.mxu0 %v7638_v14 }
  0x3c   :  { %2177 = vperm.xlu0 %6840, %v2175_v22   ;;  %v754_v22 = vld [vmem:[%s9415_s6 + $0x1f8] sm:$0xff] }
  0x3d   :  { %4811 = vmatmul.mubr.msk.f32.gmra.mrb[22].mxu1 %vm104_vm0, %v7432_v6  ;;  %4819 = vmatmul.mubr.msk.f32.gmra.mrb[22].mxu0 %vm104_vm0, %v7432_v6  ;;  %v7981_v42 = vpack.c.bf16 %v754_v22, %v750_v19  ;;  %v757_v22 = vld [vmem:[%s9416_s7 + $0x10] sm:$0xff] }
  0x3e   :  { %5469 = vmatpush1.bf16.msra.mxu0 %v7658_v21  ;;  %610 = vmatprep.mubr.f32.mxu1 %v9428_v3 }
  0x3f   :  { %893 = vmatprep.mubr.f32.mxu0 %v9428_v3  ;;  %5503 = vmatprep.subr.bf16.mxu0 %v7665_v23  ;;  %9563 = vst [vmem:[#allocation40_spill] sm:$0xff] %v7981_v42 }
  0x40   :  { %6843 = vperm.xlu0 %6840, %v6842_v51   ;;  %v811_v51 = vld [vmem:[%s9416_s7 + $0x1c0] sm:$0xff] }
  0x41   :  { %4820 = vmatmul.mubr.msk.f32.vlgmr.msra.gmra.mrb[24].mxu1 %vm104_vm0, %v7329_v34  ;;  %894 = vmatmul.mubr.f32.vlgmr.msra.gmra.mrb[0].mxu0 %v9428_v3  ;;  %v709_v34 = vld [vmem:[%s9415_s6 + $0x90] sm:$0xff] }
  0x42   :  { %5473 = vmatpush1.bf16.msra.mxu1 %v7694_v33  ;;  %5505 = vmatpush1.bf16.msra.mxu0 %v7696_v36  ;;  %v7787_v18 = vpack.c.bf16 %v713_v60, %v709_v34  ;;  %v787_v34 = vld [vmem:[%s9416_s7 + $0x100] sm:$0xff]  ;;  %v7859_v60 = vpack.c.bf16 %v792_v40, %v788_v39  ;;  %v742_v39 = vld [vmem:[%s9415_s6 + $0x198] sm:$0xff] }
  0x43   :  { %616 = vmatprep.mubr.f32.mxu1 %v9428_v3  ;;  %5475 = vmatprep.subr.bf16.mxu1 %v7706_v41  ;;  %v7879_v15 = vpack.c.bf16 %v791_v56, %v787_v34  ;;  %v746_v40 = vld [vmem:[%s9415_s6 + $0x1b8] sm:$0xff]  ;;  %v4851_v56 = vsel %vm1978_vm7, 1.0, %v9428_v3 }
  0x44   :  { %5507 = vmatprep.subr.bf16.mxu0 %v7719_v45  ;;  %1088 = vmatprep.mubr.f32.mxu0 %v9428_v3  ;;  %9554 = vst [vmem:[#allocation31_spill] sm:$0xff] %v7787_v18 }
  0x45   :  { %4821 = vmatmul.mubr.msk.f32.gmra.mrb[26].mxu1 %vm104_vm0, %v7368_v48  ;;  %v7789_v48 = vpack.c.bf16 %v775_v0, %v771_v61  ;;  %v734_v61 = vld [vmem:[%s9415_s6 + $0x158] sm:$0xff] }
  0x46   :  { %5477 = vmatpush1.bf16.msra.mxu1 %v7739_v54  ;;  %5509 = vmatpush1.bf16.msra.mxu0 %v7741_v55  ;;  %v738_v0 = vld [vmem:[%s9415_s6 + $0x178] sm:$0xff] }
  0x47   :  { %622 = vmatprep.mubr.f32.mxu1 %v9428_v3  ;;  %5479 = vmatprep.subr.bf16.mxu1 %v7751_v59  ;;  %v7895_v25 = vpack.c.bf16 %v738_v0, %v734_v61  ;;  %v4859_v61 = vsel %vm2370_vm8, 1.0, %v9428_v3  ;;  %v7942_v0 = vpack.c.bf16 %v746_v40, %v742_v39 }
  0x48   :  { %5511 = vmatprep.subr.bf16.mxu0 %v7764_v9 }
  0x49   :  { %4822 = vmatmul.mubr.msk.f32.gmra.mrb[28].mxu1 %vm104_vm0, %v7409_v62  ;;  %v7836_v62 = vpack.c.bf16 %v783_v29, %v779_v28  ;;  %9559 = vst [vmem:[#allocation36_spill] sm:$0xff] %v7895_v25  ;;  %v737_v28 = vld [vmem:[%s9415_s6 + $0x170] sm:$0xff]  ;;  %v795_v29 = vld [vmem:[%s9416_s7 + $0x140] sm:$0xff]  ;;  %9561 = vst [vmem:[#allocation38_spill] sm:$0xff] %v7942_v0 }
  0x4a   :  { %5481 = vmatpush1.bf16.msra.mxu1 %v7787_v18  ;;  %5513 = vmatpush1.bf16.msra.mxu0 %v7789_v48  ;;  %v7929_v34 = vpack.c.bf16 %v799_v31, %v795_v29  ;;  %v816_v29 = vld [vmem:[%s9416_s7 + $0x1e8] sm:$0xff]  ;;  %v6852_v31 = vpack.i.bf16 %v4851_v56, %v4859_v61  ;;  %v758_v61 = vld [vmem:[%s9416_s7 + $0x18] sm:$0xff] }
  0x4b   :  { %628 = vmatprep.mubr.f32.mxu1 %v9428_v3  ;;  %5483 = vmatprep.subr.bf16.mxu1 %v7800_v24 }
  0x4c   :  { %5515 = vmatprep.subr.bf16.mxu0 %v7813_v30  ;;  %6853 = vperm.xlu0 %6840, %v6852_v31  }
  0x4d   :  { %4823 = vmatmul.mubr.msk.f32.gmra.mrb[30].mxu1 %vm104_vm0, %v7427_v5  ;;  %v733_v5 = vld [vmem:[%s9415_s6 + $0x150] sm:$0xff] }
  0x4e   :  { %5485 = vmatpush1.bf16.msra.mxu1 %v7834_v43  ;;  %5517 = vmatpush1.bf16.msra.mxu0 %v7836_v62  ;;  %v7927_v52 = vpack.c.bf16 %v737_v28, %v733_v5  ;;  %v807_v5 = vld [vmem:[%s9416_s7 + $0x1a0] sm:$0xff]  ;;  %v812_v28 = vld [vmem:[%s9416_s7 + $0x1c8] sm:$0xff] }
  0x4f   :  { %634 = vmatprep.mubr.f32.mxu1 %v9428_v3  ;;  %5487 = vmatprep.subr.bf16.mxu1 %v7849_v53  ;;  %v7974_v40 = vpack.c.bf16 %v807_v5, %v803_v12  ;;  %v7993_v56 = vpack.c.bf16 %v816_v29, %v812_v28  ;;  %v766_v28 = vld [vmem:[%s9416_s7 + $0x58] sm:$0xff] }
  0x50   :  { %5519 = vmatprep.subr.bf16.mxu0 %v7859_v60  ;;  %9560 = vst [vmem:[#allocation37_spill] sm:$0xff] %v7927_v52  ;;  %v770_v29 = vld [vmem:[%s9416_s7 + $0x78] sm:$0xff] }
  0x51   :  { %4824 = vmatmul.mubr.msk.f32.gmra.mrb[32].mxu1 %vm104_vm0, %v7334_v35  ;;  %v741_v35 = vld [vmem:[%s9415_s6 + $0x190] sm:$0xff] }
  0x52   :  { %5489 = vmatpush1.bf16.msra.mxu1 %v7869_v10  ;;  %5521 = vmatpush1.bf16.msra.mxu0 %v7879_v15  ;;  %v7972_v39 = vpack.c.bf16 %v745_v11, %v741_v35  ;;  %v815_v35 = vld [vmem:[%s9416_s7 + $0x1e0] sm:$0xff]  ;;  %v762_v11 = vld [vmem:[%s9416_s7 + $0x38] sm:$0xff] }
  0x53   :  { %640 = vmatprep.mubr.f32.mxu1 %v9428_v3  ;;  %5491 = vmatprep.subr.bf16.mxu1 %v7895_v25  ;;  %v8007_v5 = vpack.c.bf16 %v815_v35, %v811_v51  ;;  %v8011_v19 = vpack.c.bf16 %v762_v11, %v758_v61  ;;  %v774_v51 = vld [vmem:[%s9416_s7 + $0x98] sm:$0xff] }
  0x54   :  { %5523 = vmatprep.subr.bf16.mxu0 %v7909_v32  ;;  %9562 = vst [vmem:[#allocation39_spill] sm:$0xff] %v7972_v39  ;;  %v778_v35 = vld [vmem:[%s9416_s7 + $0xb8] sm:$0xff] }
  0x55   :  { %4825 = vmatmul.mubr.msk.f32.gmra.mrb[34].mxu1 %vm104_vm0, %v7373_v49  ;;  %v749_v49 = vld [vmem:[%s9415_s6 + $0x1d0] sm:$0xff]  ;;  %9565 = vst [vmem:[#allocation42_spill] sm:$0xff] %v8007_v5  ;;  %9566 = vst [vmem:[#allocation43_spill] sm:$0xff] %v8011_v19  ;;  %v8056_v11 = vpack.c.bf16 %v778_v35, %v774_v51 }
  0x56   :  { %5493 = vmatpush1.bf16.msra.mxu1 %v7927_v52  ;;  %5525 = vmatpush1.bf16.msra.mxu0 %v7929_v34  ;;  %v8005_v12 = vpack.c.bf16 %v753_v50, %v749_v49  ;;  %v8034_v49 = vpack.c.bf16 %v770_v29, %v766_v28  ;;  %v765_v50 = vld [vmem:[%s9416_s7 + $0x50] sm:$0xff]  ;;  %v782_v28 = vld [vmem:[%s9416_s7 + $0xd8] sm:$0xff] }
  0x57   :  { %646 = vmatprep.mubr.f32.mxu1 %v9428_v3  ;;  %5495 = vmatprep.subr.bf16.mxu1 %v7942_v0  ;;  %v786_v29 = vld [vmem:[%s9416_s7 + $0xf8] sm:$0xff]  ;;  %v781_v35 = vld [vmem:[%s9416_s7 + $0xd0] sm:$0xff] }
  0x58   :  { %5527 = vmatprep.subr.bf16.mxu0 %v7954_v17  ;;  %9564 = vst [vmem:[#allocation41_spill] sm:$0xff] %v8005_v12  ;;  %v8080_v51 = vpack.c.bf16 %v786_v29, %v782_v28  ;;  %v2371_v29 = vsel %vm2370_vm8, 1, %v7167_v8 }
  0x59   :  { %4826 = vmatmul.mubr.msk.f32.gmra.mrb[36].mxu1 %vm104_vm0, %v7414_v63  ;;  %v761_v63 = vld [vmem:[%s9416_s7 + $0x30] sm:$0xff] }
  0x5a   :  { %5497 = vmatpush1.bf16.msra.mxu1 %v7972_v39  ;;  %5529 = vmatpush1.bf16.msra.mxu0 %v7974_v40  ;;  %v8030_v31 = vpack.c.bf16 %v761_v63, %v757_v22  ;;  %v773_v22 = vld [vmem:[%s9416_s7 + $0x90] sm:$0xff] }
  0x5b   :  { %652 = vmatprep.mubr.f32.mxu1 %v9428_v3  ;;  %5499 = vmatprep.subr.bf16.mxu1 %v7981_v42  ;;  %v777_v63 = vld [vmem:[%s9416_s7 + $0xb0] sm:$0xff] }
  0x5c   :  { %5531 = vmatprep.subr.bf16.mxu0 %v7993_v56 }
  0x5d   :  { %4827 = vmatmul.mubr.msk.f32.gmra.mrb[38].mxu1 %vm104_vm0, %v7432_v6  ;;  %v769_v6 = vld [vmem:[%s9416_s7 + $0x70] sm:$0xff] }
  0x5e   :  { %5501 = vmatpush1.bf16.msra.mxu1 %v8005_v12  ;;  %5533 = vmatpush1.bf16.msra.mxu0 %v8007_v5  ;;  %v8052_v61 = vpack.c.bf16 %v769_v6, %v765_v50  ;;  %v8074_v50 = vpack.c.bf16 %v777_v63, %v773_v22  ;;  %v1979_v6 = vsel %vm1978_vm7, 1, %v7167_v8  ;;  %v790_v22 = vld [vmem:[%s9416_s7 + $0x118] sm:$0xff]  ;;  %v801_v5 = vld [vmem:[%s9416_s7 + $0x170] sm:$0xff] }
  0x5f   :  { %964 = vmatprep.mubr.f32.mxu1 %v9428_v3  ;;  %5535 = vmatprep.subr.bf16.mxu1 %v8011_v19  ;;  %v794_v63 = vld [vmem:[%s9416_s7 + $0x138] sm:$0xff] }
  0x60   :  { %5567 = vmatprep.subr.bf16.mxu0 %v7416_v2  ;;  %1981 = vperm.xlu1 %6841, %v1979_v6   ;;  %v8103_v6 = vpack.c.bf16 %v794_v63, %v790_v22  ;;  %v802_v8 = vld [vmem:[%s9416_s7 + $0x178] sm:$0xff]  ;;  %v797_v2 = vld [vmem:[%s9416_s7 + $0x150] sm:$0xff] }
  0x61   :  { %1089 = vmatmul.mubr.f32.vlgmr.msra.gmra.mrb[22].mxu0 %v9428_v3  ;;  %965 = vmatmul.mubr.f32.vlgmr.msra.gmra.mrb[8].mxu1 %v9428_v3 }
  0x62   :  { %5537 = vmatpush1.bf16.msra.mxu1 %v8030_v31  ;;  %1159 = vmatprep.mubr.f32.mxu1 %v9428_v3 }
  0x63   :  { %5539 = vmatprep.subr.bf16.mxu1 %v8034_v49  ;;  %5569 = vmatpush1.bf16.msra.mxu0 %v7465_v16 }
  0x64   :  { %5571 = vmatprep.subr.bf16.mxu0 %v7473_v20  ;;  %1284 = vmatprep.mubr.f32.mxu0 %v9428_v3  ;;  %v785_v3 = vld [vmem:[%s9416_s7 + $0xf0] sm:$0xff] }
  0x65   :  { %v8097_v28 = vpack.c.bf16 %v785_v3, %v781_v35  ;;  %v789_v20 = vld [vmem:[%s9416_s7 + $0x110] sm:$0xff]  ;;  %2373 = vperm.xlu1 %6841, %v2371_v29   ;;  %v798_v3 = vld [vmem:[%s9416_s7 + $0x158] sm:$0xff]  ;;  %v9567_v35 = vmov 0.0  }
  0x66   :  { %5541 = vmatpush1.bf16.msra.mxu1 %v8052_v61  ;;  %v4847_v22 = vsel %vm1782_vm5, 1.0, %v9567_v35  ;;  %v4855_v63 = vsel %vm2174_vm6, 1.0, %v9567_v35  ;;  %v8129_v16 = vpack.c.bf16 %v802_v8, %v798_v3  ;;  %v4843_v3 = vsel %vm1586_vm4, 1.0, %v9567_v35 }
  0x67   :  { %5543 = vmatprep.subr.bf16.mxu1 %v8056_v11  ;;  %5573 = vmatpush1.bf16.msra.mxu0 %v7492_v26  ;;  %v6847_v26 = vpack.i.bf16 %v4855_v63, %v4847_v22  ;;  %v806_v22 = vld [vmem:[%s9416_s7 + $0x198] sm:$0xff] }
  0x68   :  { %5575 = vmatprep.subr.bf16.mxu0 %v7496_v27  ;;  %v793_v27 = vld [vmem:[%s9416_s7 + $0x130] sm:$0xff] }
  0x69   :  { %v8126_v29 = vpack.c.bf16 %v793_v27, %v789_v20  ;;  %6848 = vperm.xlu1 %6841, %v6847_v26   ;;  %v810_v20 = vld [vmem:[%s9416_s7 + $0x1b8] sm:$0xff]  ;;  %v4835_v27 = vsel %vm1194_vm2, 1.0, %v9567_v35  ;;  %v8152_v26 = vpack.c.bf16 %v801_v5, %v797_v2 }
  0x6a   :  { %5545 = vmatpush1.bf16.msra.mxu1 %v8074_v50  ;;  %v6857_v8 = vpack.i.bf16 %v4835_v27, %v4843_v3  ;;  %v8155_v63 = vpack.c.bf16 %v810_v20, %v806_v22  ;;  %v814_v27 = vld [vmem:[%s9416_s7 + $0x1d8] sm:$0xff]  ;;  %v813_v20 = vld [vmem:[%s9416_s7 + $0x1d0] sm:$0xff] }
  0x6b   :  { %5547 = vmatprep.subr.bf16.mxu1 %v8080_v51  ;;  %5577 = vmatpush1.bf16.msra.mxu0 %v7523_v37  ;;  %v818_v2 = vld [vmem:[%s9416_s7 + $0x1f8] sm:$0xff]  ;;  %v817_v3 = vld [vmem:[%s9416_s7 + $0x1f0] sm:$0xff] }
  0x6c   :  { %5579 = vmatprep.subr.bf16.mxu0 %v7527_v38  ;;  %v805_v38 = vld [vmem:[%s9416_s7 + $0x190] sm:$0xff]  ;;  %v8175_v22 = vpack.c.bf16 %v818_v2, %v814_v27 }
  0x6d   :  { %6858 = vperm.xlu1 %6841, %v6857_v8   ;;  %v8172_v5 = vpack.c.bf16 %v809_v44, %v805_v38  ;;  %v8186_v38 = vpack.c.bf16 %v817_v3, %v813_v20 }
  0x6e   :  { %5549 = vmatpush1.bf16.msra.mxu1 %v8097_v28 }
  0x6f   :  { %5551 = vmatprep.subr.bf16.mxu1 %v8103_v6  ;;  %5581 = vmatpush1.bf16.msra.mxu0 %v7553_v46 }
  0x70   :  { %5583 = vmatprep.subr.bf16.mxu0 %v7557_v47 }
  0x72   :  { %5553 = vmatpush1.bf16.msra.mxu1 %v8126_v29 }
  0x73   :  { %5555 = vmatprep.subr.bf16.mxu1 %v8129_v16  ;;  %5585 = vmatpush1.bf16.msra.mxu0 %v7583_v57 }
  0x74   :  { %5587 = vmatprep.subr.bf16.mxu0 %v7587_v58 }
  0x76   :  { %5557 = vmatpush1.bf16.msra.mxu1 %v8152_v26 }
  0x77   :  { %5559 = vmatprep.subr.bf16.mxu1 %v8155_v63  ;;  %5589 = vmatpush1.bf16.msra.mxu0 %v7609_v4 }
  0x78   :  { %5591 = vmatprep.subr.bf16.mxu0 %v7613_v7 }
  0x7a   :  { %5561 = vmatpush1.bf16.msra.mxu1 %v8172_v5 }
  0x7b   :  { %5563 = vmatprep.subr.bf16.mxu1 %v8175_v22  ;;  %5593 = vmatpush1.bf16.msra.mxu0 %v7634_v13 }
  0x7c   :  { %5595 = vmatprep.subr.bf16.mxu0 %v7638_v14 }
  0x7e   :  { %5565 = vmatpush1.bf16.msra.mxu1 %v8186_v38 }
  0x7f   :  { %5599 = vmatprep.subr.bf16.mxu1 %v7601_v1  ;;  %5597 = vmatpush1.bf16.msra.mxu0 %v7658_v21 }
  0x80   :  { %5631 = vmatprep.subr.bf16.mxu0 %v7665_v23 }
  0x81   :  { %1160 = vmatmul.mubr.f32.vlgmr.msra.gmra.mrb[38].mxu1 %v9567_v35 }
  0x82   :  { %5601 = vmatpush1.bf16.msra.mxu1 %v7694_v33  ;;  %1355 = vmatprep.mubr.f32.mxu1 %v9567_v35 }
  0x83   :  { %5603 = vmatprep.subr.bf16.mxu1 %v7706_v41 }
  0x86   :  { %5605 = vmatpush1.bf16.msra.mxu1 %v7739_v54 }
  0x87   :  { %5607 = vmatprep.subr.bf16.mxu1 %v7751_v59 }
  0x8a   :  { %5609 = vmatpush1.bf16.msra.mxu1 %v7787_v18 }
  0x8b   :  { %5611 = vmatprep.subr.bf16.mxu1 %v7800_v24 }
  0x8e   :  { %5613 = vmatpush1.bf16.msra.mxu1 %v7834_v43 }
  0x8f   :  { %5615 = vmatprep.subr.bf16.mxu1 %v7849_v53 }
  0x92   :  { %5617 = vmatpush1.bf16.msra.mxu1 %v7869_v10 }
  0x93   :  { %5619 = vmatprep.subr.bf16.mxu1 %v7895_v25 }
  0x96   :  { %5621 = vmatpush1.bf16.msra.mxu1 %v7927_v52 }
  0x97   :  { %5623 = vmatprep.subr.bf16.mxu1 %v7942_v0 }
  0x9a   :  { %5625 = vmatpush1.bf16.msra.mxu1 %v7972_v39 }
  0x9b   :  { %5627 = vmatprep.subr.bf16.mxu1 %v7981_v42  ;;  %v84_v42 = vlaneseq }
  0x9e   :  { %5629 = vmatpush1.bf16.msra.mxu1 %v8005_v12  ;;  %v85_v12 = vshrl.u32 %v84_v42, 7 }
  0x9f   :  { %5663 = vmatprep.subr.bf16.mxu1 %v8011_v19 }
  0xa0   :  { %v90_v39 = vsub.s32 1, %v85_v12  ;;  %v98_v0 = vsub.s32 3, %v85_v12 }
  0xe4   :  { %v8213_v44 = vpop.f32.mrb[0].mxu1 }
  0xe5   :  { %9568 = vst [vmem:[#allocation44_spill] sm:$0xff] %v8213_v44  ;;  %v8215_v8 = vpop.f32.mrb[1].mxu1  ;;  %v94_v44 = vsub.s32 2, %v85_v12 }
  0xe6   :  { %9569 = vst [vmem:[#allocation45_spill] sm:$0xff] %v8215_v8  ;;  %v82_v8 = vld [vmem:[%s9418_s3] sm:$0xf] }
  0xe7   :  { %v8241_v4 = vrot.slane %v82_v8, %v94_v44  ;;  %v8243_v58 = vrot.slane %v82_v8, %v98_v0 }
  0xe8   :  { %v8217_v27 = vpop.f32.mrb[2].mxu1 }
  0xe9   :  { %9570 = vst [vmem:[#allocation46_spill] sm:$0xff] %v8217_v27  ;;  %v8219_v2 = vpop.f32.mrb[3].mxu1  ;;  %v8232_v27 = vsub.s32 0, %v85_v12  ;;  %9579 = vst [vmem:[#allocation55_spill] sm:$0xff] %v8241_v4 }
  0xea   :  { %9571 = vst [vmem:[#allocation47_spill] sm:$0xff] %v8219_v2  ;;  %v8234_v2 = vrot.slane %v82_v8, %v90_v39 }
  0xeb   :  { %9576 = vst [vmem:[#allocation52_spill] sm:$0xff] %v8232_v27 }
  0xec   :  { %v8221_v20 = vpop.f32.mrb[4].mxu1  ;;  %9577 = vst [vmem:[#allocation53_spill] sm:$0xff] %v8234_v2 }
  0xed   :  { %9572 = vst [vmem:[#allocation48_spill] sm:$0xff] %v8221_v20  ;;  %v8223_v3 = vpop.f32.mrb[5].mxu1  ;;  %v8237_v20 = vrot.slane %v82_v8, %v8232_v27 }
  0xee   :  { %9573 = vst [vmem:[#allocation49_spill] sm:$0xff] %v8223_v3 }
  0xef   :  { %9578 = vst [vmem:[#allocation54_spill] sm:$0xff] %v8237_v20 }
  0xf0   :  { %v8225_v23 = vpop.f32.mrb[6].mxu1 }
  0xf1   :  { %9574 = vst [vmem:[#allocation50_spill] sm:$0xff] %v8225_v23  ;;  %v8227_v21 = vpop.f32.mrb[7].mxu1 }
  0xf2   :  { %9575 = vst [vmem:[#allocation51_spill] sm:$0xff] %v8227_v21 }
 0x114   :  { %v895_v14 = vpop.f32.mrb[0].mxu0 }
 0x115   :  { %v897_v19 = vpop.f32.mrb[1].mxu0  ;;  %v6700_v21 = vadd.f32 %v895_v14, %v8237_v20  ;;  %v411_v14 = vld [vmem:[%s9419_s5] sm:$0xf] }
 0x116   :  { %v6701_v23 = vadd.f32 %v897_v19, %v8234_v2  ;;  %v8253_v8 = vrot.slane %v411_v14, %v8232_v27 }
 0x117   :  { %v4828_v42 = vmul.f32 -1.442695, %v6700_v21 }
 0x118   :  { %v4829_v3 = vmul.f32 -1.442695, %v6701_v23  ;;  %9581 = vst [vmem:[#allocation57_spill] sm:$0xff] %v8253_v8 }
 0x11a   :  { %6862 = vpow2.f32 %v4829_v3 }
 0x11b   :  { %6864 = vpow2.f32 %v4828_v42 }
 0x124   :  { %v6863_v13 = vpop.eup %6862 }
 0x125   :  { %v6865_v7 = vpop.eup %6864  ;;  %v984_v52 = vadd.f32 1.0, %v6863_v13  ;;  %v8250_v13 = vrot.slane %v411_v14, %v90_v39 }
 0x126   :  { %v978_v25 = vadd.f32 1.0, %v6865_v7 }
 0x127   :  { %6866 = vrcp.f32 %v984_v52  ;;  %9580 = vst [vmem:[#allocation56_spill] sm:$0xff] %v8250_v13 }
 0x128   :  { %6868 = vrcp.f32 %v978_v25 }
 0x131   :  { %v6867_v42 = vpop.eup %6866 }
 0x132   :  { %v6869_v2 = vpop.eup %6868  ;;  %v994_v25 = vmul.f32 0.0, %v6867_v42 }
 0x134   :  { %v1090_v10 = vpop.f32.mrb[22].mxu0  ;;  %v966_v57 = vpop.f32.mrb[8].mxu1 }
 0x135   :  { %v6724_v21 = vadd.f32 %v966_v57, %v8241_v4  ;;  %v1092_v23 = vpop.f32.mrb[23].mxu0  ;;  %v968_v19 = vpop.f32.mrb[9].mxu1  ;;  %v6754_v3 = vadd.f32 %v1090_v10, %v8253_v8  ;;  %v8260_v10 = vrot.slane %v411_v14, %v94_v44 }
 0x136   :  { %v6725_v12 = vadd.f32 %v968_v19, %v8243_v58  ;;  %v6755_v52 = vadd.f32 %v1092_v23, %v8250_v13  ;;  %v8262_v13 = vrot.slane %v411_v14, %v98_v0 }
 0x137   :  { %6870 = vtanh.f32 %v6724_v21  ;;  %v4832_v20 = vmul.f32 -1.442695, %v6754_v3 }
 0x138   :  { %v4830_v7 = vmul.f32 -1.442695, %v6725_v12  ;;  %v4833_v57 = vmul.f32 -1.442695, %v6755_v52 }
 0x13a   :  { %6872 = vpow2.f32 %v4830_v7 }
 0x13b   :  { %6874 = vpow2.f32 %v4833_v57 }
 0x13c   :  { %6876 = vpow2.f32 %v4832_v20 }
 0x141   :  { %v6871_v4 = vpop.eup %6870 }
 0x142   :  { %v995_v53 = vmul.f32 %v6871_v4, %v6869_v2  ;;  %v8264_v4 = vpop.permute.xlu0 %1002 }
 0x143   :  { %9582 = vst [vmem:[#allocation58_spill] sm:$0xff] %v8264_v4  ;;  %vm1004_vm9 = vcmp.eq.s32.totalorder %v8264_v4, 1  ;;  %v9634_v4 = vld [vmem:[#allocation36_spill] sm:$0xff] }
 0x144   :  { %v8257_v21 = vadd.f32 %v995_v53, %v994_v25  ;;  %v6873_v39 = vpop.eup %6872 }
 0x145   :  { %v991_v19 = vadd.f32 1.0, %v6873_v39  ;;  %v6875_v12 = vpop.eup %6874 }
 0x146   :  { %v6877_v23 = vpop.eup %6876  ;;  %v1179_v7 = vadd.f32 1.0, %v6875_v12 }
 0x147   :  { %6878 = vrcp.f32 %v991_v19  ;;  %v1173_v52 = vadd.f32 1.0, %v6877_v23 }
 0x148   :  { %6880 = vtanh.f32 %v8257_v21 }
 0x149   :  { %6882 = vrcp.f32 %v1179_v7 }
 0x14a   :  { %6884 = vrcp.f32 %v1173_v52 }
 0x151   :  { %v6879_v27 = vpop.eup %6878 }
 0x152   :  { %v6881_v3 = vpop.eup %6880 }
 0x153   :  { %v8266_v53 = vmul.f32 %v6881_v3, %v6879_v27  ;;  %v6883_v27 = vpop.eup %6882 }
 0x154   :  { %v1161_v2 = vpop.f32.mrb[38].mxu1  ;;  %v6885_v14 = vpop.eup %6884  ;;  %v1189_v25 = vmul.f32 0.0, %v6883_v27  ;;  %v9588_v27 = vld [vmem:[#allocation13_spill] sm:$0xff] }
 0x155   :  { %v6770_v20 = vadd.f32 %v1161_v2, %v8260_v10  ;;  %v1163_v42 = vpop.f32.mrb[39].mxu1  ;;  %4886 = vmatmul.mubr.msk.f32.vlgmr.msra.gmra.mrb[2].mxu0 %vm1004_vm9, %v8266_v53  ;;  %4887 = vmatmul.mubr.msk.f32.vlgmr.msra.gmra.mrb[10].mxu1 %vm1004_vm9, %v8266_v53  ;;  %v9583_v2 = vld [vmem:[#allocation42_spill] sm:$0xff] }
 0x156   :  { %v6771_v44 = vadd.f32 %v1163_v42, %v8262_v13  ;;  %5633 = vmatpush1.bf16.msra.mxu0 %v7696_v36  ;;  %5665 = vmatpush1.bf16.msra.mxu1 %v8030_v31  ;;  %v9585_v42 = vld [vmem:[#allocation10_spill] sm:$0xff] }
 0x157   :  { %6886 = vtanh.f32 %v6770_v20  ;;  %5635 = vmatprep.subr.bf16.mxu0 %v7719_v45  ;;  %5667 = vmatprep.subr.bf16.mxu1 %v8034_v49  ;;  %v8314_v20 = vpop.permute.xlu0 %1197 }
 0x158   :  { %v4834_v0 = vmul.f32 -1.442695, %v6771_v44  ;;  %1480 = vmatprep.mubr.f32.mxu0 %v9567_v35  ;;  %1551 = vmatprep.mubr.f32.mxu1 %v9567_v35  ;;  %9584 = vst [vmem:[#allocation42_spill] sm:$0xff] %v8314_v20  ;;  %vm1199_vm10 = vcmp.eq.s32.totalorder %v8314_v20, 1  ;;  %v9586_v44 = vld [vmem:[#allocation11_spill] sm:$0xff] }
 0x159   :  { %v9631_v20 = vld [vmem:[#allocation19_spill] sm:$0xff] }
 0x15a   :  { %6888 = vpow2.f32 %v4834_v0  ;;  %5637 = vmatpush1.bf16.msra.mxu0 %v7741_v55  ;;  %5669 = vmatpush1.bf16.msra.mxu1 %v8052_v61  ;;  %v9587_v0 = vld [vmem:[#allocation12_spill] sm:$0xff] }
 0x15b   :  { %5639 = vmatprep.subr.bf16.mxu0 %v7764_v9  ;;  %5671 = vmatprep.subr.bf16.mxu1 %v8056_v11 }
 0x15e   :  { %5641 = vmatpush1.bf16.msra.mxu0 %v7789_v48  ;;  %5673 = vmatpush1.bf16.msra.mxu1 %v8074_v50 }
 0x15f   :  { %5643 = vmatprep.subr.bf16.mxu0 %v7813_v30  ;;  %5675 = vmatprep.subr.bf16.mxu1 %v8080_v51 }
 0x161   :  { %v6887_v57 = vpop.eup %6886 }
 0x162   :  { %v1190_v39 = vmul.f32 %v6887_v57, %v6885_v14  ;;  %5645 = vmatpush1.bf16.msra.mxu0 %v7836_v62  ;;  %5677 = vmatpush1.bf16.msra.mxu1 %v8097_v28  ;;  %v9589_v14 = vld [vmem:[#allocation14_spill] sm:$0xff]  ;;  %v9590_v57 = vld [vmem:[#allocation16_spill] sm:$0xff] }
 0x163   :  { %5647 = vmatprep.subr.bf16.mxu0 %v7859_v60  ;;  %5679 = vmatprep.subr.bf16.mxu1 %v8103_v6 }
 0x164   :  { %v6889_v19 = vpop.eup %6888  ;;  %v8293_v12 = vadd.f32 %v1190_v39, %v1189_v25  ;;  %v9591_v25 = vld [vmem:[#allocation34_spill] sm:$0xff]  ;;  %v9592_v39 = vld [vmem:[#allocation19_spill] sm:$0xff] }
 0x165   :  { %v1186_v23 = vadd.f32 1.0, %v6889_v19  ;;  %v9593_v19 = vld [vmem:[#allocation35_spill] sm:$0xff] }
 0x166   :  { %6890 = vtanh.f32 %v8293_v12  ;;  %5649 = vmatpush1.bf16.msra.mxu0 %v7879_v15  ;;  %5681 = vmatpush1.bf16.msra.mxu1 %v8126_v29 }
 0x167   :  { %6892 = vrcp.f32 %v1186_v23  ;;  %5651 = vmatprep.subr.bf16.mxu0 %v7909_v32  ;;  %5683 = vmatprep.subr.bf16.mxu1 %v8129_v16  ;;  %v9594_v23 = vld [vmem:[#allocation20_spill] sm:$0xff] }
 0x16a   :  { %5653 = vmatpush1.bf16.msra.mxu0 %v7929_v34  ;;  %5685 = vmatpush1.bf16.msra.mxu1 %v8152_v26 }
 0x16b   :  { %5655 = vmatprep.subr.bf16.mxu0 %v7954_v17  ;;  %5687 = vmatprep.subr.bf16.mxu1 %v8155_v63 }
 0x16e   :  { %5657 = vmatpush1.bf16.msra.mxu0 %v7974_v40  ;;  %5689 = vmatpush1.bf16.msra.mxu1 %v8172_v5 }
 0x16f   :  { %5659 = vmatprep.subr.bf16.mxu0 %v7993_v56  ;;  %5691 = vmatprep.subr.bf16.mxu1 %v8175_v22 }
 0x170   :  { %v6891_v7 = vpop.eup %6890 }
 0x171   :  { %v6893_v52 = vpop.eup %6892 }
 0x172   :  { %v8310_v3 = vmul.f32 %v6893_v52, %v6891_v7  ;;  %5661 = vmatpush1.bf16.msra.mxu0 %v9583_v2  ;;  %5693 = vmatpush1.bf16.msra.mxu1 %v8186_v38  ;;  %v9595_v7 = vld [vmem:[#allocation36_spill] sm:$0xff]  ;;  %v9596_v52 = vld [vmem:[#allocation21_spill] sm:$0xff] }
 0x173   :  { %5695 = vmatprep.subr.bf16.mxu0 %v9585_v42  ;;  %5727 = vmatprep.subr.bf16.mxu1 %v7601_v1 }
 0x175   :  { %4888 = vmatmul.mubr.msk.f32.vlgmr.msra.gmra.mrb[20].mxu0 %vm1199_vm10, %v8310_v3  ;;  %4889 = vmatmul.mubr.msk.f32.vlgmr.msra.gmra.mrb[36].mxu1 %vm1199_vm10, %v8310_v3 }
 0x176   :  { %5697 = vmatpush1.bf16.msra.mxu0 %v9586_v44  ;;  %5729 = vmatpush1.bf16.msra.mxu1 %v7694_v33 }
 0x177   :  { %5699 = vmatprep.subr.bf16.mxu0 %v9587_v0  ;;  %5731 = vmatprep.subr.bf16.mxu1 %v7706_v41 }
 0x178   :  { %1676 = vmatprep.mubr.f32.mxu0 %v9567_v35  ;;  %1747 = vmatprep.mubr.f32.mxu1 %v9567_v35 }
 0x17a   :  { %5701 = vmatpush1.bf16.msra.mxu0 %v9588_v27  ;;  %5733 = vmatpush1.bf16.msra.mxu1 %v7739_v54 }
 0x17b   :  { %5703 = vmatprep.subr.bf16.mxu0 %v9589_v14  ;;  %5735 = vmatprep.subr.bf16.mxu1 %v7751_v59  ;;  %v9609_v59 = vld [vmem:[#allocation53_spill] sm:$0xff] }
 0x17e   :  { %5705 = vmatpush1.bf16.msra.mxu0 %v7523_v37  ;;  %5737 = vmatpush1.bf16.msra.mxu1 %v7787_v18  ;;  %v9608_v18 = vld [vmem:[#allocation54_spill] sm:$0xff] }
 0x17f   :  { %5707 = vmatprep.subr.bf16.mxu0 %v9590_v57  ;;  %5739 = vmatprep.subr.bf16.mxu1 %v7800_v24  ;;  %v9597_v57 = vld [vmem:[#allocation37_spill] sm:$0xff]  ;;  %v9598_v24 = vld [vmem:[#allocation22_spill] sm:$0xff] }
 0x182   :  { %5709 = vmatpush1.bf16.msra.mxu0 %v7553_v46  ;;  %5741 = vmatpush1.bf16.msra.mxu1 %v7834_v43  ;;  %v9599_v46 = vld [vmem:[#allocation38_spill] sm:$0xff]  ;;  %v9600_v43 = vld [vmem:[#allocation23_spill] sm:$0xff] }
 0x183   :  { %5711 = vmatprep.subr.bf16.mxu0 %v7557_v47  ;;  %5743 = vmatprep.subr.bf16.mxu1 %v9591_v25  ;;  %v9601_v47 = vld [vmem:[#allocation39_spill] sm:$0xff]  ;;  %v9602_v25 = vld [vmem:[#allocation24_spill] sm:$0xff] }
 0x186   :  { %5713 = vmatpush1.bf16.msra.mxu0 %v9592_v39  ;;  %5745 = vmatpush1.bf16.msra.mxu1 %v9593_v19  ;;  %v9603_v39 = vld [vmem:[#allocation40_spill] sm:$0xff]  ;;  %v9604_v19 = vld [vmem:[#allocation25_spill] sm:$0xff] }
 0x187   :  { %5715 = vmatprep.subr.bf16.mxu0 %v9594_v23  ;;  %5747 = vmatprep.subr.bf16.mxu1 %v9595_v7  ;;  %v9605_v23 = vld [vmem:[#allocation41_spill] sm:$0xff]  ;;  %v9606_v7 = vld [vmem:[#allocation26_spill] sm:$0xff] }
 0x18a   :  { %5717 = vmatpush1.bf16.msra.mxu0 %v9596_v52  ;;  %5749 = vmatpush1.bf16.msra.mxu1 %v9597_v57  ;;  %v9607_v52 = vld [vmem:[#allocation43_spill] sm:$0xff] }
 0x18b   :  { %5719 = vmatprep.subr.bf16.mxu0 %v9598_v24  ;;  %5751 = vmatprep.subr.bf16.mxu1 %v9599_v46 }
 0x18e   :  { %5721 = vmatpush1.bf16.msra.mxu0 %v9600_v43  ;;  %5753 = vmatpush1.bf16.msra.mxu1 %v9601_v47 }
 0x18f   :  { %5723 = vmatprep.subr.bf16.mxu0 %v9602_v25  ;;  %5755 = vmatprep.subr.bf16.mxu1 %v9603_v39 }
 0x192   :  { %5725 = vmatpush1.bf16.msra.mxu0 %v9604_v19  ;;  %5757 = vmatpush1.bf16.msra.mxu1 %v9605_v23  ;;  %v9610_v23 = vld [vmem:[#allocation55_spill] sm:$0xff] }
 0x193   :  { %5759 = vmatprep.subr.bf16.mxu0 %v9606_v7  ;;  %5791 = vmatprep.subr.bf16.mxu1 %v9607_v52 }
 0x228   :  { %v1286_v57 = vpop.f32.mrb[2].mxu0  ;;  %v1357_v24 = vpop.f32.mrb[10].mxu1 }
 0x229   :  { %v6702_v46 = vadd.f32 %v1286_v57, %v9608_v18  ;;  %v1288_v37 = vpop.f32.mrb[3].mxu0  ;;  %v1359_v43 = vpop.f32.mrb[11].mxu1  ;;  %v6726_v54 = vadd.f32 %v1357_v24, %v9610_v23 }
 0x22a   :  { %v6703_v47 = vadd.f32 %v1288_v37, %v9609_v59  ;;  %v6727_v19 = vadd.f32 %v1359_v43, %v8243_v58 }
 0x22b   :  { %v4836_v14 = vmul.f32 -1.442695, %v6702_v46 }
 0x22c   :  { %v4837_v25 = vmul.f32 -1.442695, %v6703_v47  ;;  %v4838_v39 = vmul.f32 -1.442695, %v6727_v19  ;;  %v1007_v47 = vsel %vm1004_vm9, %v8257_v21, 0.0 }
 0x22d   :  { %6894 = vpow2.f32 %v4836_v14 }
 0x22e   :  { %6896 = vpow2.f32 %v4837_v25  ;;  %v8366_v25 = vpop.permute.xlu1 %1393 }
 0x22f   :  { %6898 = vpow2.f32 %v4838_v39  ;;  %9611 = vst [vmem:[#allocation10_spill] sm:$0xff] %v8366_v25  ;;  %vm1395_vm11 = vcmp.eq.s32.totalorder %v8366_v25, 1  ;;  %v9635_v25 = vld [vmem:[#allocation21_spill] sm:$0xff] }
 0x230   :  { %6900 = vtanh.f32 %v6726_v54 }
 0x237   :  { %v6895_v7 = vpop.eup %6894 }
 0x238   :  { %v6897_v27 = vpop.eup %6896  ;;  %v1369_v52 = vadd.f32 1.0, %v6895_v7 }
 0x239   :  { %v1375_v41 = vadd.f32 1.0, %v6897_v27  ;;  %v6899_v57 = vpop.eup %6898 }
 0x23a   :  { %6902 = vrcp.f32 %v1369_v52  ;;  %v6901_v18 = vpop.eup %6900  ;;  %v1382_v14 = vadd.f32 1.0, %v6899_v57  ;;  %v9612_v52 = vld [vmem:[#allocation56_spill] sm:$0xff] }
 0x23b   :  { %6904 = vrcp.f32 %v1375_v41 }
 0x23c   :  { %6906 = vrcp.f32 %v1382_v14 }
 0x244   :  { %v6903_v37 = vpop.eup %6902 }
 0x245   :  { %v6905_v46 = vpop.eup %6904  ;;  %v1386_v43 = vmul.f32 %v6903_v37, %v6901_v18 }
 0x246   :  { %v1385_v24 = vmul.f32 %v6905_v46, %v1007_v47  ;;  %v6907_v46 = vpop.eup %6906 }
 0x248   :  { %v1387_v39 = vadd.f32 %v1386_v43, %v1385_v24  ;;  %v1482_v54 = vpop.f32.mrb[20].mxu0  ;;  %v1553_v27 = vpop.f32.mrb[36].mxu1 }
 0x249   :  { %v6752_v41 = vadd.f32 %v1482_v54, %v8253_v8  ;;  %v1484_v19 = vpop.f32.mrb[21].mxu0  ;;  %v1555_v7 = vpop.f32.mrb[37].mxu1  ;;  %v6768_v24 = vadd.f32 %v1553_v27, %v8260_v10 }
 0x24a   :  { %v6753_v23 = vadd.f32 %v1484_v19, %v9612_v52  ;;  %6908 = vtanh.f32 %v1387_v39  ;;  %v8373_v18 = vsel %vm1395_vm11, %v1387_v39, %v1007_v47  ;;  %v6769_v37 = vadd.f32 %v1555_v7, %v8262_v13 }
 0x24b   :  { %v4840_v21 = vmul.f32 -1.442695, %v6752_v41  ;;  %v8380_v19 = vsel %vm1004_vm9, %v8266_v53, 0.0 }
 0x24c   :  { %v4841_v57 = vmul.f32 -1.442695, %v6753_v23  ;;  %v4842_v14 = vmul.f32 -1.442695, %v6769_v37  ;;  %9613 = vst [vmem:[#allocation11_spill] sm:$0xff] %v8380_v19 }
 0x24d   :  { %6910 = vpow2.f32 %v4840_v21  ;;  %v1202_v21 = vsel %vm1199_vm10, %v8293_v12, 0.0 }
 0x24e   :  { %6912 = vpow2.f32 %v4841_v57 }
 0x24f   :  { %6914 = vpow2.f32 %v4842_v14 }
 0x250   :  { %6916 = vtanh.f32 %v6768_v24 }
 0x254   :  { %v6909_v43 = vpop.eup %6908 }
 0x255   :  { %v1389_v54 = vmul.f32 %v6909_v43, %v6907_v46  ;;  %v8410_v43 = vpop.permute.xlu1 %1589 }
 0x256   :  { %9615 = vst [vmem:[#allocation59_spill] sm:$0xff] %v8410_v43  ;;  %vm1591_vm12 = vcmp.eq.s32.totalorder %v8410_v43, 1  ;;  %v9636_v43 = vld [vmem:[#allocation37_spill] sm:$0xff] }
 0x257   :  { %v6911_v52 = vpop.eup %6910  ;;  %v8385_v23 = vsel %vm1395_vm11, %v1389_v54, %v8380_v19  ;;  %v9632_v19 = vld [vmem:[#allocation35_spill] sm:$0xff] }
 0x258   :  { %9614 = vst [vmem:[#allocation53_spill] sm:$0xff] %v8385_v23  ;;  %v6913_v47 = vpop.eup %6912  ;;  %v1565_v39 = vadd.f32 1.0, %v6911_v52  ;;  %1677 = vmatmul.mubr.f32.vlgmr.msra.gmra.mrb[4].mxu0 %v8385_v23  ;;  %1748 = vmatmul.mubr.f32.vlgmr.msra.gmra.mrb[12].mxu1 %v8385_v23 }
 0x259   :  { %v1571_v27 = vadd.f32 1.0, %v6913_v47  ;;  %5761 = vmatpush1.bf16.msra.mxu0 %v7696_v36  ;;  %5793 = vmatpush1.bf16.msra.mxu1 %v8030_v31  ;;  %v6915_v53 = vpop.eup %6914 }
 0x25a   :  { %6918 = vrcp.f32 %v1565_v39  ;;  %5763 = vmatprep.subr.bf16.mxu0 %v7719_v45  ;;  %5795 = vmatprep.subr.bf16.mxu1 %v8034_v49  ;;  %v6917_v41 = vpop.eup %6916  ;;  %v1578_v37 = vadd.f32 1.0, %v6915_v53  ;;  %v8434_v39 = vsel %vm1199_vm10, %v8310_v3, 0.0  ;;  %v9618_v3 = vld [vmem:[#allocation27_spill] sm:$0xff]  ;;  %v9619_v53 = vld [vmem:[#allocation13_spill] sm:$0xff] }
 0x25b   :  { %6920 = vrcp.f32 %v1571_v27  ;;  %1872 = vmatprep.mubr.f32.mxu0 %v9567_v35  ;;  %1943 = vmatprep.mubr.f32.mxu1 %v9567_v35  ;;  %9616 = vst [vmem:[#allocation60_spill] sm:$0xff] %v8434_v39 }
 0x25c   :  { %6922 = vrcp.f32 %v1578_v37  ;;  %v9625_v37 = vld [vmem:[#allocation16_spill] sm:$0xff] }
 0x25d   :  { %5765 = vmatpush1.bf16.msra.mxu0 %v7741_v55  ;;  %5797 = vmatpush1.bf16.msra.mxu1 %v8052_v61 }
 0x25e   :  { %5767 = vmatprep.subr.bf16.mxu0 %v7764_v9  ;;  %5799 = vmatprep.subr.bf16.mxu1 %v8056_v11 }
 0x261   :  { %5769 = vmatpush1.bf16.msra.mxu0 %v7789_v48  ;;  %5801 = vmatpush1.bf16.msra.mxu1 %v8074_v50 }
 0x262   :  { %5771 = vmatprep.subr.bf16.mxu0 %v7813_v30  ;;  %5803 = vmatprep.subr.bf16.mxu1 %v8080_v51 }
 0x264   :  { %v6919_v7 = vpop.eup %6918 }
 0x265   :  { %v6921_v52 = vpop.eup %6920  ;;  %v1582_v57 = vmul.f32 %v6919_v7, %v6917_v41  ;;  %5773 = vmatpush1.bf16.msra.mxu0 %v7836_v62  ;;  %5805 = vmatpush1.bf16.msra.mxu1 %v8097_v28  ;;  %v9620_v41 = vld [vmem:[#allocation29_spill] sm:$0xff]  ;;  %v9621_v7 = vld [vmem:[#allocation14_spill] sm:$0xff] }
 0x266   :  { %v1581_v46 = vmul.f32 %v6921_v52, %v1202_v21  ;;  %5775 = vmatprep.subr.bf16.mxu0 %v7859_v60  ;;  %5807 = vmatprep.subr.bf16.mxu1 %v8103_v6  ;;  %v6923_v24 = vpop.eup %6922  ;;  %v9622_v52 = vld [vmem:[#allocation30_spill] sm:$0xff] }
 0x268   :  { %v1583_v14 = vadd.f32 %v1582_v57, %v1581_v46  ;;  %v9624_v57 = vld [vmem:[#allocation31_spill] sm:$0xff]  ;;  %v9626_v46 = vld [vmem:[#allocation32_spill] sm:$0xff] }
 0x269   :  { %5777 = vmatpush1.bf16.msra.mxu0 %v7879_v15  ;;  %5809 = vmatpush1.bf16.msra.mxu1 %v8126_v29 }
 0x26a   :  { %5779 = vmatprep.subr.bf16.mxu0 %v7909_v32  ;;  %5811 = vmatprep.subr.bf16.mxu1 %v8129_v16  ;;  %6924 = vtanh.f32 %v1583_v14  ;;  %v8419_v12 = vsel %vm1591_vm12, %v1583_v14, %v1202_v21  ;;  %v9623_v21 = vld [vmem:[#allocation15_spill] sm:$0xff]  ;;  %v9627_v14 = vld [vmem:[#allocation17_spill] sm:$0xff] }
 0x26d   :  { %5781 = vmatpush1.bf16.msra.mxu0 %v7929_v34  ;;  %5813 = vmatpush1.bf16.msra.mxu1 %v8152_v26 }
 0x26e   :  { %5783 = vmatprep.subr.bf16.mxu0 %v7954_v17  ;;  %5815 = vmatprep.subr.bf16.mxu1 %v8155_v63 }
 0x271   :  { %5785 = vmatpush1.bf16.msra.mxu0 %v7974_v40  ;;  %5817 = vmatpush1.bf16.msra.mxu1 %v8172_v5 }
 0x272   :  { %5787 = vmatprep.subr.bf16.mxu0 %v7993_v56  ;;  %5819 = vmatprep.subr.bf16.mxu1 %v8175_v22 }
 0x274   :  { %v6925_v54 = vpop.eup %6924 }
 0x275   :  { %5789 = vmatpush1.bf16.msra.mxu0 %v9583_v2  ;;  %5821 = vmatpush1.bf16.msra.mxu1 %v8186_v38  ;;  %v1585_v47 = vmul.f32 %v6925_v54, %v6923_v24  ;;  %v9628_v24 = vld [vmem:[#allocation33_spill] sm:$0xff]  ;;  %v9629_v54 = vld [vmem:[#allocation18_spill] sm:$0xff] }
 0x276   :  { %5823 = vmatprep.subr.bf16.mxu0 %v9585_v42  ;;  %5855 = vmatprep.subr.bf16.mxu1 %v7601_v1 }
 0x277   :  { %v8441_v27 = vsel %vm1591_vm12, %v1585_v47, %v8434_v39  ;;  %v9630_v47 = vld [vmem:[#allocation34_spill] sm:$0xff]  ;;  %v9633_v39 = vld [vmem:[#allocation20_spill] sm:$0xff] }
 0x278   :  { %9617 = vst [vmem:[#allocation61_spill] sm:$0xff] %v8441_v27  ;;  %1873 = vmatmul.mubr.f32.vlgmr.msra.gmra.mrb[18].mxu0 %v8441_v27  ;;  %1944 = vmatmul.mubr.f32.vlgmr.msra.gmra.mrb[34].mxu1 %v8441_v27 }
 0x279   :  { %5825 = vmatpush1.bf16.msra.mxu0 %v9586_v44  ;;  %5857 = vmatpush1.bf16.msra.mxu1 %v7694_v33 }
 0x27a   :  { %5827 = vmatprep.subr.bf16.mxu0 %v9587_v0  ;;  %5859 = vmatprep.subr.bf16.mxu1 %v9618_v3 }
 0x27b   :  { %2068 = vmatprep.mubr.f32.mxu0 %v9567_v35  ;;  %2139 = vmatprep.mubr.f32.mxu1 %v9567_v35 }
 0x27d   :  { %5829 = vmatpush1.bf16.msra.mxu0 %v9619_v53  ;;  %5861 = vmatpush1.bf16.msra.mxu1 %v9620_v41 }
 0x27e   :  { %5831 = vmatprep.subr.bf16.mxu0 %v9621_v7  ;;  %5863 = vmatprep.subr.bf16.mxu1 %v9622_v52 }
 0x281   :  { %5833 = vmatpush1.bf16.msra.mxu0 %v9623_v21  ;;  %5865 = vmatpush1.bf16.msra.mxu1 %v9624_v57 }
 0x282   :  { %5835 = vmatprep.subr.bf16.mxu0 %v9625_v37  ;;  %5867 = vmatprep.subr.bf16.mxu1 %v9626_v46  ;;  %v9637_v46 = vld [vmem:[#allocation22_spill] sm:$0xff] }
 0x283   :  { %v9647_v37 = vld [vmem:[#allocation54_spill] sm:$0xff] }
 0x285   :  { %5837 = vmatpush1.bf16.msra.mxu0 %v9627_v14  ;;  %5869 = vmatpush1.bf16.msra.mxu1 %v9628_v24  ;;  %v9638_v14 = vld [vmem:[#allocation38_spill] sm:$0xff]  ;;  %v9639_v24 = vld [vmem:[#allocation23_spill] sm:$0xff] }
 0x286   :  { %5839 = vmatprep.subr.bf16.mxu0 %v9629_v54  ;;  %5871 = vmatprep.subr.bf16.mxu1 %v9630_v47  ;;  %v9640_v54 = vld [vmem:[#allocation39_spill] sm:$0xff]  ;;  %v9641_v47 = vld [vmem:[#allocation24_spill] sm:$0xff] }
 0x289   :  { %5841 = vmatpush1.bf16.msra.mxu0 %v9631_v20  ;;  %5873 = vmatpush1.bf16.msra.mxu1 %v9632_v19  ;;  %v9642_v20 = vld [vmem:[#allocation40_spill] sm:$0xff]  ;;  %v9643_v19 = vld [vmem:[#allocation25_spill] sm:$0xff] }
 0x28a   :  { %5843 = vmatprep.subr.bf16.mxu0 %v9633_v39  ;;  %5875 = vmatprep.subr.bf16.mxu1 %v9634_v4  ;;  %v9644_v39 = vld [vmem:[#allocation41_spill] sm:$0xff]  ;;  %v9645_v4 = vld [vmem:[#allocation26_spill] sm:$0xff] }
 0x28d   :  { %5845 = vmatpush1.bf16.msra.mxu0 %v9635_v25  ;;  %5877 = vmatpush1.bf16.msra.mxu1 %v9636_v43  ;;  %v9646_v25 = vld [vmem:[#allocation43_spill] sm:$0xff] }
 0x28e   :  { %5847 = vmatprep.subr.bf16.mxu0 %v9637_v46  ;;  %5879 = vmatprep.subr.bf16.mxu1 %v9638_v14 }
 0x291   :  { %5849 = vmatpush1.bf16.msra.mxu0 %v9639_v24  ;;  %5881 = vmatpush1.bf16.msra.mxu1 %v9640_v54 }
 0x292   :  { %5851 = vmatprep.subr.bf16.mxu0 %v9641_v47  ;;  %5883 = vmatprep.subr.bf16.mxu1 %v9642_v20 }
 0x295   :  { %5853 = vmatpush1.bf16.msra.mxu0 %v9643_v19  ;;  %5885 = vmatpush1.bf16.msra.mxu1 %v9644_v39  ;;  %v9648_v39 = vld [vmem:[#allocation55_spill] sm:$0xff] }
 0x296   :  { %5887 = vmatprep.subr.bf16.mxu0 %v9645_v4  ;;  %5919 = vmatprep.subr.bf16.mxu1 %v9646_v25 }
 0x32b   :  { %v1678_v43 = vpop.f32.mrb[4].mxu0  ;;  %v1749_v46 = vpop.f32.mrb[12].mxu1 }
 0x32c   :  { %v6704_v14 = vadd.f32 %v1678_v43, %v9647_v37  ;;  %v1680_v57 = vpop.f32.mrb[5].mxu0  ;;  %v1751_v24 = vpop.f32.mrb[13].mxu1  ;;  %v6728_v52 = vadd.f32 %v1749_v46, %v9648_v39 }
 0x32d   :  { %v6705_v54 = vadd.f32 %v1680_v57, %v9609_v59  ;;  %v6729_v19 = vadd.f32 %v1751_v24, %v8243_v58  ;;  %v8484_v24 = vpop.permute.xlu0 %1785 }
 0x32e   :  { %v4844_v21 = vmul.f32 -1.442695, %v6704_v14  ;;  %9649 = vst [vmem:[#allocation62_spill] sm:$0xff] %v8484_v24  ;;  %vm1787_vm13 = vcmp.eq.s32.totalorder %v8484_v24, 1  ;;  %v9669_v24 = vld [vmem:[#allocation21_spill] sm:$0xff] }
 0x32f   :  { %v4845_v47 = vmul.f32 -1.442695, %v6705_v54  ;;  %v4846_v20 = vmul.f32 -1.442695, %v6729_v19 }
 0x330   :  { %6926 = vpow2.f32 %v4844_v21 }
 0x331   :  { %6928 = vpow2.f32 %v4845_v47 }
 0x332   :  { %6930 = vpow2.f32 %v4846_v20 }
 0x333   :  { %6932 = vtanh.f32 %v6728_v52 }
 0x33a   :  { %v6927_v4 = vpop.eup %6926 }
 0x33b   :  { %v6929_v7 = vpop.eup %6928  ;;  %v1761_v25 = vadd.f32 1.0, %v6927_v4 }
 0x33c   :  { %v1767_v41 = vadd.f32 1.0, %v6929_v7  ;;  %v6931_v43 = vpop.eup %6930 }
 0x33d   :  { %6934 = vrcp.f32 %v1761_v25  ;;  %v6933_v37 = vpop.eup %6932  ;;  %v1774_v21 = vadd.f32 1.0, %v6931_v43 }
 0x33e   :  { %6936 = vrcp.f32 %v1767_v41  ;;  %v9650_v41 = vld [vmem:[#allocation56_spill] sm:$0xff] }
 0x33f   :  { %6938 = vrcp.f32 %v1774_v21 }
 0x347   :  { %v6935_v57 = vpop.eup %6934 }
 0x348   :  { %v6937_v14 = vpop.eup %6936  ;;  %v1778_v54 = vmul.f32 %v6935_v57, %v6933_v37 }
 0x349   :  { %v1777_v47 = vmul.f32 %v6937_v14, %v8373_v18  ;;  %v6939_v14 = vpop.eup %6938 }
 0x34b   :  { %v1779_v19 = vadd.f32 %v1778_v54, %v1777_v47  ;;  %v1874_v46 = vpop.f32.mrb[18].mxu0  ;;  %v1945_v39 = vpop.f32.mrb[34].mxu1 }
 0x34c   :  { %v6750_v4 = vadd.f32 %v1874_v46, %v8253_v8  ;;  %v1876_v20 = vpop.f32.mrb[19].mxu0  ;;  %v1947_v25 = vpop.f32.mrb[35].mxu1  ;;  %v6766_v47 = vadd.f32 %v1945_v39, %v8260_v10 }
 0x34d   :  { %v6751_v7 = vadd.f32 %v1876_v20, %v9650_v41  ;;  %6940 = vtanh.f32 %v1779_v19  ;;  %v8492_v52 = vsel %vm1787_vm13, %v1779_v19, %v8373_v18  ;;  %v6767_v57 = vadd.f32 %v1947_v25, %v8262_v13 }
 0x34e   :  { %v4848_v37 = vmul.f32 -1.442695, %v6750_v4 }
 0x34f   :  { %v4849_v43 = vmul.f32 -1.442695, %v6751_v7  ;;  %v4850_v21 = vmul.f32 -1.442695, %v6767_v57 }
 0x350   :  { %6942 = vpow2.f32 %v4848_v37 }
 0x351   :  { %6944 = vpow2.f32 %v4849_v43 }
 0x352   :  { %6946 = vpow2.f32 %v4850_v21 }
 0x353   :  { %6948 = vtanh.f32 %v6766_v47 }
 0x357   :  { %v6941_v54 = vpop.eup %6940 }
 0x358   :  { %v1781_v46 = vmul.f32 %v6941_v54, %v6939_v14  ;;  %v8522_v14 = vpop.permute.xlu1 %1981 }
 0x359   :  { %9652 = vst [vmem:[#allocation63_spill] sm:$0xff] %v8522_v14  ;;  %vm1983_vm14 = vcmp.eq.s32.totalorder %v8522_v14, 1  ;;  %v9670_v14 = vld [vmem:[#allocation37_spill] sm:$0xff] }
 0x35a   :  { %v6943_v8 = vpop.eup %6942  ;;  %v8499_v20 = vsel %vm1787_vm13, %v1781_v46, %v8385_v23  ;;  %v9667_v23 = vld [vmem:[#allocation20_spill] sm:$0xff] }
 0x35b   :  { %9651 = vst [vmem:[#allocation56_spill] sm:$0xff] %v8499_v20  ;;  %v6945_v18 = vpop.eup %6944  ;;  %v1957_v19 = vadd.f32 1.0, %v6943_v8  ;;  %2069 = vmatmul.mubr.f32.vlgmr.msra.gmra.mrb[6].mxu0 %v8499_v20  ;;  %2140 = vmatmul.mubr.f32.vlgmr.msra.gmra.mrb[14].mxu1 %v8499_v20 }
 0x35c   :  { %v1963_v4 = vadd.f32 1.0, %v6945_v18  ;;  %5889 = vmatpush1.bf16.msra.mxu0 %v7696_v36  ;;  %5921 = vmatpush1.bf16.msra.mxu1 %v8030_v31  ;;  %v6947_v8 = vpop.eup %6946 }
 0x35d   :  { %6950 = vrcp.f32 %v1957_v19  ;;  %5891 = vmatprep.subr.bf16.mxu0 %v7719_v45  ;;  %5923 = vmatprep.subr.bf16.mxu1 %v8034_v49  ;;  %v6949_v39 = vpop.eup %6948  ;;  %v1970_v43 = vadd.f32 1.0, %v6947_v8  ;;  %v9654_v19 = vld [vmem:[#allocation29_spill] sm:$0xff]  ;;  %v9656_v8 = vld [vmem:[#allocation30_spill] sm:$0xff] }
 0x35e   :  { %6952 = vrcp.f32 %v1963_v4  ;;  %2264 = vmatprep.mubr.f32.mxu0 %v9567_v35  ;;  %2335 = vmatprep.mubr.f32.mxu1 %v9567_v35  ;;  %v9655_v4 = vld [vmem:[#allocation14_spill] sm:$0xff] }
 0x35f   :  { %6954 = vrcp.f32 %v1970_v43  ;;  %v9661_v43 = vld [vmem:[#allocation17_spill] sm:$0xff] }
 0x360   :  { %5893 = vmatpush1.bf16.msra.mxu0 %v7741_v55  ;;  %5925 = vmatpush1.bf16.msra.mxu1 %v8052_v61 }
 0x361   :  { %5895 = vmatprep.subr.bf16.mxu0 %v7764_v9  ;;  %5927 = vmatprep.subr.bf16.mxu1 %v8056_v11 }
 0x364   :  { %5897 = vmatpush1.bf16.msra.mxu0 %v7789_v48  ;;  %5929 = vmatpush1.bf16.msra.mxu1 %v8074_v50 }
 0x365   :  { %5899 = vmatprep.subr.bf16.mxu0 %v7813_v30  ;;  %5931 = vmatprep.subr.bf16.mxu1 %v8080_v51 }
 0x367   :  { %v6951_v25 = vpop.eup %6950 }
 0x368   :  { %v6953_v7 = vpop.eup %6952  ;;  %v1974_v37 = vmul.f32 %v6951_v25, %v6949_v39  ;;  %5901 = vmatpush1.bf16.msra.mxu0 %v7836_v62  ;;  %5933 = vmatpush1.bf16.msra.mxu1 %v8097_v28  ;;  %v9657_v39 = vld [vmem:[#allocation15_spill] sm:$0xff] }
 0x369   :  { %v1973_v57 = vmul.f32 %v6953_v7, %v8419_v12  ;;  %5903 = vmatprep.subr.bf16.mxu0 %v7859_v60  ;;  %5935 = vmatprep.subr.bf16.mxu1 %v8103_v6  ;;  %v6955_v47 = vpop.eup %6954  ;;  %v9658_v25 = vld [vmem:[#allocation31_spill] sm:$0xff]  ;;  %v9659_v7 = vld [vmem:[#allocation16_spill] sm:$0xff] }
 0x36b   :  { %v1975_v54 = vadd.f32 %v1974_v37, %v1973_v57  ;;  %v9660_v37 = vld [vmem:[#allocation32_spill] sm:$0xff]  ;;  %v9662_v57 = vld [vmem:[#allocation33_spill] sm:$0xff] }
 0x36c   :  { %5905 = vmatpush1.bf16.msra.mxu0 %v7879_v15  ;;  %5937 = vmatpush1.bf16.msra.mxu1 %v8126_v29 }
 0x36d   :  { %5907 = vmatprep.subr.bf16.mxu0 %v7909_v32  ;;  %5939 = vmatprep.subr.bf16.mxu1 %v8129_v16  ;;  %6956 = vtanh.f32 %v1975_v54  ;;  %v8532_v21 = vsel %vm1983_vm14, %v1975_v54, %v8419_v12  ;;  %v9663_v54 = vld [vmem:[#allocation18_spill] sm:$0xff] }
 0x370   :  { %5909 = vmatpush1.bf16.msra.mxu0 %v7929_v34  ;;  %5941 = vmatpush1.bf16.msra.mxu1 %v8152_v26 }
 0x371   :  { %5911 = vmatprep.subr.bf16.mxu0 %v7954_v17  ;;  %5943 = vmatprep.subr.bf16.mxu1 %v8155_v63 }
 0x374   :  { %5913 = vmatpush1.bf16.msra.mxu0 %v7974_v40  ;;  %5945 = vmatpush1.bf16.msra.mxu1 %v8172_v5 }
 0x375   :  { %5915 = vmatprep.subr.bf16.mxu0 %v7993_v56  ;;  %5947 = vmatprep.subr.bf16.mxu1 %v8175_v22 }
 0x377   :  { %v6957_v46 = vpop.eup %6956 }
 0x378   :  { %5917 = vmatpush1.bf16.msra.mxu0 %v9583_v2  ;;  %5949 = vmatpush1.bf16.msra.mxu1 %v8186_v38  ;;  %v1977_v12 = vmul.f32 %v6957_v46, %v6955_v47  ;;  %v9664_v47 = vld [vmem:[#allocation34_spill] sm:$0xff]  ;;  %v9665_v46 = vld [vmem:[#allocation19_spill] sm:$0xff] }
 0x379   :  { %5951 = vmatprep.subr.bf16.mxu0 %v9585_v42  ;;  %5983 = vmatprep.subr.bf16.mxu1 %v7601_v1 }
 0x37a   :  { %v8549_v18 = vsel %vm1983_vm14, %v1977_v12, %v8441_v27  ;;  %v9666_v12 = vld [vmem:[#allocation35_spill] sm:$0xff]  ;;  %v9668_v27 = vld [vmem:[#allocation36_spill] sm:$0xff] }
 0x37b   :  { %9653 = vst [vmem:[#allocation64_spill] sm:$0xff] %v8549_v18  ;;  %2265 = vmatmul.mubr.f32.vlgmr.msra.gmra.mrb[16].mxu0 %v8549_v18  ;;  %2336 = vmatmul.mubr.f32.vlgmr.msra.gmra.mrb[32].mxu1 %v8549_v18 }
 0x37c   :  { %5953 = vmatpush1.bf16.msra.mxu0 %v9586_v44  ;;  %5985 = vmatpush1.bf16.msra.mxu1 %v7694_v33 }
 0x37d   :  { %5955 = vmatprep.subr.bf16.mxu0 %v9587_v0  ;;  %5987 = vmatprep.subr.bf16.mxu1 %v9618_v3 }
 0x37e   :  { %2460 = vmatprep.mubr.f32.mxu0 %v9567_v35  ;;  %2531 = vmatprep.mubr.f32.mxu1 %v9567_v35 }
 0x380   :  { %5957 = vmatpush1.bf16.msra.mxu0 %v9619_v53  ;;  %5989 = vmatpush1.bf16.msra.mxu1 %v9654_v19 }
 0x381   :  { %5959 = vmatprep.subr.bf16.mxu0 %v9655_v4  ;;  %5991 = vmatprep.subr.bf16.mxu1 %v9656_v8 }
 0x384   :  { %5961 = vmatpush1.bf16.msra.mxu0 %v9657_v39  ;;  %5993 = vmatpush1.bf16.msra.mxu1 %v9658_v25 }
 0x385   :  { %5963 = vmatprep.subr.bf16.mxu0 %v9659_v7  ;;  %5995 = vmatprep.subr.bf16.mxu1 %v9660_v37  ;;  %v9671_v37 = vld [vmem:[#allocation22_spill] sm:$0xff] }
 0x386   :  { %v9681_v7 = vld [vmem:[#allocation54_spill] sm:$0xff] }
 0x388   :  { %5965 = vmatpush1.bf16.msra.mxu0 %v9661_v43  ;;  %5997 = vmatpush1.bf16.msra.mxu1 %v9662_v57  ;;  %v9672_v43 = vld [vmem:[#allocation38_spill] sm:$0xff]  ;;  %v9673_v57 = vld [vmem:[#allocation23_spill] sm:$0xff] }
 0x389   :  { %5967 = vmatprep.subr.bf16.mxu0 %v9663_v54  ;;  %5999 = vmatprep.subr.bf16.mxu1 %v9664_v47  ;;  %v9674_v54 = vld [vmem:[#allocation39_spill] sm:$0xff]  ;;  %v9675_v47 = vld [vmem:[#allocation24_spill] sm:$0xff] }
 0x38c   :  { %5969 = vmatpush1.bf16.msra.mxu0 %v9665_v46  ;;  %6001 = vmatpush1.bf16.msra.mxu1 %v9666_v12  ;;  %v9676_v46 = vld [vmem:[#allocation40_spill] sm:$0xff]  ;;  %v9677_v12 = vld [vmem:[#allocation25_spill] sm:$0xff] }
 0x38d   :  { %5971 = vmatprep.subr.bf16.mxu0 %v9667_v23  ;;  %6003 = vmatprep.subr.bf16.mxu1 %v9668_v27  ;;  %v9678_v23 = vld [vmem:[#allocation41_spill] sm:$0xff]  ;;  %v9679_v27 = vld [vmem:[#allocation26_spill] sm:$0xff] }
 0x390   :  { %5973 = vmatpush1.bf16.msra.mxu0 %v9669_v24  ;;  %6005 = vmatpush1.bf16.msra.mxu1 %v9670_v14  ;;  %v9680_v24 = vld [vmem:[#allocation43_spill] sm:$0xff] }
 0x391   :  { %5975 = vmatprep.subr.bf16.mxu0 %v9671_v37  ;;  %6007 = vmatprep.subr.bf16.mxu1 %v9672_v43 }
 0x394   :  { %5977 = vmatpush1.bf16.msra.mxu0 %v9673_v57  ;;  %6009 = vmatpush1.bf16.msra.mxu1 %v9674_v54 }
 0x395   :  { %5979 = vmatprep.subr.bf16.mxu0 %v9675_v47  ;;  %6011 = vmatprep.subr.bf16.mxu1 %v9676_v46 }
 0x398   :  { %5981 = vmatpush1.bf16.msra.mxu0 %v9677_v12  ;;  %6013 = vmatpush1.bf16.msra.mxu1 %v9678_v23  ;;  %v9682_v23 = vld [vmem:[#allocation55_spill] sm:$0xff] }
 0x399   :  { %6015 = vmatprep.subr.bf16.mxu0 %v9679_v27  ;;  %6047 = vmatprep.subr.bf16.mxu1 %v9680_v24 }
 0x42e   :  { %v2070_v14 = vpop.f32.mrb[6].mxu0  ;;  %v2141_v37 = vpop.f32.mrb[14].mxu1 }
 0x42f   :  { %v6706_v43 = vadd.f32 %v2070_v14, %v9681_v7  ;;  %v2072_v25 = vpop.f32.mrb[7].mxu0  ;;  %v2143_v57 = vpop.f32.mrb[15].mxu1  ;;  %v6730_v8 = vadd.f32 %v2141_v37, %v9682_v23 }
 0x430   :  { %v6707_v54 = vadd.f32 %v2072_v25, %v9609_v59  ;;  %v6731_v12 = vadd.f32 %v2143_v57, %v8243_v58  ;;  %v8592_v57 = vpop.permute.xlu0 %2177 }
 0x431   :  { %v4852_v39 = vmul.f32 -1.442695, %v6706_v43  ;;  %9683 = vst [vmem:[#allocation65_spill] sm:$0xff] %v8592_v57  ;;  %vm2179_vm15 = vcmp.eq.s32.totalorder %v8592_v57, 1  ;;  %v9736_v57 = vld [vmem:[#allocation20_spill] sm:$0xff] }
 0x432   :  { %v4853_v47 = vmul.f32 -1.442695, %v6707_v54  ;;  %v4854_v46 = vmul.f32 -1.442695, %v6731_v12 }
 0x433   :  { %6958 = vpow2.f32 %v4852_v39 }
 0x434   :  { %6960 = vpow2.f32 %v4853_v47 }
 0x435   :  { %6962 = vpow2.f32 %v4854_v46 }
 0x436   :  { %6964 = vtanh.f32 %v6730_v8 }
 0x43d   :  { %v6959_v27 = vpop.eup %6958 }
 0x43e   :  { %v6961_v4 = vpop.eup %6960  ;;  %v2153_v24 = vadd.f32 1.0, %v6959_v27  ;;  %v9684_v27 = vld [vmem:[#allocation57_spill] sm:$0xff] }
 0x43f   :  { %v2159_v19 = vadd.f32 1.0, %v6961_v4  ;;  %v6963_v14 = vpop.eup %6962 }
 0x440   :  { %6966 = vrcp.f32 %v2153_v24  ;;  %v6965_v7 = vpop.eup %6964  ;;  %v2166_v39 = vadd.f32 1.0, %v6963_v14 }
 0x441   :  { %6968 = vrcp.f32 %v2159_v19 }
 0x442   :  { %6970 = vrcp.f32 %v2166_v39 }
 0x44a   :  { %v6967_v25 = vpop.eup %6966 }
 0x44b   :  { %v6969_v43 = vpop.eup %6968  ;;  %v2170_v54 = vmul.f32 %v6967_v25, %v6965_v7 }
 0x44c   :  { %v2169_v47 = vmul.f32 %v6969_v43, %v8492_v52  ;;  %v6971_v43 = vpop.eup %6970 }
 0x44e   :  { %v2171_v12 = vadd.f32 %v2170_v54, %v2169_v47  ;;  %v2266_v37 = vpop.f32.mrb[16].mxu0  ;;  %v2337_v23 = vpop.f32.mrb[32].mxu1 }
 0x44f   :  { %v6748_v4 = vadd.f32 %v2266_v37, %v9684_v27  ;;  %v2268_v24 = vpop.f32.mrb[17].mxu0  ;;  %v2339_v19 = vpop.f32.mrb[33].mxu1  ;;  %v6764_v47 = vadd.f32 %v2337_v23, %v8260_v10 }
 0x450   :  { %v6749_v8 = vadd.f32 %v2268_v24, %v9650_v41  ;;  %6972 = vtanh.f32 %v2171_v12  ;;  %v8600_v7 = vsel %vm2179_vm15, %v2171_v12, %v8492_v52  ;;  %v6765_v25 = vadd.f32 %v2339_v19, %v8262_v13 }
 0x451   :  { %v4856_v46 = vmul.f32 -1.442695, %v6748_v4 }
 0x452   :  { %v4857_v14 = vmul.f32 -1.442695, %v6749_v8  ;;  %v4858_v39 = vmul.f32 -1.442695, %v6765_v25 }
 0x453   :  { %6974 = vpow2.f32 %v4856_v46 }
 0x454   :  { %6976 = vpow2.f32 %v4857_v14 }
 0x455   :  { %6978 = vpow2.f32 %v4858_v39 }
 0x456   :  { %6980 = vtanh.f32 %v6764_v47 }
 0x45a   :  { %v6973_v54 = vpop.eup %6972 }
 0x45b   :  { %v2173_v37 = vmul.f32 %v6973_v54, %v6971_v43  ;;  %v8630_v43 = vpop.permute.xlu1 %2373 }
 0x45c   :  { %9686 = vst [vmem:[#allocation67_spill] sm:$0xff] %v8630_v43  ;;  %vm2375_vm0 = vcmp.eq.s32.totalorder %v8630_v43, 1  ;;  %v9735_v43 = vld [vmem:[#allocation35_spill] sm:$0xff] }
 0x45d   :  { %v6975_v27 = vpop.eup %6974  ;;  %v8607_v24 = vsel %vm2179_vm15, %v2173_v37, %v8499_v20  ;;  %v9701_v20 = vld [vmem:[#allocation20_spill] sm:$0xff] }
 0x45e   :  { %9685 = vst [vmem:[#allocation66_spill] sm:$0xff] %v8607_v24  ;;  %v6977_v52 = vpop.eup %6976  ;;  %v2349_v12 = vadd.f32 1.0, %v6975_v27  ;;  %2461 = vmatmul.mubr.f32.vlgmr.msra.gmra.mrb[24].mxu0 %v8607_v24  ;;  %2532 = vmatmul.mubr.f32.vlgmr.msra.gmra.mrb[16].mxu1 %v8607_v24 }
 0x45f   :  { %v2355_v4 = vadd.f32 1.0, %v6977_v52  ;;  %6017 = vmatpush1.bf16.msra.mxu0 %v7696_v36  ;;  %6049 = vmatpush1.bf16.msra.mxu1 %v8030_v31  ;;  %v6979_v23 = vpop.eup %6978 }
 0x460   :  { %6982 = vrcp.f32 %v2349_v12  ;;  %6019 = vmatprep.subr.bf16.mxu0 %v7719_v45  ;;  %6051 = vmatprep.subr.bf16.mxu1 %v8034_v49  ;;  %v6981_v27 = vpop.eup %6980  ;;  %v2362_v14 = vadd.f32 1.0, %v6979_v23  ;;  %v9688_v12 = vld [vmem:[#allocation29_spill] sm:$0xff]  ;;  %v9690_v23 = vld [vmem:[#allocation30_spill] sm:$0xff] }
 0x461   :  { %6984 = vrcp.f32 %v2355_v4  ;;  %2644 = vmatprep.mubr.f32.mxu0 %v9567_v35  ;;  %2715 = vmatprep.mubr.f32.mxu1 %v9567_v35  ;;  %v9689_v4 = vld [vmem:[#allocation14_spill] sm:$0xff] }
 0x462   :  { %6986 = vrcp.f32 %v2362_v14  ;;  %v9695_v14 = vld [vmem:[#allocation17_spill] sm:$0xff] }
 0x463   :  { %6021 = vmatpush1.bf16.msra.mxu0 %v7741_v55  ;;  %6053 = vmatpush1.bf16.msra.mxu1 %v8052_v61 }
 0x464   :  { %6023 = vmatprep.subr.bf16.mxu0 %v7764_v9  ;;  %6055 = vmatprep.subr.bf16.mxu1 %v8056_v11 }
 0x467   :  { %6025 = vmatpush1.bf16.msra.mxu0 %v7789_v48  ;;  %6057 = vmatpush1.bf16.msra.mxu1 %v8074_v50 }
 0x468   :  { %6027 = vmatprep.subr.bf16.mxu0 %v7813_v30  ;;  %6059 = vmatprep.subr.bf16.mxu1 %v8080_v51 }
 0x46a   :  { %v6983_v19 = vpop.eup %6982 }
 0x46b   :  { %v6985_v8 = vpop.eup %6984  ;;  %v2366_v46 = vmul.f32 %v6983_v19, %v6981_v27  ;;  %6029 = vmatpush1.bf16.msra.mxu0 %v7836_v62  ;;  %6061 = vmatpush1.bf16.msra.mxu1 %v8097_v28  ;;  %v9691_v27 = vld [vmem:[#allocation15_spill] sm:$0xff] }
 0x46c   :  { %v2365_v25 = vmul.f32 %v6985_v8, %v8532_v21  ;;  %6031 = vmatprep.subr.bf16.mxu0 %v7859_v60  ;;  %6063 = vmatprep.subr.bf16.mxu1 %v8103_v6  ;;  %v6987_v47 = vpop.eup %6986  ;;  %v9692_v19 = vld [vmem:[#allocation31_spill] sm:$0xff]  ;;  %v9693_v8 = vld [vmem:[#allocation16_spill] sm:$0xff] }
 0x46e   :  { %v2367_v54 = vadd.f32 %v2366_v46, %v2365_v25  ;;  %v9694_v46 = vld [vmem:[#allocation32_spill] sm:$0xff]  ;;  %v9696_v25 = vld [vmem:[#allocation33_spill] sm:$0xff] }
 0x46f   :  { %6033 = vmatpush1.bf16.msra.mxu0 %v7879_v15  ;;  %6065 = vmatpush1.bf16.msra.mxu1 %v8126_v29 }
 0x470   :  { %6035 = vmatprep.subr.bf16.mxu0 %v7909_v32  ;;  %6067 = vmatprep.subr.bf16.mxu1 %v8129_v16  ;;  %6988 = vtanh.f32 %v2367_v54  ;;  %v8640_v39 = vsel %vm2375_vm0, %v2367_v54, %v8532_v21  ;;  %v9697_v54 = vld [vmem:[#allocation18_spill] sm:$0xff] }
 0x473   :  { %6037 = vmatpush1.bf16.msra.mxu0 %v7929_v34  ;;  %6069 = vmatpush1.bf16.msra.mxu1 %v8152_v26 }
 0x474   :  { %6039 = vmatprep.subr.bf16.mxu0 %v7954_v17  ;;  %6071 = vmatprep.subr.bf16.mxu1 %v8155_v63 }
 0x477   :  { %6041 = vmatpush1.bf16.msra.mxu0 %v7974_v40  ;;  %6073 = vmatpush1.bf16.msra.mxu1 %v8172_v5 }
 0x478   :  { %6043 = vmatprep.subr.bf16.mxu0 %v7993_v56  ;;  %6075 = vmatprep.subr.bf16.mxu1 %v8175_v22 }
 0x47a   :  { %v6989_v37 = vpop.eup %6988 }
 0x47b   :  { %6045 = vmatpush1.bf16.msra.mxu0 %v9583_v2  ;;  %6077 = vmatpush1.bf16.msra.mxu1 %v8186_v38  ;;  %v2369_v21 = vmul.f32 %v6989_v37, %v6987_v47  ;;  %v9698_v47 = vld [vmem:[#allocation34_spill] sm:$0xff]  ;;  %v9699_v37 = vld [vmem:[#allocation19_spill] sm:$0xff] }
 0x47c   :  { %6079 = vmatprep.subr.bf16.mxu0 %v9585_v42  ;;  %6111 = vmatprep.subr.bf16.mxu1 %v7601_v1 }
 0x47d   :  { %v8657_v52 = vsel %vm2375_vm0, %v2369_v21, %v8549_v18  ;;  %v9700_v21 = vld [vmem:[#allocation35_spill] sm:$0xff]  ;;  %v9702_v18 = vld [vmem:[#allocation36_spill] sm:$0xff] }
 0x47e   :  { %9687 = vst [vmem:[#allocation68_spill] sm:$0xff] %v8657_v52  ;;  %2645 = vmatmul.mubr.f32.vlgmr.msra.gmra.mrb[14].mxu0 %v8657_v52  ;;  %2716 = vmatmul.mubr.f32.vlgmr.msra.gmra.mrb[30].mxu1 %v8657_v52 }
 0x47f   :  { %6081 = vmatpush1.bf16.msra.mxu0 %v9586_v44  ;;  %6113 = vmatpush1.bf16.msra.mxu1 %v7694_v33 }
 0x480   :  { %6083 = vmatprep.subr.bf16.mxu0 %v9587_v0  ;;  %6115 = vmatprep.subr.bf16.mxu1 %v9618_v3 }
 0x481   :  { %2828 = vmatprep.mubr.f32.mxu0 %v9567_v35  ;;  %2899 = vmatprep.mubr.f32.mxu1 %v9567_v35 }
 0x483   :  { %6085 = vmatpush1.bf16.msra.mxu0 %v9619_v53  ;;  %6117 = vmatpush1.bf16.msra.mxu1 %v9688_v12 }
 0x484   :  { %6087 = vmatprep.subr.bf16.mxu0 %v9689_v4  ;;  %6119 = vmatprep.subr.bf16.mxu1 %v9690_v23 }
 0x487   :  { %6089 = vmatpush1.bf16.msra.mxu0 %v9691_v27  ;;  %6121 = vmatpush1.bf16.msra.mxu1 %v9692_v19  ;;  %v9703_v19 = vld [vmem:[#allocation21_spill] sm:$0xff] }
 0x488   :  { %6091 = vmatprep.subr.bf16.mxu0 %v9693_v8  ;;  %6123 = vmatprep.subr.bf16.mxu1 %v9694_v46  ;;  %v9704_v8 = vld [vmem:[#allocation37_spill] sm:$0xff]  ;;  %v9705_v46 = vld [vmem:[#allocation22_spill] sm:$0xff] }
 0x48b   :  { %6093 = vmatpush1.bf16.msra.mxu0 %v9695_v14  ;;  %6125 = vmatpush1.bf16.msra.mxu1 %v9696_v25  ;;  %v9706_v14 = vld [vmem:[#allocation38_spill] sm:$0xff]  ;;  %v9707_v25 = vld [vmem:[#allocation23_spill] sm:$0xff] }
 0x48c   :  { %6095 = vmatprep.subr.bf16.mxu0 %v9697_v54  ;;  %6127 = vmatprep.subr.bf16.mxu1 %v9698_v47  ;;  %v9708_v54 = vld [vmem:[#allocation39_spill] sm:$0xff]  ;;  %v9709_v47 = vld [vmem:[#allocation24_spill] sm:$0xff] }
 0x48f   :  { %6097 = vmatpush1.bf16.msra.mxu0 %v9699_v37  ;;  %6129 = vmatpush1.bf16.msra.mxu1 %v9700_v21  ;;  %v9710_v37 = vld [vmem:[#allocation40_spill] sm:$0xff]  ;;  %v9711_v21 = vld [vmem:[#allocation25_spill] sm:$0xff] }
 0x490   :  { %6099 = vmatprep.subr.bf16.mxu0 %v9701_v20  ;;  %6131 = vmatprep.subr.bf16.mxu1 %v9702_v18  ;;  %v9712_v20 = vld [vmem:[#allocation41_spill] sm:$0xff]  ;;  %v9713_v18 = vld [vmem:[#allocation26_spill] sm:$0xff] }
 0x493   :  { %6101 = vmatpush1.bf16.msra.mxu0 %v9703_v19  ;;  %6133 = vmatpush1.bf16.msra.mxu1 %v9704_v8  ;;  %v9714_v19 = vld [vmem:[#allocation43_spill] sm:$0xff]  ;;  %v9715_v8 = vld [vmem:[#allocation54_spill] sm:$0xff] }
 0x494   :  { %6103 = vmatprep.subr.bf16.mxu0 %v9705_v46  ;;  %6135 = vmatprep.subr.bf16.mxu1 %v9706_v14  ;;  %v9716_v46 = vld [vmem:[#allocation44_spill] sm:$0xff]  ;;  %v9717_v14 = vld [vmem:[#allocation45_spill] sm:$0xff] }
 0x495   :  { %v220_v27 = vadd.f32 %v9716_v46, %v9715_v8 }
 0x497   :  { %6105 = vmatpush1.bf16.msra.mxu0 %v9707_v25  ;;  %6137 = vmatpush1.bf16.msra.mxu1 %v9708_v54  ;;  %v222_v25 = vadd.f32 %v9717_v14, %v9609_v59 }
 0x498   :  { %6107 = vmatprep.subr.bf16.mxu0 %v9709_v47  ;;  %6139 = vmatprep.subr.bf16.mxu1 %v9710_v37 }
 0x49b   :  { %6109 = vmatpush1.bf16.msra.mxu0 %v9711_v21  ;;  %6141 = vmatpush1.bf16.msra.mxu1 %v9712_v20 }
 0x49c   :  { %6143 = vmatprep.subr.bf16.mxu0 %v9713_v18  ;;  %6175 = vmatprep.subr.bf16.mxu1 %v9714_v19  ;;  %v9718_v19 = vld [vmem:[#allocation55_spill] sm:$0xff] }
 0x531   :  { %v2462_v23 = vpop.f32.mrb[24].mxu0  ;;  %v2533_v54 = vpop.f32.mrb[16].mxu1 }
 0x532   :  { %v2538_v4 = vadd.f32 %v2462_v23, %v220_v27  ;;  %v2464_v47 = vpop.f32.mrb[25].mxu0  ;;  %v2535_v12 = vpop.f32.mrb[17].mxu1  ;;  %v6732_v3 = vadd.f32 %v2533_v54, %v9718_v19  ;;  %v9719_v54 = vld [vmem:[#allocation57_spill] sm:$0xff] }
 0x533   :  { %v2539_v37 = vadd.f32 %v2464_v47, %v222_v25  ;;  %v6733_v18 = vadd.f32 %v2535_v12, %v8243_v58 }
 0x534   :  { %v4860_v53 = vmul.f32 -1.442695, %v2538_v4 }
 0x535   :  { %v4861_v21 = vmul.f32 -1.442695, %v2539_v37  ;;  %v4862_v20 = vmul.f32 -1.442695, %v6733_v18 }
 0x536   :  { %6990 = vpow2.f32 %v4860_v53 }
 0x537   :  { %6992 = vpow2.f32 %v4861_v21 }
 0x538   :  { %6994 = vpow2.f32 %v4862_v20 }
 0x539   :  { %6996 = vtanh.f32 %v6732_v3 }
 0x540   :  { %v6991_v0 = vpop.eup %6990 }
 0x541   :  { %v6993_v46 = vpop.eup %6992  ;;  %v2545_v8 = vadd.f32 1.0, %v6991_v0 }
 0x542   :  { %v2551_v14 = vadd.f32 1.0, %v6993_v46  ;;  %v6995_v23 = vpop.eup %6994 }
 0x543   :  { %6998 = vrcp.f32 %v2545_v8  ;;  %v6997_v27 = vpop.eup %6996  ;;  %v2558_v53 = vadd.f32 1.0, %v6995_v23 }
 0x544   :  { %7000 = vrcp.f32 %v2551_v14 }
 0x545   :  { %7002 = vrcp.f32 %v2558_v53 }
 0x54d   :  { %v6999_v25 = vpop.eup %6998 }
 0x54e   :  { %v7001_v4 = vpop.eup %7000  ;;  %v2562_v47 = vmul.f32 %v6999_v25, %v6997_v27 }
 0x54f   :  { %v2561_v37 = vmul.f32 %v7001_v4, %v8600_v7  ;;  %v7003_v27 = vpop.eup %7002 }
 0x551   :  { %v2563_v12 = vadd.f32 %v2562_v47, %v2561_v37  ;;  %v2646_v18 = vpop.f32.mrb[14].mxu0  ;;  %v2717_v21 = vpop.f32.mrb[30].mxu1 }
 0x552   :  { %v6746_v19 = vadd.f32 %v2646_v18, %v9719_v54  ;;  %v2648_v0 = vpop.f32.mrb[15].mxu0  ;;  %v2719_v20 = vpop.f32.mrb[31].mxu1  ;;  %v6762_v47 = vadd.f32 %v2717_v21, %v8260_v10 }
 0x553   :  { %v6747_v3 = vadd.f32 %v2648_v0, %v9650_v41  ;;  %7004 = vtanh.f32 %v2563_v12  ;;  %v8707_v8 = vsel %vm2375_vm0, %v2563_v12, %v8600_v7  ;;  %v6763_v23 = vadd.f32 %v2719_v20, %v8262_v13 }
 0x554   :  { %v4863_v46 = vmul.f32 -1.442695, %v6746_v19 }
 0x555   :  { %v4864_v14 = vmul.f32 -1.442695, %v6747_v3  ;;  %v4865_v4 = vmul.f32 -1.442695, %v6763_v23 }
 0x556   :  { %7006 = vpow2.f32 %v4863_v46 }
 0x557   :  { %7008 = vpow2.f32 %v4864_v14 }
 0x558   :  { %7010 = vpow2.f32 %v4865_v4 }
 0x559   :  { %7012 = vtanh.f32 %v6762_v47 }
 0x55d   :  { %v7005_v25 = vpop.eup %7004 }
 0x55e   :  { %v2565_v53 = vmul.f32 %v7005_v25, %v7003_v27 }
 0x560   :  { %v7007_v37 = vpop.eup %7006  ;;  %v8714_v18 = vsel %vm2375_vm0, %v2565_v53, %v8607_v24  ;;  %v9737_v24 = vld [vmem:[#allocation36_spill] sm:$0xff] }
 0x561   :  { %v7009_v7 = vpop.eup %7008  ;;  %v2729_v12 = vadd.f32 1.0, %v7007_v37  ;;  %2829 = vmatmul.mubr.f32.vlgmr.msra.gmra.mrb[26].mxu0 %v8714_v18  ;;  %2900 = vmatmul.mubr.f32.vlgmr.msra.gmra.mrb[18].mxu1 %v8714_v18  ;;  %v9720_v37 = vld [vmem:[#allocation12_spill] sm:$0xff] }
 0x562   :  { %v2735_v19 = vadd.f32 1.0, %v7009_v7  ;;  %6145 = vmatpush1.bf16.msra.mxu0 %v7696_v36  ;;  %6177 = vmatpush1.bf16.msra.mxu1 %v8030_v31  ;;  %v7011_v21 = vpop.eup %7010  ;;  %v9721_v7 = vld [vmem:[#allocation27_spill] sm:$0xff] }
 0x563   :  { %7014 = vrcp.f32 %v2729_v12  ;;  %6147 = vmatprep.subr.bf16.mxu0 %v7719_v45  ;;  %6179 = vmatprep.subr.bf16.mxu1 %v8034_v49  ;;  %v7013_v0 = vpop.eup %7012  ;;  %v2742_v14 = vadd.f32 1.0, %v7011_v21  ;;  %v9722_v12 = vld [vmem:[#allocation13_spill] sm:$0xff]  ;;  %v9724_v21 = vld [vmem:[#allocation14_spill] sm:$0xff] }
 0x564   :  { %7016 = vrcp.f32 %v2735_v19  ;;  %3012 = vmatprep.mubr.f32.mxu0 %v9567_v35  ;;  %3083 = vmatprep.mubr.f32.mxu1 %v9567_v35  ;;  %v9723_v19 = vld [vmem:[#allocation29_spill] sm:$0xff] }
 0x565   :  { %7018 = vrcp.f32 %v2742_v14  ;;  %v9729_v14 = vld [vmem:[#allocation32_spill] sm:$0xff] }
 0x566   :  { %6149 = vmatpush1.bf16.msra.mxu0 %v7741_v55  ;;  %6181 = vmatpush1.bf16.msra.mxu1 %v8052_v61 }
 0x567   :  { %6151 = vmatprep.subr.bf16.mxu0 %v7764_v9  ;;  %6183 = vmatprep.subr.bf16.mxu1 %v8056_v11 }
 0x56a   :  { %6153 = vmatpush1.bf16.msra.mxu0 %v7789_v48  ;;  %6185 = vmatpush1.bf16.msra.mxu1 %v8074_v50 }
 0x56b   :  { %6155 = vmatprep.subr.bf16.mxu0 %v7813_v30  ;;  %6187 = vmatprep.subr.bf16.mxu1 %v8080_v51 }
 0x56d   :  { %v7015_v20 = vpop.eup %7014 }
 0x56e   :  { %v7017_v3 = vpop.eup %7016  ;;  %v2746_v46 = vmul.f32 %v7015_v20, %v7013_v0  ;;  %6157 = vmatpush1.bf16.msra.mxu0 %v7836_v62  ;;  %6189 = vmatpush1.bf16.msra.mxu1 %v8097_v28  ;;  %v9725_v0 = vld [vmem:[#allocation30_spill] sm:$0xff]  ;;  %v9726_v20 = vld [vmem:[#allocation15_spill] sm:$0xff] }
 0x56f   :  { %v2745_v23 = vmul.f32 %v7017_v3, %v8640_v39  ;;  %6159 = vmatprep.subr.bf16.mxu0 %v7859_v60  ;;  %6191 = vmatprep.subr.bf16.mxu1 %v8103_v6  ;;  %v7019_v4 = vpop.eup %7018  ;;  %v9727_v3 = vld [vmem:[#allocation31_spill] sm:$0xff] }
 0x571   :  { %v2747_v27 = vadd.f32 %v2746_v46, %v2745_v23  ;;  %v9728_v46 = vld [vmem:[#allocation16_spill] sm:$0xff]  ;;  %v9730_v23 = vld [vmem:[#allocation17_spill] sm:$0xff] }
 0x572   :  { %6161 = vmatpush1.bf16.msra.mxu0 %v7879_v15  ;;  %6193 = vmatpush1.bf16.msra.mxu1 %v8126_v29 }
 0x573   :  { %6163 = vmatprep.subr.bf16.mxu0 %v7909_v32  ;;  %6195 = vmatprep.subr.bf16.mxu1 %v8129_v16  ;;  %7020 = vtanh.f32 %v2747_v27  ;;  %v8744_v25 = vsel %vm2179_vm15, %v2747_v27, %v8640_v39  ;;  %v9731_v27 = vld [vmem:[#allocation33_spill] sm:$0xff] }
 0x576   :  { %6165 = vmatpush1.bf16.msra.mxu0 %v7929_v34  ;;  %6197 = vmatpush1.bf16.msra.mxu1 %v8152_v26 }
 0x577   :  { %6167 = vmatprep.subr.bf16.mxu0 %v7954_v17  ;;  %6199 = vmatprep.subr.bf16.mxu1 %v8155_v63 }
 0x57a   :  { %6169 = vmatpush1.bf16.msra.mxu0 %v7974_v40  ;;  %6201 = vmatpush1.bf16.msra.mxu1 %v8172_v5 }
 0x57b   :  { %6171 = vmatprep.subr.bf16.mxu0 %v7993_v56  ;;  %6203 = vmatprep.subr.bf16.mxu1 %v8175_v22 }
 0x57d   :  { %v7021_v47 = vpop.eup %7020 }
 0x57e   :  { %6173 = vmatpush1.bf16.msra.mxu0 %v9583_v2  ;;  %6205 = vmatpush1.bf16.msra.mxu1 %v8186_v38  ;;  %v2749_v39 = vmul.f32 %v7021_v47, %v7019_v4  ;;  %v9732_v4 = vld [vmem:[#allocation18_spill] sm:$0xff] }
 0x57f   :  { %6207 = vmatprep.subr.bf16.mxu0 %v9585_v42  ;;  %6239 = vmatprep.subr.bf16.mxu1 %v7601_v1  ;;  %v9733_v47 = vld [vmem:[#allocation34_spill] sm:$0xff] }
 0x580   :  { %v8761_v53 = vsel %vm2179_vm15, %v2749_v39, %v8657_v52  ;;  %v9734_v39 = vld [vmem:[#allocation19_spill] sm:$0xff]  ;;  %v9738_v52 = vld [vmem:[#allocation21_spill] sm:$0xff] }
 0x581   :  { %3013 = vmatmul.mubr.f32.vlgmr.msra.gmra.mrb[12].mxu0 %v8761_v53  ;;  %3084 = vmatmul.mubr.f32.vlgmr.msra.gmra.mrb[28].mxu1 %v8761_v53 }
 0x582   :  { %6209 = vmatpush1.bf16.msra.mxu0 %v9586_v44  ;;  %6241 = vmatpush1.bf16.msra.mxu1 %v7694_v33 }
 0x583   :  { %6211 = vmatprep.subr.bf16.mxu0 %v9720_v37  ;;  %6243 = vmatprep.subr.bf16.mxu1 %v9721_v7 }
 0x584   :  { %3196 = vmatprep.mubr.f32.mxu0 %v9567_v35  ;;  %3267 = vmatprep.mubr.f32.mxu1 %v9567_v35 }
 0x586   :  { %6213 = vmatpush1.bf16.msra.mxu0 %v9722_v12  ;;  %6245 = vmatpush1.bf16.msra.mxu1 %v9723_v19 }
 0x587   :  { %6215 = vmatprep.subr.bf16.mxu0 %v9724_v21  ;;  %6247 = vmatprep.subr.bf16.mxu1 %v9725_v0 }
 0x58a   :  { %6217 = vmatpush1.bf16.msra.mxu0 %v9726_v20  ;;  %6249 = vmatpush1.bf16.msra.mxu1 %v9727_v3 }
 0x58b   :  { %6219 = vmatprep.subr.bf16.mxu0 %v9728_v46  ;;  %6251 = vmatprep.subr.bf16.mxu1 %v9729_v14  ;;  %v9739_v46 = vld [vmem:[#allocation37_spill] sm:$0xff]  ;;  %v9740_v14 = vld [vmem:[#allocation22_spill] sm:$0xff] }
 0x58e   :  { %6221 = vmatpush1.bf16.msra.mxu0 %v9730_v23  ;;  %6253 = vmatpush1.bf16.msra.mxu1 %v9731_v27  ;;  %v9741_v23 = vld [vmem:[#allocation38_spill] sm:$0xff]  ;;  %v9742_v27 = vld [vmem:[#allocation23_spill] sm:$0xff] }
 0x58f   :  { %6223 = vmatprep.subr.bf16.mxu0 %v9732_v4  ;;  %6255 = vmatprep.subr.bf16.mxu1 %v9733_v47  ;;  %v9743_v4 = vld [vmem:[#allocation39_spill] sm:$0xff]  ;;  %v9744_v47 = vld [vmem:[#allocation24_spill] sm:$0xff] }
 0x592   :  { %6225 = vmatpush1.bf16.msra.mxu0 %v9734_v39  ;;  %6257 = vmatpush1.bf16.msra.mxu1 %v9735_v43  ;;  %v9745_v39 = vld [vmem:[#allocation40_spill] sm:$0xff]  ;;  %v9746_v43 = vld [vmem:[#allocation25_spill] sm:$0xff] }
 0x593   :  { %6227 = vmatprep.subr.bf16.mxu0 %v9736_v57  ;;  %6259 = vmatprep.subr.bf16.mxu1 %v9737_v24  ;;  %v9747_v57 = vld [vmem:[#allocation41_spill] sm:$0xff]  ;;  %v9748_v24 = vld [vmem:[#allocation26_spill] sm:$0xff] }
 0x596   :  { %6229 = vmatpush1.bf16.msra.mxu0 %v9738_v52  ;;  %6261 = vmatpush1.bf16.msra.mxu1 %v9739_v46  ;;  %v9749_v52 = vld [vmem:[#allocation43_spill] sm:$0xff]  ;;  %v9750_v46 = vld [vmem:[#allocation54_spill] sm:$0xff] }
 0x597   :  { %6231 = vmatprep.subr.bf16.mxu0 %v9740_v14  ;;  %6263 = vmatprep.subr.bf16.mxu1 %v9741_v23  ;;  %v9751_v14 = vld [vmem:[#allocation46_spill] sm:$0xff]  ;;  %v9752_v23 = vld [vmem:[#allocation47_spill] sm:$0xff] }
 0x598   :  { %v226_v3 = vadd.f32 %v9751_v14, %v9750_v46 }
 0x59a   :  { %6233 = vmatpush1.bf16.msra.mxu0 %v9742_v27  ;;  %6265 = vmatpush1.bf16.msra.mxu1 %v9743_v4  ;;  %v228_v27 = vadd.f32 %v9752_v23, %v9609_v59 }
 0x59b   :  { %6235 = vmatprep.subr.bf16.mxu0 %v9744_v47  ;;  %6267 = vmatprep.subr.bf16.mxu1 %v9745_v39 }
 0x59e   :  { %6237 = vmatpush1.bf16.msra.mxu0 %v9746_v43  ;;  %6269 = vmatpush1.bf16.msra.mxu1 %v9747_v57 }
 0x59f   :  { %6271 = vmatprep.subr.bf16.mxu0 %v9748_v24  ;;  %6303 = vmatprep.subr.bf16.mxu1 %v9749_v52  ;;  %v9753_v52 = vld [vmem:[#allocation55_spill] sm:$0xff] }
 0x634   :  { %v2830_v20 = vpop.f32.mrb[26].mxu0  ;;  %v2901_v4 = vpop.f32.mrb[18].mxu1 }
 0x635   :  { %v2906_v0 = vadd.f32 %v2830_v20, %v226_v3  ;;  %v2832_v47 = vpop.f32.mrb[27].mxu0  ;;  %v2903_v21 = vpop.f32.mrb[19].mxu1  ;;  %v6734_v12 = vadd.f32 %v2901_v4, %v9753_v52 }
 0x636   :  { %v2907_v39 = vadd.f32 %v2832_v47, %v228_v27  ;;  %v6735_v24 = vadd.f32 %v2903_v21, %v8243_v58 }
 0x637   :  { %v4866_v19 = vmul.f32 -1.442695, %v2906_v0 }
 0x638   :  { %v4867_v43 = vmul.f32 -1.442695, %v2907_v39  ;;  %v4868_v57 = vmul.f32 -1.442695, %v6735_v24 }
 0x639   :  { %7022 = vpow2.f32 %v4866_v19 }
 0x63a   :  { %7024 = vpow2.f32 %v4867_v43 }
 0x63b   :  { %7026 = vpow2.f32 %v4868_v57 }
 0x63c   :  { %7028 = vtanh.f32 %v6734_v12 }
 0x643   :  { %v7023_v7 = vpop.eup %7022 }
 0x644   :  { %v7025_v14 = vpop.eup %7024  ;;  %v2913_v46 = vadd.f32 1.0, %v7023_v7 }
 0x645   :  { %v2919_v23 = vadd.f32 1.0, %v7025_v14  ;;  %v7027_v20 = vpop.eup %7026 }
 0x646   :  { %7030 = vrcp.f32 %v2913_v46  ;;  %v7029_v3 = vpop.eup %7028  ;;  %v2926_v19 = vadd.f32 1.0, %v7027_v20 }
 0x647   :  { %7032 = vrcp.f32 %v2919_v23 }
 0x648   :  { %7034 = vrcp.f32 %v2926_v19 }
 0x650   :  { %v7031_v27 = vpop.eup %7030 }
 0x651   :  { %v7033_v0 = vpop.eup %7032  ;;  %v2930_v47 = vmul.f32 %v7031_v27, %v7029_v3 }
 0x652   :  { %v2929_v43 = vmul.f32 %v7033_v0, %v8707_v8  ;;  %v7035_v27 = vpop.eup %7034 }
 0x654   :  { %v2931_v21 = vadd.f32 %v2930_v47, %v2929_v43  ;;  %v3014_v24 = vpop.f32.mrb[12].mxu0  ;;  %v3085_v39 = vpop.f32.mrb[28].mxu1 }
 0x655   :  { %v6744_v4 = vadd.f32 %v3014_v24, %v9719_v54  ;;  %v3016_v7 = vpop.f32.mrb[13].mxu0  ;;  %v3087_v57 = vpop.f32.mrb[29].mxu1  ;;  %v6760_v19 = vadd.f32 %v3085_v39, %v8260_v10 }
 0x656   :  { %v6745_v12 = vadd.f32 %v3016_v7, %v9650_v41  ;;  %7036 = vtanh.f32 %v2931_v21  ;;  %v8811_v14 = vsel %vm1983_vm14, %v2931_v21, %v8707_v8  ;;  %v6761_v3 = vadd.f32 %v3087_v57, %v8262_v13 }
 0x657   :  { %v4869_v23 = vmul.f32 -1.442695, %v6744_v4 }
 0x658   :  { %v4870_v20 = vmul.f32 -1.442695, %v6745_v12  ;;  %v4871_v47 = vmul.f32 -1.442695, %v6761_v3 }
 0x659   :  { %7038 = vpow2.f32 %v4869_v23 }
 0x65a   :  { %7040 = vpow2.f32 %v4870_v20 }
 0x65b   :  { %7042 = vpow2.f32 %v4871_v47 }
 0x65c   :  { %7044 = vtanh.f32 %v6760_v19 }
 0x660   :  { %v7037_v0 = vpop.eup %7036 }
 0x661   :  { %v2933_v43 = vmul.f32 %v7037_v0, %v7035_v27 }
 0x663   :  { %v7039_v24 = vpop.eup %7038  ;;  %v8818_v7 = vsel %vm1983_vm14, %v2933_v43, %v8714_v18 }
 0x664   :  { %v7041_v8 = vpop.eup %7040  ;;  %v3097_v21 = vadd.f32 1.0, %v7039_v24  ;;  %3197 = vmatmul.mubr.f32.vlgmr.msra.gmra.mrb[28].mxu0 %v8818_v7  ;;  %3268 = vmatmul.mubr.f32.vlgmr.msra.gmra.mrb[20].mxu1 %v8818_v7 }
 0x665   :  { %v3103_v4 = vadd.f32 1.0, %v7041_v8  ;;  %6273 = vmatpush1.bf16.msra.mxu0 %v7696_v36  ;;  %6305 = vmatpush1.bf16.msra.mxu1 %v8030_v31  ;;  %v7043_v39 = vpop.eup %7042 }
 0x666   :  { %7046 = vrcp.f32 %v3097_v21  ;;  %6275 = vmatprep.subr.bf16.mxu0 %v7719_v45  ;;  %6307 = vmatprep.subr.bf16.mxu1 %v8034_v49  ;;  %v7045_v57 = vpop.eup %7044  ;;  %v3110_v3 = vadd.f32 1.0, %v7043_v39  ;;  %v9756_v21 = vld [vmem:[#allocation27_spill] sm:$0xff]  ;;  %v9760_v39 = vld [vmem:[#allocation30_spill] sm:$0xff] }
 0x667   :  { %7048 = vrcp.f32 %v3103_v4  ;;  %3380 = vmatprep.mubr.f32.mxu0 %v9567_v35  ;;  %3451 = vmatprep.mubr.f32.mxu1 %v9567_v35  ;;  %v9759_v4 = vld [vmem:[#allocation14_spill] sm:$0xff] }
 0x668   :  { %7050 = vrcp.f32 %v3110_v3  ;;  %v9768_v3 = vld [vmem:[#allocation34_spill] sm:$0xff] }
 0x669   :  { %6277 = vmatpush1.bf16.msra.mxu0 %v7741_v55  ;;  %6309 = vmatpush1.bf16.msra.mxu1 %v8052_v61 }
 0x66a   :  { %6279 = vmatprep.subr.bf16.mxu0 %v7764_v9  ;;  %6311 = vmatprep.subr.bf16.mxu1 %v8056_v11 }
 0x66d   :  { %6281 = vmatpush1.bf16.msra.mxu0 %v7789_v48  ;;  %6313 = vmatpush1.bf16.msra.mxu1 %v8074_v50 }
 0x66e   :  { %6283 = vmatprep.subr.bf16.mxu0 %v7813_v30  ;;  %6315 = vmatprep.subr.bf16.mxu1 %v8080_v51 }
 0x670   :  { %v7047_v12 = vpop.eup %7046 }
 0x671   :  { %v7049_v23 = vpop.eup %7048  ;;  %v3114_v20 = vmul.f32 %v7047_v12, %v7045_v57  ;;  %6285 = vmatpush1.bf16.msra.mxu0 %v7836_v62  ;;  %6317 = vmatpush1.bf16.msra.mxu1 %v8097_v28  ;;  %v9761_v57 = vld [vmem:[#allocation15_spill] sm:$0xff]  ;;  %v9765_v12 = vld [vmem:[#allocation17_spill] sm:$0xff] }
 0x672   :  { %v3113_v27 = vmul.f32 %v7049_v23, %v8744_v25  ;;  %6287 = vmatprep.subr.bf16.mxu0 %v7859_v60  ;;  %6319 = vmatprep.subr.bf16.mxu1 %v8103_v6  ;;  %v7051_v43 = vpop.eup %7050  ;;  %v9766_v23 = vld [vmem:[#allocation33_spill] sm:$0xff] }
 0x674   :  { %v3115_v0 = vadd.f32 %v3114_v20, %v3113_v27  ;;  %v9767_v20 = vld [vmem:[#allocation18_spill] sm:$0xff]  ;;  %v9769_v27 = vld [vmem:[#allocation19_spill] sm:$0xff] }
 0x675   :  { %6289 = vmatpush1.bf16.msra.mxu0 %v7879_v15  ;;  %6321 = vmatpush1.bf16.msra.mxu1 %v8126_v29 }
 0x676   :  { %6291 = vmatprep.subr.bf16.mxu0 %v7909_v32  ;;  %6323 = vmatprep.subr.bf16.mxu1 %v8129_v16  ;;  %7052 = vtanh.f32 %v3115_v0  ;;  %v8848_v19 = vsel %vm1787_vm13, %v3115_v0, %v8744_v25  ;;  %v9770_v0 = vld [vmem:[#allocation35_spill] sm:$0xff] }
 0x679   :  { %6293 = vmatpush1.bf16.msra.mxu0 %v7929_v34  ;;  %6325 = vmatpush1.bf16.msra.mxu1 %v8152_v26 }
 0x67a   :  { %6295 = vmatprep.subr.bf16.mxu0 %v7954_v17  ;;  %6327 = vmatprep.subr.bf16.mxu1 %v8155_v63 }
 0x67d   :  { %6297 = vmatpush1.bf16.msra.mxu0 %v7974_v40  ;;  %6329 = vmatpush1.bf16.msra.mxu1 %v8172_v5 }
 0x67e   :  { %6299 = vmatprep.subr.bf16.mxu0 %v7993_v56  ;;  %6331 = vmatprep.subr.bf16.mxu1 %v8175_v22 }
 0x680   :  { %v7053_v24 = vpop.eup %7052 }
 0x681   :  { %6301 = vmatpush1.bf16.msra.mxu0 %v9583_v2  ;;  %6333 = vmatpush1.bf16.msra.mxu1 %v8186_v38  ;;  %v3117_v25 = vmul.f32 %v7053_v24, %v7051_v43  ;;  %v9771_v43 = vld [vmem:[#allocation20_spill] sm:$0xff] }
 0x682   :  { %6335 = vmatprep.subr.bf16.mxu0 %v9585_v42  ;;  %6367 = vmatprep.subr.bf16.mxu1 %v7601_v1  ;;  %v9757_v1 = vld [vmem:[#allocation13_spill] sm:$0xff]  ;;  %v9772_v24 = vld [vmem:[#allocation36_spill] sm:$0xff] }
 0x683   :  { %v8865_v8 = vsel %vm1787_vm13, %v3117_v25, %v8761_v53  ;;  %v9758_v42 = vld [vmem:[#allocation29_spill] sm:$0xff] }
 0x684   :  { %3381 = vmatmul.mubr.f32.vlgmr.msra.gmra.mrb[10].mxu0 %v8865_v8  ;;  %3452 = vmatmul.mubr.f32.vlgmr.msra.gmra.mrb[26].mxu1 %v8865_v8  ;;  %v9773_v25 = vld [vmem:[#allocation21_spill] sm:$0xff] }
 0x685   :  { %6337 = vmatpush1.bf16.msra.mxu0 %v9586_v44  ;;  %6369 = vmatpush1.bf16.msra.mxu1 %v7694_v33  ;;  %v9762_v44 = vld [vmem:[#allocation31_spill] sm:$0xff]  ;;  %v9763_v33 = vld [vmem:[#allocation16_spill] sm:$0xff] }
 0x686   :  { %6339 = vmatprep.subr.bf16.mxu0 %v9720_v37  ;;  %6371 = vmatprep.subr.bf16.mxu1 %v9756_v21  ;;  %v9764_v37 = vld [vmem:[#allocation32_spill] sm:$0xff]  ;;  %v9774_v21 = vld [vmem:[#allocation37_spill] sm:$0xff] }
 0x687   :  { %3564 = vmatprep.mubr.f32.mxu0 %v9567_v35  ;;  %3635 = vmatprep.mubr.f32.mxu1 %v9567_v35 }
 0x689   :  { %6341 = vmatpush1.bf16.msra.mxu0 %v9757_v1  ;;  %6373 = vmatpush1.bf16.msra.mxu1 %v9758_v42  ;;  %v9775_v1 = vld [vmem:[#allocation22_spill] sm:$0xff] }
 0x68a   :  { %6343 = vmatprep.subr.bf16.mxu0 %v9759_v4  ;;  %6375 = vmatprep.subr.bf16.mxu1 %v9760_v39  ;;  %v9776_v42 = vld [vmem:[#allocation38_spill] sm:$0xff]  ;;  %v9777_v4 = vld [vmem:[#allocation23_spill] sm:$0xff] }
 0x68b   :  { %v9778_v39 = vld [vmem:[#allocation39_spill] sm:$0xff] }
 0x68d   :  { %6345 = vmatpush1.bf16.msra.mxu0 %v9761_v57  ;;  %6377 = vmatpush1.bf16.msra.mxu1 %v9762_v44  ;;  %v9779_v57 = vld [vmem:[#allocation24_spill] sm:$0xff] }
 0x68e   :  { %6347 = vmatprep.subr.bf16.mxu0 %v9763_v33  ;;  %6379 = vmatprep.subr.bf16.mxu1 %v9764_v37  ;;  %v9780_v44 = vld [vmem:[#allocation40_spill] sm:$0xff]  ;;  %v9781_v33 = vld [vmem:[#allocation25_spill] sm:$0xff] }
 0x68f   :  { %v9782_v37 = vld [vmem:[#allocation41_spill] sm:$0xff] }
 0x691   :  { %6349 = vmatpush1.bf16.msra.mxu0 %v9765_v12  ;;  %6381 = vmatpush1.bf16.msra.mxu1 %v9766_v23  ;;  %v9783_v12 = vld [vmem:[#allocation26_spill] sm:$0xff]  ;;  %v9784_v23 = vld [vmem:[#allocation43_spill] sm:$0xff] }
 0x692   :  { %6351 = vmatprep.subr.bf16.mxu0 %v9767_v20  ;;  %6383 = vmatprep.subr.bf16.mxu1 %v9768_v3  ;;  %v9785_v20 = vld [vmem:[#allocation54_spill] sm:$0xff]  ;;  %v9786_v3 = vld [vmem:[#allocation48_spill] sm:$0xff] }
 0x695   :  { %6353 = vmatpush1.bf16.msra.mxu0 %v9769_v27  ;;  %6385 = vmatpush1.bf16.msra.mxu1 %v9770_v0  ;;  %v232_v27 = vadd.f32 %v9786_v3, %v9785_v20  ;;  %v9787_v0 = vld [vmem:[#allocation49_spill] sm:$0xff] }
 0x696   :  { %6355 = vmatprep.subr.bf16.mxu0 %v9771_v43  ;;  %6387 = vmatprep.subr.bf16.mxu1 %v9772_v24  ;;  %v234_v43 = vadd.f32 %v9787_v0, %v9609_v59 }
 0x699   :  { %6357 = vmatpush1.bf16.msra.mxu0 %v9773_v25  ;;  %6389 = vmatpush1.bf16.msra.mxu1 %v9774_v21 }
 0x69a   :  { %6359 = vmatprep.subr.bf16.mxu0 %v9775_v1  ;;  %6391 = vmatprep.subr.bf16.mxu1 %v9776_v42 }
 0x69d   :  { %6361 = vmatpush1.bf16.msra.mxu0 %v9777_v4  ;;  %6393 = vmatpush1.bf16.msra.mxu1 %v9778_v39 }
 0x69e   :  { %6363 = vmatprep.subr.bf16.mxu0 %v9779_v57  ;;  %6395 = vmatprep.subr.bf16.mxu1 %v9780_v44 }
 0x6a1   :  { %6365 = vmatpush1.bf16.msra.mxu0 %v9781_v33  ;;  %6397 = vmatpush1.bf16.msra.mxu1 %v9782_v37 }
 0x6a2   :  { %6399 = vmatprep.subr.bf16.mxu0 %v9783_v12  ;;  %6431 = vmatprep.subr.bf16.mxu1 %v9784_v23 }
 0x737   :  { %v3198_v24 = vpop.f32.mrb[28].mxu0  ;;  %v3269_v25 = vpop.f32.mrb[20].mxu1 }
 0x738   :  { %v3274_v21 = vadd.f32 %v3198_v24, %v232_v27  ;;  %v3200_v1 = vpop.f32.mrb[29].mxu0  ;;  %v3271_v42 = vpop.f32.mrb[21].mxu1  ;;  %v6736_v37 = vadd.f32 %v3269_v25, %v9753_v52 }
 0x739   :  { %v3275_v4 = vadd.f32 %v3200_v1, %v234_v43  ;;  %v6737_v44 = vadd.f32 %v3271_v42, %v8243_v58 }
 0x73a   :  { %v4872_v39 = vmul.f32 -1.442695, %v3274_v21 }
 0x73b   :  { %v4873_v57 = vmul.f32 -1.442695, %v3275_v4  ;;  %v4874_v33 = vmul.f32 -1.442695, %v6737_v44 }
 0x73c   :  { %7054 = vpow2.f32 %v4872_v39 }
 0x73d   :  { %7056 = vpow2.f32 %v4873_v57 }
 0x73e   :  { %7058 = vpow2.f32 %v4874_v33 }
 0x73f   :  { %7060 = vtanh.f32 %v6736_v37 }
 0x746   :  { %v7055_v12 = vpop.eup %7054 }
 0x747   :  { %v7057_v23 = vpop.eup %7056  ;;  %v3281_v3 = vadd.f32 1.0, %v7055_v12 }
 0x748   :  { %v3287_v0 = vadd.f32 1.0, %v7057_v23  ;;  %v7059_v27 = vpop.eup %7058  ;;  %v4191_v23 = vld [vmem:[%s9426_s12] sm:$0x1] }
 0x749   :  { %7062 = vrcp.f32 %v3281_v3  ;;  %v7061_v24 = vpop.eup %7060  ;;  %v3294_v4 = vadd.f32 1.0, %v7059_v27 }
 0x74a   :  { %7064 = vrcp.f32 %v3287_v0 }
 0x74b   :  { %7066 = vrcp.f32 %v3294_v4 }
 0x753   :  { %v7063_v43 = vpop.eup %7062 }
 0x754   :  { %v7065_v21 = vpop.eup %7064  ;;  %v3298_v1 = vmul.f32 %v7063_v43, %v7061_v24 }
 0x755   :  { %v3297_v39 = vmul.f32 %v7065_v21, %v8811_v14  ;;  %v7067_v43 = vpop.eup %7066 }
 0x757   :  { %v3299_v42 = vadd.f32 %v3298_v1, %v3297_v39  ;;  %v3382_v57 = vpop.f32.mrb[10].mxu0  ;;  %v3453_v44 = vpop.f32.mrb[26].mxu1 }
 0x758   :  { %v6742_v25 = vadd.f32 %v3382_v57, %v9719_v54  ;;  %v3384_v12 = vpop.f32.mrb[11].mxu0  ;;  %v3455_v33 = vpop.f32.mrb[27].mxu1  ;;  %v6758_v4 = vadd.f32 %v3453_v44, %v8260_v10 }
 0x759   :  { %v6743_v37 = vadd.f32 %v3384_v12, %v9650_v41  ;;  %7068 = vtanh.f32 %v3299_v42  ;;  %v8915_v3 = vsel %vm1591_vm12, %v3299_v42, %v8811_v14  ;;  %v6759_v24 = vadd.f32 %v3455_v33, %v8262_v13 }
 0x75a   :  { %v4875_v0 = vmul.f32 -1.442695, %v6742_v25 }
 0x75b   :  { %v4876_v27 = vmul.f32 -1.442695, %v6743_v37  ;;  %v4877_v1 = vmul.f32 -1.442695, %v6759_v24  ;;  %v3904_v37 = vld [vmem:[%s9420_s9 + $0x68] sm:$0xff]  ;;  %v3906_v24 = vld [vmem:[%s9420_s9 + $0x78] sm:$0xff] }
 0x75c   :  { %7070 = vpow2.f32 %v4875_v0 }
 0x75d   :  { %7072 = vpow2.f32 %v4876_v27  ;;  %v3905_v27 = vld [vmem:[%s9420_s9 + $0x70] sm:$0xff] }
 0x75e   :  { %7074 = vpow2.f32 %v4877_v1  ;;  %v3876_v1 = vld [vmem:[%s9421_s8 + $0x8] sm:$0xff] }
 0x75f   :  { %7076 = vtanh.f32 %v6758_v4 }
 0x763   :  { %v7069_v21 = vpop.eup %7068 }
 0x764   :  { %v3301_v39 = vmul.f32 %v7069_v21, %v7067_v43  ;;  %v6490_v43 = vpack.c.bf16 %v3906_v24, %v3905_v27  ;;  %v3875_v21 = vld [vmem:[%s9421_s8] sm:$0xff] }
 0x765   :  { %v9025_v4 = vpack.c.bf16 %v3876_v1, %v3875_v21 }
 0x766   :  { %v7071_v57 = vpop.eup %7070  ;;  %v8922_v12 = vsel %vm1591_vm12, %v3301_v39, %v8818_v7  ;;  %v9790_v39 = vld [vmem:[#allocation50_spill] sm:$0xff] }
 0x767   :  { %v7073_v14 = vpop.eup %7072  ;;  %v3465_v42 = vadd.f32 1.0, %v7071_v57  ;;  %3565 = vmatmul.mubr.f32.vlgmr.msra.gmra.mrb[30].mxu0 %v8922_v12  ;;  %3636 = vmatmul.mubr.f32.vlgmr.msra.gmra.mrb[22].mxu1 %v8922_v12  ;;  %v238_v57 = vadd.f32 %v9790_v39, %v9785_v20 }
 0x768   :  { %v3471_v25 = vadd.f32 1.0, %v7073_v14  ;;  %6401 = vmatpush1.bf16.msra.mxu0 %v7696_v36  ;;  %6433 = vmatpush1.bf16.msra.mxu1 %v8030_v31  ;;  %v7075_v36 = vpop.eup %7074  ;;  %v9791_v14 = vld [vmem:[#allocation51_spill] sm:$0xff] }
 0x769   :  { %7078 = vrcp.f32 %v3465_v42  ;;  %6403 = vmatprep.subr.bf16.mxu0 %v7719_v45  ;;  %6435 = vmatprep.subr.bf16.mxu1 %v8034_v49  ;;  %v7077_v45 = vpop.eup %7076  ;;  %v240_v42 = vadd.f32 %v9791_v14, %v9609_v59 }
 0x76a   :  { %7080 = vrcp.f32 %v3471_v25  ;;  %3747 = vmatprep.mubr.f32.mxu0 %v9567_v35  ;;  %3818 = vmatprep.mubr.f32.mxu1 %v9567_v35 }
 0x76c   :  { %6405 = vmatpush1.bf16.msra.mxu0 %v7741_v55  ;;  %6437 = vmatpush1.bf16.msra.mxu1 %v8052_v61  ;;  %v3478_v55 = vadd.f32 1.0, %v7075_v36  ;;  %v3894_v61 = vld [vmem:[%s9420_s9 + $0x18] sm:$0xff] }
 0x76d   :  { %6407 = vmatprep.subr.bf16.mxu0 %v7764_v9  ;;  %6439 = vmatprep.subr.bf16.mxu1 %v8056_v11 }
 0x76e   :  { %7082 = vrcp.f32 %v3478_v55 }
 0x770   :  { %6409 = vmatpush1.bf16.msra.mxu0 %v7789_v48  ;;  %6441 = vmatpush1.bf16.msra.mxu1 %v8074_v50  ;;  %v3895_v50 = vld [vmem:[%s9420_s9 + $0x20] sm:$0xff] }
 0x771   :  { %6411 = vmatprep.subr.bf16.mxu0 %v7813_v30  ;;  %6443 = vmatprep.subr.bf16.mxu1 %v8080_v51  ;;  %v3896_v51 = vld [vmem:[%s9420_s9 + $0x28] sm:$0xff] }
 0x773   :  { %v7079_v31 = vpop.eup %7078 }
 0x774   :  { %v7081_v49 = vpop.eup %7080  ;;  %v3482_v44 = vmul.f32 %v7079_v31, %v7077_v45  ;;  %6413 = vmatpush1.bf16.msra.mxu0 %v7836_v62  ;;  %6445 = vmatpush1.bf16.msra.mxu1 %v8097_v28  ;;  %v6470_v28 = vpack.c.bf16 %v3896_v51, %v3895_v50 }
 0x775   :  { %v3481_v9 = vmul.f32 %v7081_v49, %v8848_v19  ;;  %6415 = vmatprep.subr.bf16.mxu0 %v7859_v60  ;;  %6447 = vmatprep.subr.bf16.mxu1 %v8103_v6  ;;  %v3897_v6 = vld [vmem:[%s9420_s9 + $0x30] sm:$0xff] }
 0x777   :  { %v3483_v48 = vadd.f32 %v3482_v44, %v3481_v9 }
 0x778   :  { %6417 = vmatpush1.bf16.msra.mxu0 %v7879_v15  ;;  %6449 = vmatpush1.bf16.msra.mxu1 %v8126_v29  ;;  %v3898_v29 = vld [vmem:[%s9420_s9 + $0x38] sm:$0xff] }
 0x779   :  { %6419 = vmatprep.subr.bf16.mxu0 %v7909_v32  ;;  %6451 = vmatprep.subr.bf16.mxu1 %v8129_v16  ;;  %7084 = vtanh.f32 %v3483_v48  ;;  %v8952_v62 = vsel %vm1395_vm11, %v3483_v48, %v8848_v19  ;;  %v7083_v16 = vpop.eup %7082  ;;  %v3903_v19 = vld [vmem:[%s9420_s9 + $0x60] sm:$0xff] }
 0x77a   :  { %v6486_v0 = vpack.c.bf16 %v3904_v37, %v3903_v19 }
 0x77c   :  { %6421 = vmatpush1.bf16.msra.mxu0 %v7929_v34  ;;  %6453 = vmatpush1.bf16.msra.mxu1 %v8152_v26  ;;  %v3891_v34 = vld [vmem:[%s9420_s9] sm:$0xff]  ;;  %v6474_v26 = vpack.c.bf16 %v3898_v29, %v3897_v6 }
 0x77d   :  { %6423 = vmatprep.subr.bf16.mxu0 %v7954_v17  ;;  %6455 = vmatprep.subr.bf16.mxu1 %v8155_v63  ;;  %v3892_v17 = vld [vmem:[%s9420_s9 + $0x8] sm:$0xff]  ;;  %v3899_v63 = vld [vmem:[%s9420_s9 + $0x40] sm:$0xff] }
 0x780   :  { %6425 = vmatpush1.bf16.msra.mxu0 %v7974_v40  ;;  %6457 = vmatpush1.bf16.msra.mxu1 %v8172_v5  ;;  %v6462_v40 = vpack.c.bf16 %v3892_v17, %v3891_v34  ;;  %v3900_v5 = vld [vmem:[%s9420_s9 + $0x48] sm:$0xff] }
 0x781   :  { %6427 = vmatprep.subr.bf16.mxu0 %v7993_v56  ;;  %6459 = vmatprep.subr.bf16.mxu1 %v8175_v22  ;;  %v3893_v56 = vld [vmem:[%s9420_s9 + $0x10] sm:$0xff]  ;;  %v6478_v22 = vpack.c.bf16 %v3900_v5, %v3899_v63 }
 0x782   :  { %v6466_v11 = vpack.c.bf16 %v3894_v61, %v3893_v56 }
 0x783   :  { %v7085_v60 = vpop.eup %7084 }
 0x784   :  { %6429 = vmatpush1.bf16.msra.mxu0 %v9583_v2  ;;  %6461 = vmatpush1.bf16.msra.mxu1 %v8186_v38  ;;  %v3485_v15 = vmul.f32 %v7085_v60, %v7083_v16  ;;  %v3901_v38 = vld [vmem:[%s9420_s9 + $0x50] sm:$0xff]  ;;  %v3902_v2 = vld [vmem:[%s9420_s9 + $0x58] sm:$0xff] }
 0x785   :  { %6463 = vmatprep.subr.bf16.mxu0 %v6462_v40  ;;  %v6482_v33 = vpack.c.bf16 %v3902_v2, %v3901_v38 }
 0x786   :  { %v8967_v32 = vsel %vm1395_vm11, %v3485_v15, %v8865_v8 }
 0x787   :  { %3748 = vmatmul.mubr.f32.vlgmr.msra.gmra.mrb[8].mxu0 %v8967_v32  ;;  %3819 = vmatmul.mubr.f32.vlgmr.msra.gmra.mrb[24].mxu1 %v8967_v32 }
 0x788   :  { %6465 = vmatpush3.bf16.msra.mxu0 %v6462_v40  ;;  %5177 = vmatprep.mubr.msk.f32.mxu1 %vm7169_vm1, %v9567_v35 }
 0x789   :  { %6467 = vmatprep.subr.bf16.mxu0 %v6466_v11 }
 0x78c   :  { %6469 = vmatpush3.bf16.msra.mxu0 %v6466_v11 }
 0x78d   :  { %6471 = vmatprep.subr.bf16.mxu0 %v6470_v28 }
 0x790   :  { %6473 = vmatpush3.bf16.msra.mxu0 %v6470_v28 }
 0x791   :  { %6475 = vmatprep.subr.bf16.mxu0 %v6474_v26 }
 0x794   :  { %6477 = vmatpush3.bf16.msra.mxu0 %v6474_v26 }
 0x795   :  { %6479 = vmatprep.subr.bf16.mxu0 %v6478_v22 }
 0x798   :  { %6481 = vmatpush3.bf16.msra.mxu0 %v6478_v22 }
 0x799   :  { %6483 = vmatprep.subr.bf16.mxu0 %v6482_v33 }
 0x79c   :  { %6485 = vmatpush3.bf16.msra.mxu0 %v6482_v33 }
 0x79d   :  { %6487 = vmatprep.subr.bf16.mxu0 %v6486_v0 }
 0x7a0   :  { %6489 = vmatpush3.bf16.msra.mxu0 %v6486_v0 }
 0x7a1   :  { %6491 = vmatprep.subr.bf16.mxu0 %v6490_v43 }
 0x7a4   :  { %6493 = vmatpush3.bf16.msra.mxu0 %v6490_v43 }
 0x7a5   :  { %6495 = vmatprep.subr.bf16.mxu0 %v9025_v4 }
 0x83a   :  { %v3566_v25 = vpop.f32.mrb[30].mxu0  ;;  %v3637_v36 = vpop.f32.mrb[22].mxu1 }
 0x83b   :  { %v3642_v45 = vadd.f32 %v3566_v25, %v238_v57  ;;  %v3568_v31 = vpop.f32.mrb[31].mxu0  ;;  %v3639_v49 = vpop.f32.mrb[23].mxu1  ;;  %v6738_v60 = vadd.f32 %v3637_v36, %v9753_v52 }
 0x83c   :  { %v3643_v44 = vadd.f32 %v3568_v31, %v240_v42  ;;  %v6739_v48 = vadd.f32 %v3639_v49, %v8243_v58  ;;  %v9042_v42 = vpop.permute.xlu0 %6843  ;;  %v3877_v31 = vld [vmem:[%s9421_s8 + $0x10] sm:$0xff]  ;;  %v3878_v49 = vld [vmem:[%s9421_s8 + $0x18] sm:$0xff] }
 0x83d   :  { %v4878_v55 = vmul.f32 -1.442695, %v3642_v45  ;;  %v6845_v45 = vunpack.i.l.bf16 %v9042_v42 }
 0x83e   :  { %v4879_v9 = vmul.f32 -1.442695, %v3643_v44  ;;  %v4880_v16 = vmul.f32 -1.442695, %v6739_v48  ;;  %v9052_v44 = vpop.permute.xlu1 %6848 }
 0x83f   :  { %7086 = vpow2.f32 %v4878_v55  ;;  %v6850_v48 = vunpack.i.l.bf16 %v9052_v44  ;;  %v7168_v55 = vmov 0.0|0.0  }
 0x840   :  { %7088 = vpow2.f32 %v4879_v9  ;;  %6526 = vmatprep.subr.bf16.mxu1 %v7168_v55 }
 0x841   :  { %7090 = vpow2.f32 %v4880_v16 }
 0x842   :  { %7092 = vtanh.f32 %v6738_v60  ;;  %v9058_v60 = vpop.permute.xlu0 %6853 }
 0x849   :  { %v7087_v15 = vpop.eup %7086 }
 0x84a   :  { %v7089_v20 = vpop.eup %7088  ;;  %v3649_v34 = vadd.f32 1.0, %v7087_v15 }
 0x84b   :  { %v3655_v59 = vadd.f32 1.0, %v7089_v20  ;;  %v7091_v17 = vpop.eup %7090  ;;  %v6498_v20 = vpack.c.bf16 %v3878_v49, %v3877_v31 }
 0x84c   :  { %7094 = vrcp.f32 %v3649_v34  ;;  %v7093_v40 = vpop.eup %7092  ;;  %v3662_v50 = vadd.f32 1.0, %v7091_v17  ;;  %v3122_v34 = vmul.f32 %v6850_v48, %v8865_v8  ;;  %v3880_v17 = vld [vmem:[%s9421_s8 + $0x28] sm:$0xff] }
 0x84d   :  { %7096 = vrcp.f32 %v3655_v59  ;;  %v3879_v59 = vld [vmem:[%s9421_s8 + $0x20] sm:$0xff] }
 0x84e   :  { %7098 = vrcp.f32 %v3662_v50  ;;  %v6502_v8 = vpack.c.bf16 %v3880_v17, %v3879_v59  ;;  %v4884_v17 = vld [vmem:[%s9423_s10] ss:$0 sm:$0xff] }
 0x856   :  { %v7095_v56 = vpop.eup %7094 }
 0x857   :  { %v7097_v61 = vpop.eup %7096  ;;  %v3666_v11 = vmul.f32 %v7095_v56, %v7093_v40  ;;  %v6851_v40 = vunpack.i.h.bf16 %v9052_v44  ;;  %v6855_v56 = vunpack.i.l.bf16 %v9058_v60 }
 0x858   :  { %v3665_v51 = vmul.f32 %v7097_v61, %v8915_v3  ;;  %v7099_v2 = vpop.eup %7098  ;;  %v6859_v61 = vpop.permute.xlu1 %6858 }
 0x85a   :  { %v3667_v58 = vadd.f32 %v3666_v11, %v3665_v51  ;;  %v3749_v28 = vpop.f32.mrb[8].mxu0  ;;  %v3820_v6 = vpop.f32.mrb[24].mxu1  ;;  %v9793_v11 = vld [vmem:[#allocation68_spill] sm:$0xff] }
 0x85b   :  { %v6740_v52 = vadd.f32 %v3749_v28, %v9719_v54  ;;  %v3751_v29 = vpop.f32.mrb[9].mxu0  ;;  %v3822_v26 = vpop.f32.mrb[25].mxu1  ;;  %v6756_v33 = vadd.f32 %v3820_v6, %v8260_v10  ;;  %v2386_v50 = vmul.f32 %v6855_v56, %v9793_v11  ;;  %v3881_v51 = vld [vmem:[%s9421_s8 + $0x30] sm:$0xff]  ;;  %v6856_v28 = vunpack.i.h.bf16 %v9058_v60  ;;  %v4180_v60 = vld [vmem:[%s9422_s13 + $0x28] sm:$0xff] }
 0x85c   :  { %7100 = vtanh.f32 %v3667_v58  ;;  %v6741_v63 = vadd.f32 %v3751_v29, %v9650_v41  ;;  %v6757_v38 = vadd.f32 %v3822_v26, %v8262_v13  ;;  %v3882_v58 = vld [vmem:[%s9421_s8 + $0x38] sm:$0xff]  ;;  %v6861_v6 = vunpack.i.h.bf16 %v6859_v61 }
 0x85d   :  { %v4881_v5 = vmul.f32 -1.442695, %v6740_v52  ;;  %v6506_v29 = vpack.c.bf16 %v3882_v58, %v3881_v51  ;;  %v9795_v26 = vld [vmem:[#allocation61_spill] sm:$0xff]  ;;  %v2938_v31 = vmul.f32 %v6856_v28, %v8818_v7  ;;  %v4176_v7 = vld [vmem:[%s9422_s13 + $0x8] sm:$0xff] }
 0x85e   :  { %v4882_v22 = vmul.f32 -1.442695, %v6741_v63  ;;  %v4883_v3 = vmul.f32 -1.442695, %v6757_v38  ;;  %v9796_v38 = vld [vmem:[#allocation60_spill] sm:$0xff] }
 0x85f   :  { %7102 = vpow2.f32 %v4881_v5  ;;  %v3883_v5 = vld [vmem:[%s9421_s8 + $0x40] sm:$0xff] }
 0x860   :  { %7104 = vpow2.f32 %v4882_v22  ;;  %v3884_v22 = vld [vmem:[%s9421_s8 + $0x48] sm:$0xff] }
 0x861   :  { %7106 = vpow2.f32 %v4883_v3  ;;  %v9797_v3 = vld [vmem:[#allocation11_spill] sm:$0xff] }
 0x862   :  { %7108 = vtanh.f32 %v6756_v33  ;;  %v1015_v33 = vmul.f32 %v6845_v45, %v9797_v3  ;;  %v4186_v3 = vld [vmem:[%s9422_s13 + $0x58] sm:$0xff] }
 0x866   :  { %v7101_v19 = vpop.eup %7100 }
 0x867   :  { %v9039_v37 = vmul.f32 %v7101_v19, %v7099_v2  ;;  %v1210_v2 = vmul.f32 %v6861_v6, %v9796_v38  ;;  %v6510_v19 = vpack.c.bf16 %v3884_v22, %v3883_v5  ;;  %v4183_v22 = vld [vmem:[%s9422_s13 + $0x40] sm:$0xff]  ;;  %v4184_v38 = vld [vmem:[%s9422_s13 + $0x48] sm:$0xff] }
 0x869   :  { %v7103_v0 = vpop.eup %7102 }
 0x86a   :  { %v7105_v54 = vpop.eup %7104  ;;  %v3832_v27 = vadd.f32 1.0, %v7103_v0  ;;  %v3885_v0 = vld [vmem:[%s9421_s8 + $0x50] sm:$0xff] }
 0x86b   :  { %v3838_v24 = vadd.f32 1.0, %v7105_v54  ;;  %v7107_v41 = vpop.eup %7106  ;;  %v3886_v54 = vld [vmem:[%s9421_s8 + $0x58] sm:$0xff] }
 0x86c   :  { %7110 = vrcp.f32 %v3832_v27  ;;  %v7109_v43 = vpop.eup %7108  ;;  %v3845_v39 = vadd.f32 1.0, %v7107_v41  ;;  %v6514_v27 = vpack.c.bf16 %v3886_v54, %v3885_v0  ;;  %v3888_v41 = vld [vmem:[%s9421_s8 + $0x68] sm:$0xff]  ;;  %v4187_v0 = vld [vmem:[%s9422_s13 + $0x60] sm:$0xff] }
 0x86d   :  { %7112 = vrcp.f32 %v3838_v24  ;;  %v3887_v24 = vld [vmem:[%s9421_s8 + $0x60] sm:$0xff]  ;;  %v4188_v54 = vld [vmem:[%s9422_s13 + $0x68] sm:$0xff] }
 0x86e   :  { %7114 = vrcp.f32 %v3845_v39  ;;  %v9798_v39 = vld [vmem:[#allocation53_spill] sm:$0xff] }
 0x876   :  { %v7111_v21 = vpop.eup %7110 }
 0x877   :  { %v7113_v1 = vpop.eup %7112  ;;  %v3849_v13 = vmul.f32 %v7111_v21, %v7109_v43  ;;  %v6518_v43 = vpack.c.bf16 %v3888_v41, %v3887_v24  ;;  %v3889_v21 = vld [vmem:[%s9421_s8 + $0x70] sm:$0xff]  ;;  %v4190_v41 = vld [vmem:[%s9422_s13 + $0x78] sm:$0xff] }
 0x878   :  { %v3848_v57 = vmul.f32 %v7113_v1, %v8952_v62  ;;  %v7115_v10 = vpop.eup %7114  ;;  %v6846_v62 = vunpack.i.h.bf16 %v9042_v42  ;;  %v3890_v1 = vld [vmem:[%s9421_s8 + $0x78] sm:$0xff]  ;;  %v3670_v42 = vsel %vm1199_vm10, %v9039_v37, %v8922_v12  ;;  %v4189_v24 = vld [vmem:[%s9422_s13 + $0x70] sm:$0xff] }
 0x879   :  { %v4178_v37 = vld [vmem:[%s9422_s13 + $0x18] sm:$0xff] }
 0x87a   :  { %v3850_v14 = vadd.f32 %v3849_v13, %v3848_v57  ;;  %v3490_v15 = vmul.f32 %v6846_v62, %v8967_v32  ;;  %v6522_v13 = vpack.c.bf16 %v3890_v1, %v3889_v21  ;;  %v1406_v57 = vmul.f32 %v6846_v62, %v9798_v39 }
 0x87b   :  { %v3674_v62 = vmul.f32 %v6861_v6, %v3670_v42 }
 0x87c   :  { %7116 = vtanh.f32 %v3850_v14  ;;  %v9799_v14 = vld [vmem:[#allocation56_spill] sm:$0xff] }
 0x886   :  { %v7117_v25 = vpop.eup %7116 }
 0x887   :  { %v3852_v36 = vmul.f32 %v7117_v25, %v7115_v10  ;;  %v1798_v10 = vmul.f32 %v6850_v48, %v9799_v14  ;;  %v9800_v25 = vld [vmem:[#allocation66_spill] sm:$0xff] }
 0x889   :  { %v3853_v9 = vsel %vm1004_vm9, %v3852_v36, %v8967_v32  ;;  %v2754_v32 = vmul.f32 %v6851_v40, %v8761_v53  ;;  %v9794_v53 = vld [vmem:[#allocation64_spill] sm:$0xff]  ;;  %v2190_v36 = vmul.f32 %v6851_v40, %v9800_v25 }
 0x88a   :  { %v3857_v16 = vmul.f32 %v6845_v45, %v3853_v9  ;;  %v1994_v52 = vmul.f32 %v6856_v28, %v9794_v53  ;;  %v2570_v45 = vmul.f32 %v6855_v56, %v8714_v18  ;;  %v4175_v18 = vld [vmem:[%s9422_s13] sm:$0xff]  ;;  %v4177_v9 = vld [vmem:[%s9422_s13 + $0x10] sm:$0xff] }
 0x88b   :  { %v9139_v48 = vpack.c.bf16 %v4178_v37, %v4177_v9 }
 0x88c   :  { %5089 = vmatprep.mubr.f32.mxu0 %v3857_v16  ;;  %v4179_v16 = vld [vmem:[%s9422_s13 + $0x20] sm:$0xff] }
 0x88d   :  { %5090 = vmatmul.mubr.f32.vlgmr.msra.gmra.mrb[32].mxu0 %v3490_v15  ;;  %v9151_v15 = vpack.c.bf16 %v4180_v60, %v4179_v16 }
 0x88e   :  { %6497 = vmatpush3.bf16.msra.mxu0 %v9025_v4  ;;  %5092 = vmatprep.mubr.f32.mxu0 %v3122_v34  ;;  %v6860_v4 = vunpack.i.l.bf16 %v6859_v61  ;;  %v4182_v34 = vld [vmem:[%s9422_s13 + $0x38] sm:$0xff] }
 0x88f   :  { %6499 = vmatprep.subr.bf16.mxu0 %v6498_v20 }
 0x890   :  { %v1602_v63 = vmul.f32 %v6860_v4, %v9795_v26  ;;  %v3306_v49 = vmul.f32 %v6860_v4, %v8922_v12  ;;  %v9133_v12 = vpack.c.bf16 %v4176_v7, %v4175_v18 }
 0x891   :  { %5093 = vmatmul.mubr.f32.gmra.mrb[34].mxu0 %v2754_v32 }
 0x892   :  { %6501 = vmatpush3.bf16.msra.mxu0 %v6498_v20  ;;  %5095 = vmatprep.mubr.f32.mxu0 %v2386_v50  ;;  %v4181_v20 = vld [vmem:[%s9422_s13 + $0x30] sm:$0xff] }
 0x893   :  { %6503 = vmatprep.subr.bf16.mxu0 %v6502_v8  ;;  %6528 = vmatpush3.bf16.msra.mxu1 %v9133_v12  ;;  %v9163_v59 = vpack.c.bf16 %v4182_v34, %v4181_v20 }
 0x894   :  { %6529 = vmatprep.subr.bf16.mxu1 %v7168_v55 }
 0x895   :  { %5096 = vmatmul.mubr.f32.gmra.mrb[36].mxu0 %v1994_v52 }
 0x896   :  { %6505 = vmatpush3.bf16.msra.mxu0 %v6502_v8  ;;  %5098 = vmatprep.mubr.f32.mxu0 %v1602_v63  ;;  %v4885_v8 = vld [vmem:[%s9424_s11] ss:$0 sm:$0xff] }
 0x897   :  { %6507 = vmatprep.subr.bf16.mxu0 %v6506_v29  ;;  %6531 = vmatpush3.bf16.msra.mxu1 %v9139_v48 }
 0x898   :  { %6532 = vmatprep.subr.bf16.mxu1 %v7168_v55 }
 0x899   :  { %5099 = vmatmul.mubr.f32.gmra.mrb[38].mxu0 %v1210_v2  ;;  %v9230_v2 = vpack.c.bf16 %v4184_v38, %v4183_v22 }
 0x89a   :  { %6509 = vmatpush3.bf16.msra.mxu0 %v6506_v29  ;;  %5133 = vmatprep.mubr.f32.mxu0 %v1015_v33 }
 0x89b   :  { %6511 = vmatprep.subr.bf16.mxu0 %v6510_v19  ;;  %6534 = vmatpush3.bf16.msra.mxu1 %v9151_v15 }
 0x89c   :  { %6535 = vmatprep.subr.bf16.mxu1 %v7168_v55 }
 0x89e   :  { %6513 = vmatpush3.bf16.msra.mxu0 %v6510_v19  ;;  %v4185_v19 = vld [vmem:[%s9422_s13 + $0x50] sm:$0xff] }
 0x89f   :  { %6515 = vmatprep.subr.bf16.mxu0 %v6514_v27  ;;  %6537 = vmatpush3.bf16.msra.mxu1 %v9163_v59  ;;  %v9242_v33 = vpack.c.bf16 %v4186_v3, %v4185_v19 }
 0x8a0   :  { %6538 = vmatprep.subr.bf16.mxu1 %v7168_v55 }
 0x8a2   :  { %6517 = vmatpush3.bf16.msra.mxu0 %v6514_v27  ;;  %v9253_v27 = vpack.c.bf16 %v4188_v54, %v4187_v0 }
 0x8a3   :  { %6519 = vmatprep.subr.bf16.mxu0 %v6518_v43  ;;  %6540 = vmatpush3.bf16.msra.mxu1 %v9230_v2 }
 0x8a4   :  { %6541 = vmatprep.subr.bf16.mxu1 %v7168_v55 }
 0x8a6   :  { %6521 = vmatpush3.bf16.msra.mxu0 %v6518_v43  ;;  %v9267_v43 = vpack.c.bf16 %v4190_v41, %v4189_v24 }
 0x8a7   :  { %6523 = vmatprep.subr.bf16.mxu0 %v6522_v13  ;;  %6543 = vmatpush3.bf16.msra.mxu1 %v9242_v33 }
 0x8a8   :  { %6544 = vmatprep.subr.bf16.mxu1 %v7168_v55 }
 0x8aa   :  { %6525 = vmatpush3.bf16.msra.mxu0 %v6522_v13 }
 0x8ab   :  { %6574 = vmatprep.subr.bf16.mxu0 %v7168_v55  ;;  %6546 = vmatpush3.bf16.msra.mxu1 %v9253_v27 }
 0x8ac   :  { %6547 = vmatprep.subr.bf16.mxu1 %v7168_v55 }
 0x8ad   :  { %5134 = vmatmul.mubr.f32.vlgmr.msra.gmra.mrb[32].mxu0 %v1406_v57 }
 0x8ae   :  { %5136 = vmatprep.mubr.f32.mxu0 %v1798_v10  ;;  %6576 = vmatpush3.bf16.msra.mxu0 %v9133_v12 }
 0x8af   :  { %6577 = vmatprep.subr.bf16.mxu0 %v7168_v55  ;;  %6549 = vmatpush3.bf16.msra.mxu1 %v9267_v43 }
 0x8b0   :  { %6550 = vmatprep.subr.bf16.mxu1 %v7168_v55 }
 0x8b1   :  { %5137 = vmatmul.mubr.f32.gmra.mrb[34].mxu0 %v2190_v36 }
 0x8b2   :  { %5139 = vmatprep.mubr.f32.mxu0 %v2570_v45  ;;  %6579 = vmatpush3.bf16.msra.mxu0 %v9139_v48 }
 0x8b3   :  { %6580 = vmatprep.subr.bf16.mxu0 %v7168_v55 }
 0x8b5   :  { %5140 = vmatmul.mubr.f32.gmra.mrb[36].mxu0 %v2938_v31 }
 0x8b6   :  { %5142 = vmatprep.mubr.f32.mxu0 %v3306_v49  ;;  %6582 = vmatpush3.bf16.msra.mxu0 %v9151_v15 }
 0x8b7   :  { %6583 = vmatprep.subr.bf16.mxu0 %v7168_v55 }
 0x8b9   :  { %5143 = vmatmul.mubr.f32.gmra.mrb[38].mxu0 %v3674_v62 }
 0x8ba   :  { %6585 = vmatpush3.bf16.msra.mxu0 %v9163_v59  ;;  %5247 = vmatprep.mubr.msk.f32.mxu0 %vm7169_vm1, %v9567_v35 }
 0x8bb   :  { %6586 = vmatprep.subr.bf16.mxu0 %v7168_v55 }
 0x8be   :  { %6588 = vmatpush3.bf16.msra.mxu0 %v9230_v2 }
 0x8bf   :  { %6589 = vmatprep.subr.bf16.mxu0 %v7168_v55 }
 0x8c2   :  { %6591 = vmatpush3.bf16.msra.mxu0 %v9242_v33 }
 0x8c3   :  { %6592 = vmatprep.subr.bf16.mxu0 %v7168_v55 }
 0x8c6   :  { %6594 = vmatpush3.bf16.msra.mxu0 %v9253_v27 }
 0x8c7   :  { %6595 = vmatprep.subr.bf16.mxu0 %v7168_v55 }
 0x8ca   :  { %6597 = vmatpush3.bf16.msra.mxu0 %v9267_v43 }
 0x8cb   :  { %6622 = vmatprep.subr.bf16.mxu0 %v7168_v55 }
 0x980   :  { %v5135_v40 = vpop.f32.mrb[32].mxu0 }
 0x981   :  { %v9175_v56 = vadd.f32 %v5135_v40, %v4884_v17  ;;  %v4078_v32 = vpop.f32.mrb[33].mxu0 }
 0x982   :  { %v4124_v61 = vadd.f32 %v4884_v17, %v4078_v32 }
 0x983   :  { %4133 = vst [vmem:[%s9425_s14 + $0x8] sm:$0xff] %v9175_v56  ;;  %4140 = vmax.xlane.f32.xlu1 %v9175_v56 }
 0x984   :  { %4132 = vst [vmem:[%s9425_s14] sm:$0xff] %v4124_v61  ;;  %v5138_v11 = vpop.f32.mrb[34].mxu0  ;;  %v4201_v50 = vadd.f32 %v4885_v8, %v4124_v61 }
 0x985   :  { %v9188_v51 = vadd.f32 %v5138_v11, %v4884_v17  ;;  %v4088_v58 = vpop.f32.mrb[35].mxu0 }
 0x986   :  { %v9190_v28 = vadd.f32 %v4884_v17, %v4088_v58  ;;  %4202 = vmax.xlane.f32.xlu0 %v4201_v50 }
 0x987   :  { %4135 = vst [vmem:[%s9425_s14 + $0x18] sm:$0xff] %v9188_v51 }
 0x988   :  { %4134 = vst [vmem:[%s9425_s14 + $0x10] sm:$0xff] %v9190_v28  ;;  %v5141_v4 = vpop.f32.mrb[36].mxu0 }
 0x989   :  { %v9200_v6 = vadd.f32 %v5141_v4, %v4884_v17  ;;  %v4098_v53 = vpop.f32.mrb[37].mxu0 }
 0x98a   :  { %v9202_v52 = vadd.f32 %v4884_v17, %v4098_v53 }
 0x98b   :  { %4137 = vst [vmem:[%s9425_s14 + $0x28] sm:$0xff] %v9200_v6 }
 0x98c   :  { %4136 = vst [vmem:[%s9425_s14 + $0x20] sm:$0xff] %v9202_v52  ;;  %v5144_v29 = vpop.f32.mrb[38].mxu0 }
 0x98d   :  { %v9212_v26 = vadd.f32 %v5144_v29, %v4884_v17  ;;  %v4108_v63 = vpop.f32.mrb[39].mxu0 }
 0x98e   :  { %v9214_v5 = vadd.f32 %v4884_v17, %v4108_v63 }
 0x98f   :  { %4139 = vst [vmem:[%s9425_s14 + $0x38] sm:$0xff] %v9212_v26 }
 0x990   :  { %4138 = vst [vmem:[%s9425_s14 + $0x30] sm:$0xff] %v9214_v5 }
 0xa10   :  { %v4141_v57 = vpop.xlane.xlu1 %4140 }
 0xa11   :  { %v4154_v14 = vsub.f32 %v9175_v56, %v4141_v57 }
 0xa13   :  { %v4203_v21 = vpop.xlane.xlu0 %4202  ;;  %v4161_v10 = vmul.f32 1.442695, %v4154_v14 }
 0xa14   :  { %v4204_v1 = vsub.f32 %v4201_v50, %v4203_v21  ;;  %v4282_v9 = vadd.f32 %v4203_v21, %v4141_v57 }
 0xa16   :  { %v4205_v13 = vmul.f32 1.442695, %v4204_v1 }
 0xa18   :  { %7118 = vpow2.f32 %v4205_v13 }
 0xa19   :  { %7120 = vpow2.f32 %v4161_v10 }
 0xa22   :  { %v7119_v39 = vpop.eup %7118 }
 0xa23   :  { %5178 = vmatmul.mubr.f32.vlgmr.msra.gmra.mrb[40].mxu1 %v7119_v39  ;;  %v7121_v25 = vpop.eup %7120 }
 0xa24   :  { %6552 = vmatpush3.bf16.msra.mxu1 %v9133_v12  ;;  %5212 = vmatprep.mubr.msk.f32.mxu1 %vm7169_vm1, %v9567_v35 }
 0xa25   :  { %6553 = vmatprep.subr.bf16.mxu1 %v7168_v55 }
 0xa28   :  { %6555 = vmatpush3.bf16.msra.mxu1 %v9139_v48 }
 0xa29   :  { %6556 = vmatprep.subr.bf16.mxu1 %v7168_v55 }
 0xa2c   :  { %6558 = vmatpush3.bf16.msra.mxu1 %v9151_v15 }
 0xa2d   :  { %6559 = vmatprep.subr.bf16.mxu1 %v7168_v55 }
 0xa30   :  { %6561 = vmatpush3.bf16.msra.mxu1 %v9163_v59 }
 0xa31   :  { %6562 = vmatprep.subr.bf16.mxu1 %v7168_v55 }
 0xa34   :  { %6564 = vmatpush3.bf16.msra.mxu1 %v9230_v2 }
 0xa35   :  { %6565 = vmatprep.subr.bf16.mxu1 %v7168_v55 }
 0xa38   :  { %6567 = vmatpush3.bf16.msra.mxu1 %v9242_v33 }
 0xa39   :  { %6568 = vmatprep.subr.bf16.mxu1 %v7168_v55 }
 0xa3c   :  { %6570 = vmatpush3.bf16.msra.mxu1 %v9253_v27 }
 0xa3d   :  { %6571 = vmatprep.subr.bf16.mxu1 %v7168_v55 }
 0xa40   :  { %6573 = vmatpush3.bf16.msra.mxu1 %v9267_v43 }
 0xa41   :  { %6598 = vmatprep.subr.bf16.mxu1 %v7168_v55 }
 0xaf6   :  { %v4273_v36 = vpop.f32.mrb[40].mxu1 }
 0xaf7   :  { %v4277_v45 = vmul.f32 %v7121_v25, %v4273_v36  ;;  %v5179_v31 = vpop.f32.mrb[41].mxu1 }
 0xaf9   :  { %4278 = vmax.xlane.f32.xlu0 %v4277_v45 }
 0xafd   :  { %4142 = vmax.xlane.f32.xlu0 %v9190_v28 }
 0xb01   :  { %4144 = vmax.xlane.f32.xlu0 %v9188_v51 }
 0xb05   :  { %4146 = vmax.xlane.f32.xlu0 %v9202_v52 }
 0xb09   :  { %4148 = vmax.xlane.f32.xlu0 %v9200_v6 }
 0xb0d   :  { %4150 = vmax.xlane.f32.xlu0 %v9214_v5 }
 0xb11   :  { %4152 = vmax.xlane.f32.xlu0 %v9212_v26 }
 0xb86   :  { %v4279_v49 = vpop.xlane.xlu0 %4278 }
 0xb87   :  { %7122 = vrcp.f32 %v4279_v49 }
 0xb8a   :  { %v4143_v20 = vpop.xlane.xlu0 %4142 }
 0xb8b   :  { %v4155_v17 = vsub.f32 %v9190_v28, %v4143_v20 }
 0xb8d   :  { %v4163_v40 = vmul.f32 1.442695, %v4155_v17 }
 0xb8e   :  { %v4145_v63 = vpop.xlane.xlu0 %4144 }
 0xb8f   :  { %v4156_v22 = vsub.f32 %v9188_v51, %v4145_v63 }
 0xb91   :  { %v7123_v42 = vpop.eup %7122  ;;  %v4165_v38 = vmul.f32 1.442695, %v4156_v22 }
 0xb92   :  { %7124 = vlog2.f32 %v7123_v42  ;;  %v4281_v62 = vmul.f32 %v7123_v42, %v4277_v45  ;;  %v4147_v25 = vpop.xlane.xlu0 %4146 }
 0xb93   :  { %7126 = vpow2.f32 %v4163_v40  ;;  %v4157_v36 = vsub.f32 %v9202_v52, %v4147_v25 }
 0xb94   :  { %v4286_v18 = vsel %vm1395_vm11, %v4281_v62, %v7119_v39 }
 0xb95   :  { %5213 = vmatmul.mubr.f32.vlgmr.msra.gmra.mrb[42].mxu1 %v4286_v18  ;;  %v4167_v45 = vmul.f32 1.442695, %v4157_v36 }
 0xb96   :  { %6600 = vmatpush3.bf16.msra.mxu1 %v9133_v12  ;;  %5282 = vmatprep.mubr.msk.f32.mxu1 %vm7169_vm1, %v9567_v35 }
 0xb97   :  { %6601 = vmatprep.subr.bf16.mxu1 %v7168_v55 }
 0xb9a   :  { %6603 = vmatpush3.bf16.msra.mxu1 %v9139_v48 }
 0xb9b   :  { %6604 = vmatprep.subr.bf16.mxu1 %v7168_v55 }
 0xb9c   :  { %v7125_v7 = vpop.eup %7124 }
 0xb9d   :  { %v4284_v37 = vmul.f32 0.6931472, %v7125_v7  ;;  %v7127_v56 = vpop.eup %7126 }
 0xb9e   :  { %6606 = vmatpush3.bf16.msra.mxu1 %v9151_v15 }
 0xb9f   :  { %v4285_v16 = vsub.f32 %v4282_v9, %v4284_v37  ;;  %6607 = vmatprep.subr.bf16.mxu1 %v7168_v55 }
 0xba1   :  { %v4287_v60 = vsel %vm1390_vm3, %v4285_v16, %v4203_v21  ;;  %vm4786_vm3 = vcmask 7168  }
 0xba2   :  { %v4363_v34 = vadd.f32 %v4287_v60, %v4143_v20  ;;  %6609 = vmatpush3.bf16.msra.mxu1 %v9163_v59 }
 0xba3   :  { %6610 = vmatprep.subr.bf16.mxu1 %v7168_v55 }
 0xba6   :  { %6612 = vmatpush3.bf16.msra.mxu1 %v9230_v2 }
 0xba7   :  { %6613 = vmatprep.subr.bf16.mxu1 %v7168_v55 }
 0xbaa   :  { %6615 = vmatpush3.bf16.msra.mxu1 %v9242_v33 }
 0xbab   :  { %6616 = vmatprep.subr.bf16.mxu1 %v7168_v55 }
 0xbae   :  { %6618 = vmatpush3.bf16.msra.mxu1 %v9253_v27 }
 0xbaf   :  { %6619 = vmatprep.subr.bf16.mxu1 %v7168_v55 }
 0xbb2   :  { %6621 = vmatpush3.bf16.msra.mxu1 %v9267_v43 }
 0xbb3   :  { %6646 = vmatprep.subr.bf16.mxu1 %v7168_v55 }
 0xc68   :  { %v4354_v32 = vpop.f32.mrb[42].mxu1 }
 0xc69   :  { %v4358_v8 = vmul.f32 %v7127_v56, %v4354_v32  ;;  %v5214_v61 = vpop.f32.mrb[43].mxu1 }
 0xc6b   :  { %4359 = vmax.xlane.f32.xlu1 %v4358_v8 }
 0xcf8   :  { %v4360_v11 = vpop.xlane.xlu1 %4359 }
 0xcf9   :  { %7128 = vrcp.f32 %v4360_v11 }
 0xd03   :  { %v7129_v50 = vpop.eup %7128 }
 0xd04   :  { %7130 = vlog2.f32 %v7129_v50  ;;  %v4362_v58 = vmul.f32 %v7129_v50, %v4358_v8 }
 0xd05   :  { %7132 = vpow2.f32 %v4165_v38 }
 0xd06   :  { %v4367_v4 = vsel %vm1787_vm13, %v4362_v58, %v4286_v18 }
 0xd07   :  { %5248 = vmatmul.mubr.f32.vlgmr.msra.gmra.mrb[40].mxu0 %v4367_v4 }
 0xd08   :  { %6624 = vmatpush3.bf16.msra.mxu0 %v9133_v12  ;;  %5317 = vmatprep.mubr.msk.f32.mxu0 %vm7169_vm1, %v9567_v35 }
 0xd09   :  { %6625 = vmatprep.subr.bf16.mxu0 %v7168_v55 }
 0xd0c   :  { %6627 = vmatpush3.bf16.msra.mxu0 %v9139_v48 }
 0xd0d   :  { %6628 = vmatprep.subr.bf16.mxu0 %v7168_v55 }
 0xd0e   :  { %v7131_v28 = vpop.eup %7130 }
 0xd0f   :  { %v4365_v53 = vmul.f32 0.6931472, %v7131_v28  ;;  %v7133_v19 = vpop.eup %7132 }
 0xd10   :  { %6630 = vmatpush3.bf16.msra.mxu0 %v9151_v15 }
 0xd11   :  { %v4366_v29 = vsub.f32 %v4363_v34, %v4365_v53  ;;  %6631 = vmatprep.subr.bf16.mxu0 %v7168_v55 }
 0xd13   :  { %v4368_v47 = vsel %vm1782_vm5, %v4366_v29, %v4287_v60 }
 0xd14   :  { %6633 = vmatpush3.bf16.msra.mxu0 %v9163_v59  ;;  %v4444_v39 = vadd.f32 %v4368_v47, %v4145_v63 }
 0xd15   :  { %6634 = vmatprep.subr.bf16.mxu0 %v7168_v55 }
 0xd18   :  { %6636 = vmatpush3.bf16.msra.mxu0 %v9230_v2 }
 0xd19   :  { %6637 = vmatprep.subr.bf16.mxu0 %v7168_v55 }
 0xd1c   :  { %6639 = vmatpush3.bf16.msra.mxu0 %v9242_v33 }
 0xd1d   :  { %6640 = vmatprep.subr.bf16.mxu0 %v7168_v55 }
 0xd20   :  { %6642 = vmatpush3.bf16.msra.mxu0 %v9253_v27 }
 0xd21   :  { %6643 = vmatprep.subr.bf16.mxu0 %v7168_v55 }
 0xd24   :  { %6645 = vmatpush3.bf16.msra.mxu0 %v9267_v43 }
 0xd25   :  { %6670 = vmatprep.subr.bf16.mxu0 %v7168_v55 }
 0xdda   :  { %v4435_v3 = vpop.f32.mrb[40].mxu0 }
 0xddb   :  { %v4439_v0 = vmul.f32 %v7133_v19, %v4435_v3  ;;  %v5249_v54 = vpop.f32.mrb[41].mxu0 }
 0xddd   :  { %4440 = vmax.xlane.f32.xlu1 %v4439_v0 }
 0xe6a   :  { %v4441_v24 = vpop.xlane.xlu1 %4440 }
 0xe6b   :  { %7134 = vrcp.f32 %v4441_v24 }
 0xe75   :  { %v7135_v41 = vpop.eup %7134 }
 0xe76   :  { %7136 = vlog2.f32 %v7135_v41  ;;  %v4443_v21 = vmul.f32 %v7135_v41, %v4439_v0 }
 0xe77   :  { %7138 = vpow2.f32 %v4167_v45 }
 0xe78   :  { %v4448_v13 = vsel %vm2179_vm15, %v4443_v21, %v4367_v4 }
 0xe79   :  { %5283 = vmatmul.mubr.f32.vlgmr.msra.gmra.mrb[44].mxu1 %v4448_v13 }
 0xe7a   :  { %6648 = vmatpush3.bf16.msra.mxu1 %v9133_v12  ;;  %5352 = vmatprep.mubr.msk.f32.mxu1 %vm7169_vm1, %v9567_v35 }
 0xe7b   :  { %6649 = vmatprep.subr.bf16.mxu1 %v7168_v55 }
 0xe7e   :  { %6651 = vmatpush3.bf16.msra.mxu1 %v9139_v48 }
 0xe7f   :  { %6652 = vmatprep.subr.bf16.mxu1 %v7168_v55 }
 0xe80   :  { %v7137_v51 = vpop.eup %7136 }
 0xe81   :  { %v4446_v57 = vmul.f32 0.6931472, %v7137_v51  ;;  %v7139_v31 = vpop.eup %7138 }
 0xe82   :  { %6654 = vmatpush3.bf16.msra.mxu1 %v9151_v15 }
 0xe83   :  { %v4447_v14 = vsub.f32 %v4444_v39, %v4446_v57  ;;  %6655 = vmatprep.subr.bf16.mxu1 %v7168_v55  ;;  %v4192_v39 = vmul.f32 1.442695, %v4191_v23 }
 0xe85   :  { %v4449_v10 = vsel %vm2174_vm6, %v4447_v14, %v4368_v47 }
 0xe86   :  { %6657 = vmatpush3.bf16.msra.mxu1 %v9163_v59  ;;  %v4525_v20 = vadd.f32 %v4449_v10, %v4147_v25  ;;  %v9805_v25 = vld [vmem:[#allocation52_spill] sm:$0xff] }
 0xe87   :  { %6658 = vmatprep.subr.bf16.mxu1 %v7168_v55 }
 0xe8a   :  { %6660 = vmatpush3.bf16.msra.mxu1 %v9230_v2 }
 0xe8b   :  { %6661 = vmatprep.subr.bf16.mxu1 %v7168_v55 }
 0xe8e   :  { %6663 = vmatpush3.bf16.msra.mxu1 %v9242_v33 }
 0xe8f   :  { %6664 = vmatprep.subr.bf16.mxu1 %v7168_v55 }
 0xe92   :  { %6666 = vmatpush3.bf16.msra.mxu1 %v9253_v27 }
 0xe93   :  { %6667 = vmatprep.subr.bf16.mxu1 %v7168_v55 }
 0xe96   :  { %6669 = vmatpush3.bf16.msra.mxu1 %v9267_v43 }
 0xf4c   :  { %v4516_v49 = vpop.f32.mrb[44].mxu1 }
 0xf4d   :  { %v4520_v42 = vmul.f32 %v7139_v31, %v4516_v49  ;;  %v5284_v62 = vpop.f32.mrb[45].mxu1 }
 0xf4f   :  { %4521 = vmax.xlane.f32.xlu1 %v4520_v42 }
 0xfdc   :  { %v4522_v18 = vpop.xlane.xlu1 %4521 }
 0xfdd   :  { %7140 = vrcp.f32 %v4522_v18 }
 0xfe7   :  { %v7141_v7 = vpop.eup %7140 }
 0xfe8   :  { %7142 = vlog2.f32 %v7141_v7  ;;  %v4524_v9 = vmul.f32 %v7141_v7, %v4520_v42 }
 0xfea   :  { %v4529_v16 = vsel %vm2375_vm0, %v4524_v9, %v4448_v13 }
 0xfeb   :  { %5318 = vmatmul.mubr.f32.vlgmr.msra.gmra.mrb[42].mxu0 %v4529_v16 }
 0xfec   :  { %6672 = vmatpush3.bf16.msra.mxu0 %v9133_v12  ;;  %5387 = vmatprep.mubr.msk.f32.mxu0 %vm7169_vm1, %v9567_v35  ;;  %v4149_v35 = vpop.xlane.xlu0 %4148 }
 0xfed   :  { %6673 = vmatprep.subr.bf16.mxu0 %v7168_v55 }
 0xff0   :  { %6675 = vmatpush3.bf16.msra.mxu0 %v9139_v48  ;;  %v4158_v48 = vsub.f32 %v9200_v6, %v4149_v35  ;;  %v4151_v11 = vpop.xlane.xlu0 %4150 }
 0xff1   :  { %6676 = vmatprep.subr.bf16.mxu0 %v7168_v55  ;;  %v4159_v50 = vsub.f32 %v9214_v5, %v4151_v11 }
 0xff2   :  { %v7143_v52 = vpop.eup %7142 }
 0xff3   :  { %v4527_v60 = vmul.f32 0.6931472, %v7143_v52  ;;  %v4171_v58 = vmul.f32 1.442695, %v4159_v50 }
 0xff4   :  { %6678 = vmatpush3.bf16.msra.mxu0 %v9151_v15  ;;  %v4169_v15 = vmul.f32 1.442695, %v4158_v48  ;;  %v4153_v54 = vpop.xlane.xlu0 %4152 }
 0xff5   :  { %6679 = vmatprep.subr.bf16.mxu0 %v7168_v55  ;;  %v4528_v34 = vsub.f32 %v4525_v20, %v4527_v60  ;;  %v4160_v24 = vsub.f32 %v9212_v26, %v4153_v54 }
 0xff6   :  { %7144 = vpow2.f32 %v4169_v15 }
 0xff7   :  { %v4530_v12 = vsel %vm2370_vm8, %v4528_v34, %v4449_v10  ;;  %v4173_v41 = vmul.f32 1.442695, %v4160_v24 }
 0xff8   :  { %6681 = vmatpush3.bf16.msra.mxu0 %v9163_v59  ;;  %v4606_v8 = vadd.f32 %v4530_v12, %v4149_v35 }
 0xff9   :  { %6682 = vmatprep.subr.bf16.mxu0 %v7168_v55 }
 0xffc   :  { %6684 = vmatpush3.bf16.msra.mxu0 %v9230_v2 }
 0xffd   :  { %6685 = vmatprep.subr.bf16.mxu0 %v7168_v55 }
0x1000   :  { %6687 = vmatpush3.bf16.msra.mxu0 %v9242_v33  ;;  %v7145_v59 = vpop.eup %7144 }
0x1001   :  { %6688 = vmatprep.subr.bf16.mxu0 %v7168_v55 }
0x1004   :  { %6690 = vmatpush3.bf16.msra.mxu0 %v9253_v27 }
0x1005   :  { %6691 = vmatprep.subr.bf16.mxu0 %v7168_v55 }
0x1008   :  { %6693 = vmatpush3.bf16.msra.mxu0 %v9267_v43 }
0x10be   :  { %v4597_v17 = vpop.f32.mrb[42].mxu0 }
0x10bf   :  { %v4601_v2 = vmul.f32 %v7145_v59, %v4597_v17  ;;  %v5319_v40 = vpop.f32.mrb[43].mxu0 }
0x10c1   :  { %4602 = vmax.xlane.f32.xlu1 %v4601_v2 }
0x114e   :  { %v4603_v56 = vpop.xlane.xlu1 %4602 }
0x114f   :  { %7146 = vrcp.f32 %v4603_v56 }
0x1159   :  { %v7147_v33 = vpop.eup %7146 }
0x115a   :  { %7148 = vlog2.f32 %v7147_v33  ;;  %v4605_v32 = vmul.f32 %v7147_v33, %v4601_v2 }
0x115b   :  { %7150 = vpow2.f32 %v4171_v58 }
0x115c   :  { %v4610_v55 = vsel %vm1983_vm14, %v4605_v32, %v4529_v16 }
0x115d   :  { %5353 = vmatmul.mubr.f32.vlgmr.msra.gmra.mrb[46].mxu1 %v4610_v55 }
0x1164   :  { %v7149_v27 = vpop.eup %7148 }
0x1165   :  { %v4608_v43 = vmul.f32 0.6931472, %v7149_v27  ;;  %v7151_v4 = vpop.eup %7150 }
0x1167   :  { %v4609_v6 = vsub.f32 %v4606_v8, %v4608_v43 }
0x1169   :  { %v4611_v61 = vsel %vm1978_vm7, %v4609_v6, %v4530_v12 }
0x116a   :  { %v4687_v19 = vadd.f32 %v4611_v61, %v4151_v11 }
0x1230   :  { %v4678_v28 = vpop.f32.mrb[46].mxu1 }
0x1231   :  { %v4682_v53 = vmul.f32 %v7151_v4, %v4678_v28  ;;  %v5354_v29 = vpop.f32.mrb[47].mxu1 }
0x1233   :  { %4683 = vmax.xlane.f32.xlu1 %v4682_v53 }
0x12c0   :  { %v4684_v46 = vpop.xlane.xlu1 %4683 }
0x12c1   :  { %7152 = vrcp.f32 %v4684_v46 }
0x12cb   :  { %v7153_v47 = vpop.eup %7152 }
0x12cc   :  { %7154 = vlog2.f32 %v7153_v47  ;;  %v4686_v63 = vmul.f32 %v7153_v47, %v4682_v53 }
0x12cd   :  { %7156 = vpow2.f32 %v4173_v41 }
0x12ce   :  { %v4691_v22 = vsel %vm1591_vm12, %v4686_v63, %v4610_v55  ;;  %7158 = vpow2.f32 %v4192_v39 }
0x12cf   :  { %5388 = vmatmul.mubr.f32.vlgmr.msra.gmra.mrb[44].mxu0 %v4691_v22 }
0x12d6   :  { %v7155_v38 = vpop.eup %7154 }
0x12d7   :  { %v4689_v3 = vmul.f32 0.6931472, %v7155_v38  ;;  %v7157_v21 = vpop.eup %7156 }
0x12d8   :  { %v7159_v14 = vpop.eup %7158 }
0x12d9   :  { %v4690_v5 = vsub.f32 %v4687_v19, %v4689_v3  ;;  %v4778_v36 = vrot.slane %v7159_v14, %v9805_v25 }
0x12db   :  { %v4692_v0 = vsel %vm1586_vm4, %v4690_v5, %v4611_v61 }
0x12dc   :  { %v4768_v42 = vadd.f32 %v4692_v0, %v4153_v54 }
0x13a2   :  { %v4759_v1 = vpop.f32.mrb[44].mxu0 }
0x13a3   :  { %v4763_v13 = vmul.f32 %v7157_v21, %v4759_v1  ;;  %v5389_v51 = vpop.f32.mrb[45].mxu0 }
0x13a5   :  { %4764 = vmax.xlane.f32.xlu1 %v4763_v13 }
0x1432   :  { %v4765_v57 = vpop.xlane.xlu1 %4764 }
0x1433   :  { %7160 = vrcp.f32 %v4765_v57 }
0x143d   :  { %v7161_v10 = vpop.eup %7160 }
0x143e   :  { %7162 = vlog2.f32 %v7161_v10  ;;  %v4767_v26 = vmul.f32 %v7161_v10, %v4763_v13 }
0x1440   :  { %v4772_v45 = vsel %vm1199_vm10, %v4767_v26, %v4691_v22 }
0x1441   :  { %v4780_v31 = vmul.f32 %v4778_v36, %v4772_v45 }
0x1443   :  { %4781 = vadd.xlane.f32.xlu0 %v4780_v31 }
0x1448   :  { %v7163_v49 = vpop.eup %7162 }
0x1449   :  { %v4770_v62 = vmul.f32 0.6931472, %v7163_v49 }
0x144b   :  { %v4771_v18 = vsub.f32 %v4768_v42, %v4770_v62 }
0x144d   :  { %v4773_v7 = vsel %vm1194_vm2, %v4771_v18, %v4692_v0 }
0x14d0   :  { %v4782_v9 = vpop.xlane.xlu0 %4781 }
0x14d1   :  { %7164 = vlog2.f32 %v4782_v9 }
0x14db   :  { %v7165_v37 = vpop.eup %7164 }
0x14dc   :  { %v4784_v16 = vmul.f32 0.6931472, %v7165_v37 }
0x14de   :  { %v4785_v52 = vadd.f32 %v4784_v16, %v4773_v7 }
0x14e0   :  { %4787 = vst.msk [vmem:[%s9427_s15] sm:$0xff] %vm4786_vm3, %v4785_v52 }

</bundles_post_ra>
